<compile_context>
chip_gen: v7x
topology: tpu7x:2x2x1
jax: 0.10.0
libtpu: 0.0.40
codegen_flags: <defaults>
</compile_context>

<pallas_src>
import jax
import jax.numpy as jnp
from jax.experimental import pallas as pl
from jax.experimental.pallas import tpu as pltpu

# ---------------- dimensions (small, consistent with the forward) ----------------
B = 2             # batch
C = 3             # image channels
IMG = 16          # image height/width
P = 8             # patch size
NP = (IMG // P) ** 2          # 4 patches
NV = NP + 1                   # + class token = 5 vision tokens
PATCH_DIM = C * P * P         # 192
D = 32            # hidden size
H = 4             # attention heads
HD = D // H       # head dim = 8
MLP = 64          # mlp hidden
PROJ = 16         # CLIP projection dim
L = 8             # text sequence length
VOCAB = 64
NEG = -1e9

# packed weight slab (D, 448), bf16; every segment starts on a 128-lane boundary
W_COLS = 448
OFF_QKV = 0        # [wq|wk|wv] -> 96 cols
OFF_WO = 128       # output projection (D cols)
OFF_W1 = 256       # MLP fc1 (MLP cols)
OFF_PROJ = 384     # CLIP projection (PROJ cols)

# packed aux slab (24, 128), f32: LN rows, row-wise biases, positional rows
AUX_ROWS = 24
AUX_COLS = 128
ROW_LN1G, ROW_LN1B, ROW_LN2G, ROW_LN2B = 0, 1, 2, 3
ROW_FING, ROW_FINB = 4, 5        # post/final LayerNorm
ROW_PREG, ROW_PREB = 6, 7        # vision pre_layrnorm (identity for text)
ROW_BQKV = 8                     # fused [bq|bk|bv] (96 lanes)
ROW_BO = 9
ROW_B1 = 10                      # (64 lanes)
ROW_B2 = 11
ROW_POS = 16                     # positional rows (NV for vision, L for text)


# ---------------- in-kernel helpers (traced into the fused kernel) ----------------
def _layernorm(x, g, b, eps=1e-5):
    mu = jnp.mean(x, axis=-1, keepdims=True)
    var = jnp.mean(jnp.square(x - mu), axis=-1, keepdims=True)
    return (x - mu) * jax.lax.rsqrt(var + eps) * g + b


def _mha(x, nb, n, w_ref, aux_ref, bias):
    """Multi-head self attention, heads batched into a single leading einsum batch axis.
    x: (nb*n, D) flattened tokens (f32); bias: (nb, n, n) or None."""
    f32, bf16 = jnp.float32, jnp.bfloat16
    # fused QKV projection (single matmul) + fused lane-packed qkv bias row
    qkv = jnp.dot(x.astype(bf16), w_ref[:, OFF_QKV:OFF_QKV + 3 * D],
                  preferred_element_type=f32)
    qkv = (qkv + aux_ref[ROW_BQKV:ROW_BQKV + 1, 0:3 * D]).reshape(nb, n, 3 * D)

    def heads(base):  # (nb, n, 3D) -> (H*nb, n, HD), head-major batch order
        return jnp.concatenate(
            [qkv[:, :, base + h * HD: base + (h + 1) * HD] for h in range(H)], axis=0)

    q, k, v = heads(0), heads(D), heads(2 * D)
    # ONE batched score matmul + ONE softmax (was per-head)
    s = jnp.einsum('znc,zmc->znm', q.astype(bf16), k.astype(bf16),
                   preferred_element_type=f32) * (HD ** -0.5)            # (H*nb, n, n)
    if bias is not None:
        s = (s.reshape(H, nb, n, n) + bias[None]).reshape(H * nb, n, n)
    s = s - jnp.max(s, axis=-1, keepdims=True)
    p = jnp.exp(s)
    p = p * pl.reciprocal(jnp.sum(p, axis=-1, keepdims=True), approx=True)  # EUP slot
    o = jnp.einsum('znm,zmc->znc', p.astype(bf16), v.astype(bf16),
                   preferred_element_type=f32)                           # (H*nb, n, HD)
    # merge heads back onto the lane axis, then a single fused output projection
    o = jnp.concatenate([o[h * nb:(h + 1) * nb] for h in range(H)], axis=-1)  # (nb, n, D)
    out = jnp.dot(o.reshape(nb * n, D).astype(bf16), w_ref[:, OFF_WO:OFF_WO + D],
                  preferred_element_type=f32)
    return out + aux_ref[ROW_BO:ROW_BO + 1, 0:D]


def _mlp(x, w_ref, w2_ref, aux_ref):
    f32, bf16 = jnp.float32, jnp.bfloat16
    h = jnp.dot(x.astype(bf16), w_ref[:, OFF_W1:OFF_W1 + MLP],
                preferred_element_type=f32) + aux_ref[ROW_B1:ROW_B1 + 1, 0:MLP]
    h = h * pl.reciprocal(1.0 + jnp.exp(-1.702 * h), approx=True)        # QuickGELU (EUP)
    out = jnp.dot(h.astype(bf16), w2_ref[...], preferred_element_type=f32)
    return out + aux_ref[ROW_B2:ROW_B2 + 1, 0:D]


def _block(x, nb, n, w_ref, w2_ref, aux_ref, bias):
    """Pre-LN transformer block on flattened tokens x: (nb*n, D)."""
    h = _layernorm(x, aux_ref[ROW_LN1G:ROW_LN1G + 1, 0:D], aux_ref[ROW_LN1B:ROW_LN1B + 1, 0:D])
    x = x + _mha(h, nb, n, w_ref, aux_ref, bias)
    h = _layernorm(x, aux_ref[ROW_LN2G:ROW_LN2G + 1, 0:D], aux_ref[ROW_LN2B:ROW_LN2B + 1, 0:D])
    x = x + _mlp(h, w_ref, w2_ref, aux_ref)
    return x


# ---------------- the single fused kernel: vision + text + head ----------------
def clip_fused_kernel(patch_ref, v_wp_ref, v_w_ref, v_w2_ref, v_aux_ref,
                      tok_ref, mask_ref, t_w_ref, t_w2_ref, t_aux_ref,
                      fc_ref, out_ref):
    f32, bf16 = jnp.float32, jnp.bfloat16

    # ---------- vision encoder (CLIPVisionTransformer, 1 block) ----------
    va = v_aux_ref
    patches = patch_ref[...].reshape(B * NV, PATCH_DIM).astype(bf16)      # rows b*NV are zero (CLS)
    xv = jnp.dot(patches, v_wp_ref[...], preferred_element_type=f32)      # patch embedding
    xv = (xv.reshape(B, NV, D) + va[ROW_POS:ROW_POS + NV, 0:D][None]).reshape(B * NV, D)
    xv = _layernorm(xv, va[ROW_PREG:ROW_PREG + 1, 0:D], va[ROW_PREB:ROW_PREB + 1, 0:D])
    xv = _block(xv, B, NV, v_w_ref, v_w2_ref, va, None)
    pooled_v = xv.reshape(B, NV, D)[:, 0:1, :].reshape(B, D)              # CLS pool = static slice
    pooled_v = _layernorm(pooled_v, va[ROW_FING:ROW_FING + 1, 0:D], va[ROW_FINB:ROW_FINB + 1, 0:D])
    v_feat = jnp.dot(pooled_v.astype(bf16), v_w_ref[:, OFF_PROJ:OFF_PROJ + PROJ],
                     preferred_element_type=f32)                          # visual_projection (B, PROJ)

    # ---------- text encoder (CLIPTextTransformer, 1 block) ----------
    ta = t_aux_ref
    mask = mask_ref[...]                                                  # (B, L) f32
    xt = (tok_ref[...] + ta[ROW_POS:ROW_POS + L, 0:D][None]).reshape(B * L, D)
    # causal + key-padding attention bias built in-kernel from the mask
    rows = jax.lax.broadcasted_iota(jnp.int32, (L, L), 0)
    cols = jax.lax.broadcasted_iota(jnp.int32, (L, L), 1)
    causal = (cols <= rows).astype(f32)                                   # (L, L)
    attn_bias = (1.0 - causal[None] * mask[:, None, :]) * NEG             # (B, L, L)
    xt = _block(xt, B, L, t_w_ref, t_w2_ref, ta, attn_bias)
    # EOS pooling: last unmasked token, selected via mask-derived one-hot + masked sublane-sum.
    # TODO(synk): HF CLIP pools at the eos_token_id / argmax position; approximated here by the
    # last unmasked token of attention_mask.
    eos = jnp.sum(mask, axis=-1, keepdims=True).astype(jnp.int32) - 1     # (B, 1)
    lpos = jax.lax.broadcasted_iota(jnp.int32, (B, L), 1)
    sel = (lpos == eos).astype(f32)                                       # (B, L) one-hot
    pooled_t = jnp.sum(xt.reshape(B, L, D) * sel[:, :, None], axis=1)     # (B, D)
    pooled_t = _layernorm(pooled_t, ta[ROW_FING:ROW_FING + 1, 0:D], ta[ROW_FINB:ROW_FINB + 1, 0:D])
    t_feat = jnp.dot(pooled_t.astype(bf16), t_w_ref[:, OFF_PROJ:OFF_PROJ + PROJ],
                     preferred_element_type=f32)                          # text_projection (B, PROJ)

    # ---------- head: similarity + Linear(1,1) + sigmoid ----------
    sim = jnp.sum(v_feat * t_feat, axis=-1, keepdims=True)                # (B, 1)
    z = sim * fc_ref[0, 0] + fc_ref[0, 1]                                 # scalars from SMEM
    out_ref[...] = pl.reciprocal(1.0 + jnp.exp(-z), approx=True)          # sigmoid via EUP


# ---------------- parameter init (deterministic, synthetic) ----------------
def init_params(key):
    keys = jax.random.split(key, 40)
    it = iter(keys)

    def nrm(shape, scale=0.02):
        return (scale * jax.random.normal(next(it), shape)).astype(jnp.float32)

    def ones(shape):
        return jnp.ones(shape, jnp.float32)

    def zeros(shape):
        return jnp.zeros(shape, jnp.float32)

    def layer():
        return dict(ln1_g=ones((D,)), ln1_b=zeros((D,)),
                    wq=nrm((D, D)), bq=nrm((D,)),
                    wk=nrm((D, D)), bk=nrm((D,)),
                    wv=nrm((D, D)), bv=nrm((D,)),
                    wo=nrm((D, D)), bo=nrm((D,)),
                    ln2_g=ones((D,)), ln2_b=zeros((D,)),
                    w1=nrm((D, MLP)), b1=nrm((MLP,)),
                    w2=nrm((MLP, D)), b2=nrm((D,)))

    vision = dict(wp=nrm((PATCH_DIM, D)), cls=nrm((D,)), pos=nrm((NV, D)),
                  lnp_g=ones((D,)), lnp_b=zeros((D,)),
                  layer=layer(),
                  lnf_g=ones((D,)), lnf_b=zeros((D,)),
                  wproj=nrm((D, PROJ)))
    text = dict(emb=nrm((VOCAB, D), 0.05), pos=nrm((L, D)),
                layer=layer(),
                lnf_g=ones((D,)), lnf_b=zeros((D,)),
                wproj=nrm((D, PROJ)))
    fc = dict(w=nrm((1, 1), 0.5), b=nrm((1, 1), 0.1))
    return dict(vision=vision, text=text, fc=fc)


# ---------------- one-time packing (hoisted OUT of the jitted forward) ----------------
def pack_params(params):
    f32, bf16 = jnp.float32, jnp.bfloat16

    def pack_w(layer, wproj):
        w = jnp.zeros((D, W_COLS), f32)
        w = w.at[:, OFF_QKV:OFF_QKV + D].set(layer['wq'])
        w = w.at[:, OFF_QKV + D:OFF_QKV + 2 * D].set(layer['wk'])
        w = w.at[:, OFF_QKV + 2 * D:OFF_QKV + 3 * D].set(layer['wv'])
        w = w.at[:, OFF_WO:OFF_WO + D].set(layer['wo'])
        w = w.at[:, OFF_W1:OFF_W1 + MLP].set(layer['w1'])
        w = w.at[:, OFF_PROJ:OFF_PROJ + PROJ].set(wproj)
        return w.astype(bf16)

    def pack_aux(layer, fin_g, fin_b, pre_g, pre_b, pos_rows):
        a = jnp.zeros((AUX_ROWS, AUX_COLS), f32)
        a = a.at[ROW_LN1G, 0:D].set(layer['ln1_g'])
        a = a.at[ROW_LN1B, 0:D].set(layer['ln1_b'])
        a = a.at[ROW_LN2G, 0:D].set(layer['ln2_g'])
        a = a.at[ROW_LN2B, 0:D].set(layer['ln2_b'])
        a = a.at[ROW_FING, 0:D].set(fin_g)
        a = a.at[ROW_FINB, 0:D].set(fin_b)
        a = a.at[ROW_PREG, 0:D].set(pre_g)
        a = a.at[ROW_PREB, 0:D].set(pre_b)
        a = a.at[ROW_BQKV, 0:3 * D].set(jnp.concatenate([layer['bq'], layer['bk'], layer['bv']]))
        a = a.at[ROW_BO, 0:D].set(layer['bo'])
        a = a.at[ROW_B1, 0:MLP].set(layer['b1'])
        a = a.at[ROW_B2, 0:D].set(layer['b2'])
        a = a.at[ROW_POS:ROW_POS + pos_rows.shape[0], 0:D].set(pos_rows)
        return a

    vp, tp, fc = params['vision'], params['text'], params['fc']
    v_base = vp['pos'].at[0].add(vp['cls'])        # fold CLS token into positional row 0
    return dict(
        v_wp=vp['wp'].astype(bf16),
        v_w=pack_w(vp['layer'], vp['wproj']),
        v_w2=vp['layer']['w2'].astype(bf16),
        v_aux=pack_aux(vp['layer'], vp['lnf_g'], vp['lnf_b'], vp['lnp_g'], vp['lnp_b'], v_base),
        emb=tp['emb'],
        t_w=pack_w(tp['layer'], tp['wproj']),
        t_w2=tp['layer']['w2'].astype(bf16),
        t_aux=pack_aux(tp['layer'], tp['lnf_g'], tp['lnf_b'],
                       jnp.ones((D,), f32), jnp.zeros((D,), f32), tp['pos']),
        fc=jnp.concatenate([fc['w'].reshape(1, 1), fc['b'].reshape(1, 1)], axis=1),  # (1, 2)
    )


# ---------------- forward (jitted; only input-dependent glue + ONE pallas_call) ----------------
_VMEM = pl.BlockSpec(memory_space=pltpu.MemorySpace.VMEM)
_SMEM = pl.BlockSpec(memory_space=pltpu.MemorySpace.SMEM)


@jax.jit
def clip_combined_forward(packed, image, input_ids, attention_mask):
    f32 = jnp.float32
    # NCHW image -> [B, NP, C*P*P] patches (channel-major within a patch, matching Conv2d patch
    # embedding); a zero row per image reserves the CLS slot (cls folded into pos row 0 at pack time).
    x = image.astype(f32).reshape(B, C, IMG // P, P, IMG // P, P)
    patches = jnp.transpose(x, (0, 2, 4, 1, 3, 5)).reshape(B, NP, PATCH_DIM)
    patches = jnp.concatenate([jnp.zeros((B, 1, PATCH_DIM), f32), patches], axis=1)  # (B, NV, PD)
    tok = jnp.take(packed['emb'], input_ids, axis=0)                                 # (B, L, D)
    mask = attention_mask.astype(f32)                                                # (B, L)

    cost = pl.CostEstimate(flops=600_000, transcendentals=3_000, bytes_accessed=120_000)
    out = pl.pallas_call(
        clip_fused_kernel,
        out_shape=jax.ShapeDtypeStruct((B, 1), jnp.float32),
        in_specs=[_VMEM] * 10 + [_SMEM],
        out_specs=_VMEM,
        cost_estimate=cost,
    )(patches, packed['v_wp'], packed['v_w'], packed['v_w2'], packed['v_aux'],
      tok, mask, packed['t_w'], packed['t_w2'], packed['t_aux'], packed['fc'])
    return out.reshape(B)                                                            # .squeeze()


if __name__ == "__main__":
    key = jax.random.PRNGKey(0)
    kp, ki, kt = jax.random.split(key, 3)
    params = init_params(kp)
    packed = pack_params(params)        # one-time packing; never re-runs per forward call

    image = jax.random.normal(ki, (B, C, IMG, IMG), dtype=jnp.float32)   # NCHW
    input_ids = jax.random.randint(kt, (B, L), 1, VOCAB)
    attention_mask = jnp.array([[1] * L, [1] * (L - 2) + [0] * 2], dtype=jnp.int32)

    out = clip_combined_forward(packed, image, input_ids, attention_mask)
    out = jax.block_until_ready(out)
    assert out.shape == (B,)
    assert bool(jnp.all(jnp.isfinite(out)))
    print("KERNEL_OK")
</pallas_src>

<mosaic_0001>
module attributes {stable_mosaic.version = 11 : i64} {
  func.func @clip_fused_kernel(%arg0: memref<2x5x192xf32, #tpu.memory_space<vmem>>, %arg1: memref<192x32xbf16, #tpu.memory_space<vmem>>, %arg2: memref<32x448xbf16, #tpu.memory_space<vmem>>, %arg3: memref<64x32xbf16, #tpu.memory_space<vmem>>, %arg4: memref<24x128xf32, #tpu.memory_space<vmem>>, %arg5: memref<2x8x32xf32, #tpu.memory_space<vmem>>, %arg6: memref<2x8xf32, #tpu.memory_space<vmem>>, %arg7: memref<32x448xbf16, #tpu.memory_space<vmem>>, %arg8: memref<64x32xbf16, #tpu.memory_space<vmem>>, %arg9: memref<24x128xf32, #tpu.memory_space<vmem>>, %arg10: memref<1x2xf32, #tpu.memory_space<smem>>, %arg11: memref<2x1xf32, #tpu.memory_space<vmem>>) attributes {dimension_semantics = [], scalar_prefetch = 0 : i64, scratch_operands = 0 : i64, tpu.core_type = #tpu.core_type<tc>} {
    %c0 = arith.constant 0 : index
    %c0_0 = arith.constant 0 : index
    %c0_1 = arith.constant 0 : index
    %0 = vector.load %arg0[%c0, %c0_0, %c0_1] : memref<2x5x192xf32, #tpu.memory_space<vmem>>, vector<2x5x192xf32>
    %1 = vector.shape_cast %0 : vector<2x5x192xf32> to vector<10x192xf32>
    %2 = arith.truncf %1 : vector<10x192xf32> to vector<10x192xbf16>
    %c0_2 = arith.constant 0 : index
    %c0_3 = arith.constant 0 : index
    %3 = vector.load %arg1[%c0_2, %c0_3] : memref<192x32xbf16, #tpu.memory_space<vmem>>, vector<192x32xbf16>
    %cst = arith.constant dense<0.000000e+00> : vector<10x32xf32>
    %4 = tpu.matmul %2, %3, %cst {dimension_numbers = #tpu.dot_dimension_numbers<[1], [0], [0], [1], [0, 0, 1, 1], [], []>} : vector<10x192xbf16>, vector<192x32xbf16>, vector<10x32xf32> -> vector<10x32xf32>
    %5 = vector.shape_cast %4 : vector<10x32xf32> to vector<2x5x32xf32>
    %c16 = arith.constant 16 : index
    %c0_4 = arith.constant 0 : index
    %6 = vector.load %arg4[%c16, %c0_4] : memref<24x128xf32, #tpu.memory_space<vmem>>, vector<5x32xf32>
    %7 = vector.shape_cast %6 : vector<5x32xf32> to vector<1x5x32xf32>
    %8 = vector.broadcast %7 : vector<1x5x32xf32> to vector<2x5x32xf32>
    %9 = arith.addf %5, %8 : vector<2x5x32xf32>
    %10 = vector.shape_cast %9 : vector<2x5x32xf32> to vector<10x32xf32>
    %c6 = arith.constant 6 : index
    %c0_5 = arith.constant 0 : index
    %11 = vector.load %arg4[%c6, %c0_5] : memref<24x128xf32, #tpu.memory_space<vmem>>, vector<1x32xf32>
    %c7 = arith.constant 7 : index
    %c0_6 = arith.constant 0 : index
    %12 = vector.load %arg4[%c7, %c0_6] : memref<24x128xf32, #tpu.memory_space<vmem>>, vector<1x32xf32>
    %cst_7 = arith.constant dense<0.000000e+00> : vector<10xf32>
    %13 = vector.multi_reduction <add>, %10, %cst_7 [1] : vector<10x32xf32> to vector<10xf32>
    %14 = vector.shape_cast %13 : vector<10xf32> to vector<10x1xf32>
    %cst_8 = arith.constant 3.200000e+01 : f32
    %15 = vector.broadcast %cst_8 : f32 to vector<10x1xf32>
    %16 = arith.divf %14, %15 : vector<10x1xf32>
    %17 = vector.broadcast %16 : vector<10x1xf32> to vector<10x32xf32>
    %18 = arith.subf %10, %17 : vector<10x32xf32>
    %19 = arith.mulf %18, %18 : vector<10x32xf32>
    %cst_9 = arith.constant dense<0.000000e+00> : vector<10xf32>
    %20 = vector.multi_reduction <add>, %19, %cst_9 [1] : vector<10x32xf32> to vector<10xf32>
    %21 = vector.shape_cast %20 : vector<10xf32> to vector<10x1xf32>
    %cst_10 = arith.constant 3.200000e+01 : f32
    %22 = vector.broadcast %cst_10 : f32 to vector<10x1xf32>
    %23 = arith.divf %21, %22 : vector<10x1xf32>
    %24 = vector.broadcast %16 : vector<10x1xf32> to vector<10x32xf32>
    %25 = arith.subf %10, %24 : vector<10x32xf32>
    %cst_11 = arith.constant 9.99999974E-6 : f32
    %26 = vector.broadcast %cst_11 : f32 to vector<10x1xf32>
    %27 = arith.addf %23, %26 : vector<10x1xf32>
    %28 = math.rsqrt %27 : vector<10x1xf32>
    %29 = vector.broadcast %28 : vector<10x1xf32> to vector<10x32xf32>
    %30 = arith.mulf %25, %29 : vector<10x32xf32>
    %31 = vector.broadcast %11 : vector<1x32xf32> to vector<10x32xf32>
    %32 = arith.mulf %30, %31 : vector<10x32xf32>
    %33 = vector.broadcast %12 : vector<1x32xf32> to vector<10x32xf32>
    %34 = arith.addf %32, %33 : vector<10x32xf32>
    %c0_12 = arith.constant 0 : index
    %c0_13 = arith.constant 0 : index
    %35 = vector.load %arg4[%c0_12, %c0_13] : memref<24x128xf32, #tpu.memory_space<vmem>>, vector<1x32xf32>
    %c1 = arith.constant 1 : index
    %c0_14 = arith.constant 0 : index
    %36 = vector.load %arg4[%c1, %c0_14] : memref<24x128xf32, #tpu.memory_space<vmem>>, vector<1x32xf32>
    %cst_15 = arith.constant dense<0.000000e+00> : vector<10xf32>
    %37 = vector.multi_reduction <add>, %34, %cst_15 [1] : vector<10x32xf32> to vector<10xf32>
    %38 = vector.shape_cast %37 : vector<10xf32> to vector<10x1xf32>
    %cst_16 = arith.constant 3.200000e+01 : f32
    %39 = vector.broadcast %cst_16 : f32 to vector<10x1xf32>
    %40 = arith.divf %38, %39 : vector<10x1xf32>
    %41 = vector.broadcast %40 : vector<10x1xf32> to vector<10x32xf32>
    %42 = arith.subf %34, %41 : vector<10x32xf32>
    %43 = arith.mulf %42, %42 : vector<10x32xf32>
    %cst_17 = arith.constant dense<0.000000e+00> : vector<10xf32>
    %44 = vector.multi_reduction <add>, %43, %cst_17 [1] : vector<10x32xf32> to vector<10xf32>
    %45 = vector.shape_cast %44 : vector<10xf32> to vector<10x1xf32>
    %cst_18 = arith.constant 3.200000e+01 : f32
    %46 = vector.broadcast %cst_18 : f32 to vector<10x1xf32>
    %47 = arith.divf %45, %46 : vector<10x1xf32>
    %48 = vector.broadcast %40 : vector<10x1xf32> to vector<10x32xf32>
    %49 = arith.subf %34, %48 : vector<10x32xf32>
    %cst_19 = arith.constant 9.99999974E-6 : f32
    %50 = vector.broadcast %cst_19 : f32 to vector<10x1xf32>
    %51 = arith.addf %47, %50 : vector<10x1xf32>
    %52 = math.rsqrt %51 : vector<10x1xf32>
    %53 = vector.broadcast %52 : vector<10x1xf32> to vector<10x32xf32>
    %54 = arith.mulf %49, %53 : vector<10x32xf32>
    %55 = vector.broadcast %35 : vector<1x32xf32> to vector<10x32xf32>
    %56 = arith.mulf %54, %55 : vector<10x32xf32>
    %57 = vector.broadcast %36 : vector<1x32xf32> to vector<10x32xf32>
    %58 = arith.addf %56, %57 : vector<10x32xf32>
    %59 = arith.truncf %58 : vector<10x32xf32> to vector<10x32xbf16>
    %c0_20 = arith.constant 0 : index
    %c0_21 = arith.constant 0 : index
    %60 = vector.load %arg2[%c0_20, %c0_21] : memref<32x448xbf16, #tpu.memory_space<vmem>>, vector<32x96xbf16>
    %cst_22 = arith.constant dense<0.000000e+00> : vector<10x96xf32>
    %61 = tpu.matmul %59, %60, %cst_22 {dimension_numbers = #tpu.dot_dimension_numbers<[1], [0], [0], [1], [0, 0, 1, 1], [], []>} : vector<10x32xbf16>, vector<32x96xbf16>, vector<10x96xf32> -> vector<10x96xf32>
    %c8 = arith.constant 8 : index
    %c0_23 = arith.constant 0 : index
    %62 = vector.load %arg4[%c8, %c0_23] : memref<24x128xf32, #tpu.memory_space<vmem>>, vector<1x96xf32>
    %63 = vector.broadcast %62 : vector<1x96xf32> to vector<10x96xf32>
    %64 = arith.addf %61, %63 : vector<10x96xf32>
    %65 = vector.shape_cast %64 : vector<10x96xf32> to vector<2x5x96xf32>
    %66 = vector.extract_strided_slice %65 {offsets = [0, 0, 0], sizes = [2, 5, 8], strides = [1, 1, 1]} : vector<2x5x96xf32> to vector<2x5x8xf32>
    %67 = vector.extract_strided_slice %65 {offsets = [0, 0, 8], sizes = [2, 5, 8], strides = [1, 1, 1]} : vector<2x5x96xf32> to vector<2x5x8xf32>
    %68 = vector.extract_strided_slice %65 {offsets = [0, 0, 16], sizes = [2, 5, 8], strides = [1, 1, 1]} : vector<2x5x96xf32> to vector<2x5x8xf32>
    %69 = vector.extract_strided_slice %65 {offsets = [0, 0, 24], sizes = [2, 5, 8], strides = [1, 1, 1]} : vector<2x5x96xf32> to vector<2x5x8xf32>
    %70 = tpu.concatenate %66, %67, %68, %69 in 0 : vector<2x5x8xf32>, vector<2x5x8xf32>, vector<2x5x8xf32>, vector<2x5x8xf32> -> vector<8x5x8xf32>
    %71 = vector.extract_strided_slice %65 {offsets = [0, 0, 32], sizes = [2, 5, 8], strides = [1, 1, 1]} : vector<2x5x96xf32> to vector<2x5x8xf32>
    %72 = vector.extract_strided_slice %65 {offsets = [0, 0, 40], sizes = [2, 5, 8], strides = [1, 1, 1]} : vector<2x5x96xf32> to vector<2x5x8xf32>
    %73 = vector.extract_strided_slice %65 {offsets = [0, 0, 48], sizes = [2, 5, 8], strides = [1, 1, 1]} : vector<2x5x96xf32> to vector<2x5x8xf32>
    %74 = vector.extract_strided_slice %65 {offsets = [0, 0, 56], sizes = [2, 5, 8], strides = [1, 1, 1]} : vector<2x5x96xf32> to vector<2x5x8xf32>
    %75 = tpu.concatenate %71, %72, %73, %74 in 0 : vector<2x5x8xf32>, vector<2x5x8xf32>, vector<2x5x8xf32>, vector<2x5x8xf32> -> vector<8x5x8xf32>
    %76 = vector.extract_strided_slice %65 {offsets = [0, 0, 64], sizes = [2, 5, 8], strides = [1, 1, 1]} : vector<2x5x96xf32> to vector<2x5x8xf32>
    %77 = vector.extract_strided_slice %65 {offsets = [0, 0, 72], sizes = [2, 5, 8], strides = [1, 1, 1]} : vector<2x5x96xf32> to vector<2x5x8xf32>
    %78 = vector.extract_strided_slice %65 {offsets = [0, 0, 80], sizes = [2, 5, 8], strides = [1, 1, 1]} : vector<2x5x96xf32> to vector<2x5x8xf32>
    %79 = vector.extract_strided_slice %65 {offsets = [0, 0, 88], sizes = [2, 5, 8], strides = [1, 1, 1]} : vector<2x5x96xf32> to vector<2x5x8xf32>
    %80 = tpu.concatenate %76, %77, %78, %79 in 0 : vector<2x5x8xf32>, vector<2x5x8xf32>, vector<2x5x8xf32>, vector<2x5x8xf32> -> vector<8x5x8xf32>
    %81 = arith.truncf %70 : vector<8x5x8xf32> to vector<8x5x8xbf16>
    %82 = arith.truncf %75 : vector<8x5x8xf32> to vector<8x5x8xbf16>
    "tpu.trace_start"() <{level = 10 : i32, message = "znc,zmc->znm"}> : () -> ()
    %cst_24 = arith.constant dense<0.000000e+00> : vector<8x5x5xf32>
    %83 = tpu.matmul %81, %82, %cst_24 {dimension_numbers = #tpu.dot_dimension_numbers<[2], [2], [1], [1], [0, 0, 0, 1, 1, 1], [0], [0]>} : vector<8x5x8xbf16>, vector<8x5x8xbf16>, vector<8x5x5xf32> -> vector<8x5x5xf32>
    "tpu.trace_stop"() : () -> ()
    %cst_25 = arith.constant 0.353553385 : f32
    %84 = vector.broadcast %cst_25 : f32 to vector<8x5x5xf32>
    %85 = arith.mulf %83, %84 : vector<8x5x5xf32>
    %cst_26 = arith.constant dense<0xFF800000> : vector<8x5xf32>
    %86 = vector.multi_reduction <maximumf>, %85, %cst_26 [2] : vector<8x5x5xf32> to vector<8x5xf32>
    %87 = vector.shape_cast %86 : vector<8x5xf32> to vector<8x5x1xf32>
    %88 = vector.broadcast %87 : vector<8x5x1xf32> to vector<8x5x5xf32>
    %89 = arith.subf %85, %88 : vector<8x5x5xf32>
    %90 = math.exp %89 : vector<8x5x5xf32>
    %cst_27 = arith.constant dense<0.000000e+00> : vector<8x5xf32>
    %91 = vector.multi_reduction <add>, %90, %cst_27 [2] : vector<8x5x5xf32> to vector<8x5xf32>
    %92 = vector.shape_cast %91 : vector<8x5xf32> to vector<8x5x1xf32>
    %93 = tpu.reciprocal %92 {approx = true} : vector<8x5x1xf32> -> vector<8x5x1xf32>
    %94 = vector.broadcast %93 : vector<8x5x1xf32> to vector<8x5x5xf32>
    %95 = arith.mulf %90, %94 : vector<8x5x5xf32>
    %96 = arith.truncf %95 : vector<8x5x5xf32> to vector<8x5x5xbf16>
    %97 = arith.truncf %80 : vector<8x5x8xf32> to vector<8x5x8xbf16>
    "tpu.trace_start"() <{level = 10 : i32, message = "znm,zmc->znc"}> : () -> ()
    %cst_28 = arith.constant dense<0.000000e+00> : vector<8x5x8xf32>
    %98 = tpu.matmul %96, %97, %cst_28 {dimension_numbers = #tpu.dot_dimension_numbers<[2], [1], [1], [2], [0, 0, 0, 1, 1, 2], [0], [0]>} : vector<8x5x5xbf16>, vector<8x5x8xbf16>, vector<8x5x8xf32> -> vector<8x5x8xf32>
    "tpu.trace_stop"() : () -> ()
    %99 = vector.extract_strided_slice %98 {offsets = [0, 0, 0], sizes = [2, 5, 8], strides = [1, 1, 1]} : vector<8x5x8xf32> to vector<2x5x8xf32>
    %100 = vector.extract_strided_slice %98 {offsets = [2, 0, 0], sizes = [2, 5, 8], strides = [1, 1, 1]} : vector<8x5x8xf32> to vector<2x5x8xf32>
    %101 = vector.extract_strided_slice %98 {offsets = [4, 0, 0], sizes = [2, 5, 8], strides = [1, 1, 1]} : vector<8x5x8xf32> to vector<2x5x8xf32>
    %102 = vector.extract_strided_slice %98 {offsets = [6, 0, 0], sizes = [2, 5, 8], strides = [1, 1, 1]} : vector<8x5x8xf32> to vector<2x5x8xf32>
    %103 = tpu.concatenate %99, %100, %101, %102 in 2 : vector<2x5x8xf32>, vector<2x5x8xf32>, vector<2x5x8xf32>, vector<2x5x8xf32> -> vector<2x5x32xf32>
    %104 = vector.shape_cast %103 : vector<2x5x32xf32> to vector<10x32xf32>
    %105 = arith.truncf %104 : vector<10x32xf32> to vector<10x32xbf16>
    %c0_29 = arith.constant 0 : index
    %c128 = arith.constant 128 : index
    %106 = vector.load %arg2[%c0_29, %c128] : memref<32x448xbf16, #tpu.memory_space<vmem>>, vector<32x32xbf16>
    %cst_30 = arith.constant dense<0.000000e+00> : vector<10x32xf32>
    %107 = tpu.matmul %105, %106, %cst_30 {dimension_numbers = #tpu.dot_dimension_numbers<[1], [0], [0], [1], [0, 0, 1, 1], [], []>} : vector<10x32xbf16>, vector<32x32xbf16>, vector<10x32xf32> -> vector<10x32xf32>
    %c9 = arith.constant 9 : index
    %c0_31 = arith.constant 0 : index
    %108 = vector.load %arg4[%c9, %c0_31] : memref<24x128xf32, #tpu.memory_space<vmem>>, vector<1x32xf32>
    %109 = vector.broadcast %108 : vector<1x32xf32> to vector<10x32xf32>
    %110 = arith.addf %107, %109 : vector<10x32xf32>
    %111 = arith.addf %34, %110 : vector<10x32xf32>
    %c2 = arith.constant 2 : index
    %c0_32 = arith.constant 0 : index
    %112 = vector.load %arg4[%c2, %c0_32] : memref<24x128xf32, #tpu.memory_space<vmem>>, vector<1x32xf32>
    %c3 = arith.constant 3 : index
    %c0_33 = arith.constant 0 : index
    %113 = vector.load %arg4[%c3, %c0_33] : memref<24x128xf32, #tpu.memory_space<vmem>>, vector<1x32xf32>
    %cst_34 = arith.constant dense<0.000000e+00> : vector<10xf32>
    %114 = vector.multi_reduction <add>, %111, %cst_34 [1] : vector<10x32xf32> to vector<10xf32>
    %115 = vector.shape_cast %114 : vector<10xf32> to vector<10x1xf32>
    %cst_35 = arith.constant 3.200000e+01 : f32
    %116 = vector.broadcast %cst_35 : f32 to vector<10x1xf32>
    %117 = arith.divf %115, %116 : vector<10x1xf32>
    %118 = vector.broadcast %117 : vector<10x1xf32> to vector<10x32xf32>
    %119 = arith.subf %111, %118 : vector<10x32xf32>
    %120 = arith.mulf %119, %119 : vector<10x32xf32>
    %cst_36 = arith.constant dense<0.000000e+00> : vector<10xf32>
    %121 = vector.multi_reduction <add>, %120, %cst_36 [1] : vector<10x32xf32> to vector<10xf32>
    %122 = vector.shape_cast %121 : vector<10xf32> to vector<10x1xf32>
    %cst_37 = arith.constant 3.200000e+01 : f32
    %123 = vector.broadcast %cst_37 : f32 to vector<10x1xf32>
    %124 = arith.divf %122, %123 : vector<10x1xf32>
    %125 = vector.broadcast %117 : vector<10x1xf32> to vector<10x32xf32>
    %126 = arith.subf %111, %125 : vector<10x32xf32>
    %cst_38 = arith.constant 9.99999974E-6 : f32
    %127 = vector.broadcast %cst_38 : f32 to vector<10x1xf32>
    %128 = arith.addf %124, %127 : vector<10x1xf32>
    %129 = math.rsqrt %128 : vector<10x1xf32>
    %130 = vector.broadcast %129 : vector<10x1xf32> to vector<10x32xf32>
    %131 = arith.mulf %126, %130 : vector<10x32xf32>
    %132 = vector.broadcast %112 : vector<1x32xf32> to vector<10x32xf32>
    %133 = arith.mulf %131, %132 : vector<10x32xf32>
    %134 = vector.broadcast %113 : vector<1x32xf32> to vector<10x32xf32>
    %135 = arith.addf %133, %134 : vector<10x32xf32>
    %136 = arith.truncf %135 : vector<10x32xf32> to vector<10x32xbf16>
    %c0_39 = arith.constant 0 : index
    %c256 = arith.constant 256 : index
    %137 = vector.load %arg2[%c0_39, %c256] : memref<32x448xbf16, #tpu.memory_space<vmem>>, vector<32x64xbf16>
    %cst_40 = arith.constant dense<0.000000e+00> : vector<10x64xf32>
    %138 = tpu.matmul %136, %137, %cst_40 {dimension_numbers = #tpu.dot_dimension_numbers<[1], [0], [0], [1], [0, 0, 1, 1], [], []>} : vector<10x32xbf16>, vector<32x64xbf16>, vector<10x64xf32> -> vector<10x64xf32>
    %c10 = arith.constant 10 : index
    %c0_41 = arith.constant 0 : index
    %139 = vector.load %arg4[%c10, %c0_41] : memref<24x128xf32, #tpu.memory_space<vmem>>, vector<1x64xf32>
    %140 = vector.broadcast %139 : vector<1x64xf32> to vector<10x64xf32>
    %141 = arith.addf %138, %140 : vector<10x64xf32>
    %cst_42 = arith.constant -1.702000e+00 : f32
    %142 = vector.broadcast %cst_42 : f32 to vector<10x64xf32>
    %143 = arith.mulf %142, %141 : vector<10x64xf32>
    %144 = math.exp %143 : vector<10x64xf32>
    %cst_43 = arith.constant 1.000000e+00 : f32
    %145 = vector.broadcast %cst_43 : f32 to vector<10x64xf32>
    %146 = arith.addf %145, %144 : vector<10x64xf32>
    %147 = tpu.reciprocal %146 {approx = true} : vector<10x64xf32> -> vector<10x64xf32>
    %148 = arith.mulf %141, %147 : vector<10x64xf32>
    %149 = arith.truncf %148 : vector<10x64xf32> to vector<10x64xbf16>
    %c0_44 = arith.constant 0 : index
    %c0_45 = arith.constant 0 : index
    %150 = vector.load %arg3[%c0_44, %c0_45] : memref<64x32xbf16, #tpu.memory_space<vmem>>, vector<64x32xbf16>
    %cst_46 = arith.constant dense<0.000000e+00> : vector<10x32xf32>
    %151 = tpu.matmul %149, %150, %cst_46 {dimension_numbers = #tpu.dot_dimension_numbers<[1], [0], [0], [1], [0, 0, 1, 1], [], []>} : vector<10x64xbf16>, vector<64x32xbf16>, vector<10x32xf32> -> vector<10x32xf32>
    %c11 = arith.constant 11 : index
    %c0_47 = arith.constant 0 : index
    %152 = vector.load %arg4[%c11, %c0_47] : memref<24x128xf32, #tpu.memory_space<vmem>>, vector<1x32xf32>
    %153 = vector.broadcast %152 : vector<1x32xf32> to vector<10x32xf32>
    %154 = arith.addf %151, %153 : vector<10x32xf32>
    %155 = arith.addf %111, %154 : vector<10x32xf32>
    %156 = vector.shape_cast %155 : vector<10x32xf32> to vector<2x5x32xf32>
    %157 = vector.extract_strided_slice %156 {offsets = [0, 0, 0], sizes = [2, 1, 32], strides = [1, 1, 1]} : vector<2x5x32xf32> to vector<2x1x32xf32>
    %158 = vector.shape_cast %157 : vector<2x1x32xf32> to vector<2x32xf32>
    %c4 = arith.constant 4 : index
    %c0_48 = arith.constant 0 : index
    %159 = vector.load %arg4[%c4, %c0_48] : memref<24x128xf32, #tpu.memory_space<vmem>>, vector<1x32xf32>
    %c5 = arith.constant 5 : index
    %c0_49 = arith.constant 0 : index
    %160 = vector.load %arg4[%c5, %c0_49] : memref<24x128xf32, #tpu.memory_space<vmem>>, vector<1x32xf32>
    %cst_50 = arith.constant dense<0.000000e+00> : vector<2xf32>
    %161 = vector.multi_reduction <add>, %158, %cst_50 [1] : vector<2x32xf32> to vector<2xf32>
    %162 = vector.shape_cast %161 : vector<2xf32> to vector<2x1xf32>
    %cst_51 = arith.constant 3.200000e+01 : f32
    %163 = vector.broadcast %cst_51 : f32 to vector<2x1xf32>
    %164 = arith.divf %162, %163 : vector<2x1xf32>
    %165 = vector.broadcast %164 : vector<2x1xf32> to vector<2x32xf32>
    %166 = arith.subf %158, %165 : vector<2x32xf32>
    %167 = arith.mulf %166, %166 : vector<2x32xf32>
    %cst_52 = arith.constant dense<0.000000e+00> : vector<2xf32>
    %168 = vector.multi_reduction <add>, %167, %cst_52 [1] : vector<2x32xf32> to vector<2xf32>
    %169 = vector.shape_cast %168 : vector<2xf32> to vector<2x1xf32>
    %cst_53 = arith.constant 3.200000e+01 : f32
    %170 = vector.broadcast %cst_53 : f32 to vector<2x1xf32>
    %171 = arith.divf %169, %170 : vector<2x1xf32>
    %172 = vector.broadcast %164 : vector<2x1xf32> to vector<2x32xf32>
    %173 = arith.subf %158, %172 : vector<2x32xf32>
    %cst_54 = arith.constant 9.99999974E-6 : f32
    %174 = vector.broadcast %cst_54 : f32 to vector<2x1xf32>
    %175 = arith.addf %171, %174 : vector<2x1xf32>
    %176 = math.rsqrt %175 : vector<2x1xf32>
    %177 = vector.broadcast %176 : vector<2x1xf32> to vector<2x32xf32>
    %178 = arith.mulf %173, %177 : vector<2x32xf32>
    %179 = vector.broadcast %159 : vector<1x32xf32> to vector<2x32xf32>
    %180 = arith.mulf %178, %179 : vector<2x32xf32>
    %181 = vector.broadcast %160 : vector<1x32xf32> to vector<2x32xf32>
    %182 = arith.addf %180, %181 : vector<2x32xf32>
    %183 = arith.truncf %182 : vector<2x32xf32> to vector<2x32xbf16>
    %c0_55 = arith.constant 0 : index
    %c384 = arith.constant 384 : index
    %184 = vector.load %arg2[%c0_55, %c384] : memref<32x448xbf16, #tpu.memory_space<vmem>>, vector<32x16xbf16>
    %cst_56 = arith.constant dense<0.000000e+00> : vector<2x16xf32>
    %185 = tpu.matmul %183, %184, %cst_56 {dimension_numbers = #tpu.dot_dimension_numbers<[1], [0], [0], [1], [0, 0, 1, 1], [], []>} : vector<2x32xbf16>, vector<32x16xbf16>, vector<2x16xf32> -> vector<2x16xf32>
    %c0_57 = arith.constant 0 : index
    %c0_58 = arith.constant 0 : index
    %186 = vector.load %arg6[%c0_57, %c0_58] : memref<2x8xf32, #tpu.memory_space<vmem>>, vector<2x8xf32>
    %c0_59 = arith.constant 0 : index
    %c0_60 = arith.constant 0 : index
    %c0_61 = arith.constant 0 : index
    %187 = vector.load %arg5[%c0_59, %c0_60, %c0_61] : memref<2x8x32xf32, #tpu.memory_space<vmem>>, vector<2x8x32xf32>
    %c16_62 = arith.constant 16 : index
    %c0_63 = arith.constant 0 : index
    %188 = vector.load %arg9[%c16_62, %c0_63] : memref<24x128xf32, #tpu.memory_space<vmem>>, vector<8x32xf32>
    %189 = vector.shape_cast %188 : vector<8x32xf32> to vector<1x8x32xf32>
    %190 = vector.broadcast %189 : vector<1x8x32xf32> to vector<2x8x32xf32>
    %191 = arith.addf %187, %190 : vector<2x8x32xf32>
    %192 = vector.shape_cast %191 : vector<2x8x32xf32> to vector<16x32xf32>
    %193 = tpu.iota {dimensions = array<i32: 0>} : vector<8x8xi32>
    %194 = tpu.iota {dimensions = array<i32: 1>} : vector<8x8xi32>
    %195 = arith.cmpi sle, %194, %193 : vector<8x8xi32>
    %196 = arith.extui %195 : vector<8x8xi1> to vector<8x8xi32>
    %197 = arith.sitofp %196 : vector<8x8xi32> to vector<8x8xf32>
    %198 = vector.shape_cast %197 : vector<8x8xf32> to vector<1x8x8xf32>
    %199 = vector.shape_cast %186 : vector<2x8xf32> to vector<2x1x8xf32>
    %200 = vector.broadcast %198 : vector<1x8x8xf32> to vector<2x8x8xf32>
    %201 = vector.broadcast %199 : vector<2x1x8xf32> to vector<2x8x8xf32>
    %202 = arith.mulf %200, %201 : vector<2x8x8xf32>
    %cst_64 = arith.constant 1.000000e+00 : f32
    %203 = vector.broadcast %cst_64 : f32 to vector<2x8x8xf32>
    %204 = arith.subf %203, %202 : vector<2x8x8xf32>
    %cst_65 = arith.constant -1.000000e+09 : f32
    %205 = vector.broadcast %cst_65 : f32 to vector<2x8x8xf32>
    %206 = arith.mulf %204, %205 : vector<2x8x8xf32>
    %c0_66 = arith.constant 0 : index
    %c0_67 = arith.constant 0 : index
    %207 = vector.load %arg9[%c0_66, %c0_67] : memref<24x128xf32, #tpu.memory_space<vmem>>, vector<1x32xf32>
    %c1_68 = arith.constant 1 : index
    %c0_69 = arith.constant 0 : index
    %208 = vector.load %arg9[%c1_68, %c0_69] : memref<24x128xf32, #tpu.memory_space<vmem>>, vector<1x32xf32>
    %cst_70 = arith.constant dense<0.000000e+00> : vector<16xf32>
    %209 = vector.multi_reduction <add>, %192, %cst_70 [1] : vector<16x32xf32> to vector<16xf32>
    %210 = vector.shape_cast %209 : vector<16xf32> to vector<16x1xf32>
    %cst_71 = arith.constant 3.200000e+01 : f32
    %211 = vector.broadcast %cst_71 : f32 to vector<16x1xf32>
    %212 = arith.divf %210, %211 : vector<16x1xf32>
    %213 = vector.broadcast %212 : vector<16x1xf32> to vector<16x32xf32>
    %214 = arith.subf %192, %213 : vector<16x32xf32>
    %215 = arith.mulf %214, %214 : vector<16x32xf32>
    %cst_72 = arith.constant dense<0.000000e+00> : vector<16xf32>
    %216 = vector.multi_reduction <add>, %215, %cst_72 [1] : vector<16x32xf32> to vector<16xf32>
    %217 = vector.shape_cast %216 : vector<16xf32> to vector<16x1xf32>
    %cst_73 = arith.constant 3.200000e+01 : f32
    %218 = vector.broadcast %cst_73 : f32 to vector<16x1xf32>
    %219 = arith.divf %217, %218 : vector<16x1xf32>
    %220 = vector.broadcast %212 : vector<16x1xf32> to vector<16x32xf32>
    %221 = arith.subf %192, %220 : vector<16x32xf32>
    %cst_74 = arith.constant 9.99999974E-6 : f32
    %222 = vector.broadcast %cst_74 : f32 to vector<16x1xf32>
    %223 = arith.addf %219, %222 : vector<16x1xf32>
    %224 = math.rsqrt %223 : vector<16x1xf32>
    %225 = vector.broadcast %224 : vector<16x1xf32> to vector<16x32xf32>
    %226 = arith.mulf %221, %225 : vector<16x32xf32>
    %227 = vector.broadcast %207 : vector<1x32xf32> to vector<16x32xf32>
    %228 = arith.mulf %226, %227 : vector<16x32xf32>
    %229 = vector.broadcast %208 : vector<1x32xf32> to vector<16x32xf32>
    %230 = arith.addf %228, %229 : vector<16x32xf32>
    %231 = arith.truncf %230 : vector<16x32xf32> to vector<16x32xbf16>
    %c0_75 = arith.constant 0 : index
    %c0_76 = arith.constant 0 : index
    %232 = vector.load %arg7[%c0_75, %c0_76] : memref<32x448xbf16, #tpu.memory_space<vmem>>, vector<32x96xbf16>
    %cst_77 = arith.constant dense<0.000000e+00> : vector<16x96xf32>
    %233 = tpu.matmul %231, %232, %cst_77 {dimension_numbers = #tpu.dot_dimension_numbers<[1], [0], [0], [1], [0, 0, 1, 1], [], []>} : vector<16x32xbf16>, vector<32x96xbf16>, vector<16x96xf32> -> vector<16x96xf32>
    %c8_78 = arith.constant 8 : index
    %c0_79 = arith.constant 0 : index
    %234 = vector.load %arg9[%c8_78, %c0_79] : memref<24x128xf32, #tpu.memory_space<vmem>>, vector<1x96xf32>
    %235 = vector.broadcast %234 : vector<1x96xf32> to vector<16x96xf32>
    %236 = arith.addf %233, %235 : vector<16x96xf32>
    %237 = vector.shape_cast %236 : vector<16x96xf32> to vector<2x8x96xf32>
    %238 = vector.extract_strided_slice %237 {offsets = [0, 0, 0], sizes = [2, 8, 8], strides = [1, 1, 1]} : vector<2x8x96xf32> to vector<2x8x8xf32>
    %239 = vector.extract_strided_slice %237 {offsets = [0, 0, 8], sizes = [2, 8, 8], strides = [1, 1, 1]} : vector<2x8x96xf32> to vector<2x8x8xf32>
    %240 = vector.extract_strided_slice %237 {offsets = [0, 0, 16], sizes = [2, 8, 8], strides = [1, 1, 1]} : vector<2x8x96xf32> to vector<2x8x8xf32>
    %241 = vector.extract_strided_slice %237 {offsets = [0, 0, 24], sizes = [2, 8, 8], strides = [1, 1, 1]} : vector<2x8x96xf32> to vector<2x8x8xf32>
    %242 = tpu.concatenate %238, %239, %240, %241 in 0 : vector<2x8x8xf32>, vector<2x8x8xf32>, vector<2x8x8xf32>, vector<2x8x8xf32> -> vector<8x8x8xf32>
    %243 = vector.extract_strided_slice %237 {offsets = [0, 0, 32], sizes = [2, 8, 8], strides = [1, 1, 1]} : vector<2x8x96xf32> to vector<2x8x8xf32>
    %244 = vector.extract_strided_slice %237 {offsets = [0, 0, 40], sizes = [2, 8, 8], strides = [1, 1, 1]} : vector<2x8x96xf32> to vector<2x8x8xf32>
    %245 = vector.extract_strided_slice %237 {offsets = [0, 0, 48], sizes = [2, 8, 8], strides = [1, 1, 1]} : vector<2x8x96xf32> to vector<2x8x8xf32>
    %246 = vector.extract_strided_slice %237 {offsets = [0, 0, 56], sizes = [2, 8, 8], strides = [1, 1, 1]} : vector<2x8x96xf32> to vector<2x8x8xf32>
    %247 = tpu.concatenate %243, %244, %245, %246 in 0 : vector<2x8x8xf32>, vector<2x8x8xf32>, vector<2x8x8xf32>, vector<2x8x8xf32> -> vector<8x8x8xf32>
    %248 = vector.extract_strided_slice %237 {offsets = [0, 0, 64], sizes = [2, 8, 8], strides = [1, 1, 1]} : vector<2x8x96xf32> to vector<2x8x8xf32>
    %249 = vector.extract_strided_slice %237 {offsets = [0, 0, 72], sizes = [2, 8, 8], strides = [1, 1, 1]} : vector<2x8x96xf32> to vector<2x8x8xf32>
    %250 = vector.extract_strided_slice %237 {offsets = [0, 0, 80], sizes = [2, 8, 8], strides = [1, 1, 1]} : vector<2x8x96xf32> to vector<2x8x8xf32>
    %251 = vector.extract_strided_slice %237 {offsets = [0, 0, 88], sizes = [2, 8, 8], strides = [1, 1, 1]} : vector<2x8x96xf32> to vector<2x8x8xf32>
    %252 = tpu.concatenate %248, %249, %250, %251 in 0 : vector<2x8x8xf32>, vector<2x8x8xf32>, vector<2x8x8xf32>, vector<2x8x8xf32> -> vector<8x8x8xf32>
    %253 = arith.truncf %242 : vector<8x8x8xf32> to vector<8x8x8xbf16>
    %254 = arith.truncf %247 : vector<8x8x8xf32> to vector<8x8x8xbf16>
    "tpu.trace_start"() <{level = 10 : i32, message = "znc,zmc->znm"}> : () -> ()
    %cst_80 = arith.constant dense<0.000000e+00> : vector<8x8x8xf32>
    %255 = tpu.matmul %253, %254, %cst_80 {dimension_numbers = #tpu.dot_dimension_numbers<[2], [2], [1], [1], [0, 0, 0, 1, 1, 1], [0], [0]>} : vector<8x8x8xbf16>, vector<8x8x8xbf16>, vector<8x8x8xf32> -> vector<8x8x8xf32>
    "tpu.trace_stop"() : () -> ()
    %cst_81 = arith.constant 0.353553385 : f32
    %256 = vector.broadcast %cst_81 : f32 to vector<8x8x8xf32>
    %257 = arith.mulf %255, %256 : vector<8x8x8xf32>
    %258 = vector.shape_cast %257 : vector<8x8x8xf32> to vector<4x2x8x8xf32>
    %259 = vector.shape_cast %206 : vector<2x8x8xf32> to vector<1x2x8x8xf32>
    %260 = vector.broadcast %259 : vector<1x2x8x8xf32> to vector<4x2x8x8xf32>
    %261 = arith.addf %258, %260 : vector<4x2x8x8xf32>
    %262 = vector.shape_cast %261 : vector<4x2x8x8xf32> to vector<8x8x8xf32>
    %cst_82 = arith.constant dense<0xFF800000> : vector<8x8xf32>
    %263 = vector.multi_reduction <maximumf>, %262, %cst_82 [2] : vector<8x8x8xf32> to vector<8x8xf32>
    %264 = vector.shape_cast %263 : vector<8x8xf32> to vector<8x8x1xf32>
    %265 = vector.broadcast %264 : vector<8x8x1xf32> to vector<8x8x8xf32>
    %266 = arith.subf %262, %265 : vector<8x8x8xf32>
    %267 = math.exp %266 : vector<8x8x8xf32>
    %cst_83 = arith.constant dense<0.000000e+00> : vector<8x8xf32>
    %268 = vector.multi_reduction <add>, %267, %cst_83 [2] : vector<8x8x8xf32> to vector<8x8xf32>
    %269 = vector.shape_cast %268 : vector<8x8xf32> to vector<8x8x1xf32>
    %270 = tpu.reciprocal %269 {approx = true} : vector<8x8x1xf32> -> vector<8x8x1xf32>
    %271 = vector.broadcast %270 : vector<8x8x1xf32> to vector<8x8x8xf32>
    %272 = arith.mulf %267, %271 : vector<8x8x8xf32>
    %273 = arith.truncf %272 : vector<8x8x8xf32> to vector<8x8x8xbf16>
    %274 = arith.truncf %252 : vector<8x8x8xf32> to vector<8x8x8xbf16>
    "tpu.trace_start"() <{level = 10 : i32, message = "znm,zmc->znc"}> : () -> ()
    %cst_84 = arith.constant dense<0.000000e+00> : vector<8x8x8xf32>
    %275 = tpu.matmul %273, %274, %cst_84 {dimension_numbers = #tpu.dot_dimension_numbers<[2], [1], [1], [2], [0, 0, 0, 1, 1, 2], [0], [0]>} : vector<8x8x8xbf16>, vector<8x8x8xbf16>, vector<8x8x8xf32> -> vector<8x8x8xf32>
    "tpu.trace_stop"() : () -> ()
    %276 = vector.extract_strided_slice %275 {offsets = [0, 0, 0], sizes = [2, 8, 8], strides = [1, 1, 1]} : vector<8x8x8xf32> to vector<2x8x8xf32>
    %277 = vector.extract_strided_slice %275 {offsets = [2, 0, 0], sizes = [2, 8, 8], strides = [1, 1, 1]} : vector<8x8x8xf32> to vector<2x8x8xf32>
    %278 = vector.extract_strided_slice %275 {offsets = [4, 0, 0], sizes = [2, 8, 8], strides = [1, 1, 1]} : vector<8x8x8xf32> to vector<2x8x8xf32>
    %279 = vector.extract_strided_slice %275 {offsets = [6, 0, 0], sizes = [2, 8, 8], strides = [1, 1, 1]} : vector<8x8x8xf32> to vector<2x8x8xf32>
    %280 = tpu.concatenate %276, %277, %278, %279 in 2 : vector<2x8x8xf32>, vector<2x8x8xf32>, vector<2x8x8xf32>, vector<2x8x8xf32> -> vector<2x8x32xf32>
    %281 = vector.shape_cast %280 : vector<2x8x32xf32> to vector<16x32xf32>
    %282 = arith.truncf %281 : vector<16x32xf32> to vector<16x32xbf16>
    %c0_85 = arith.constant 0 : index
    %c128_86 = arith.constant 128 : index
    %283 = vector.load %arg7[%c0_85, %c128_86] : memref<32x448xbf16, #tpu.memory_space<vmem>>, vector<32x32xbf16>
    %cst_87 = arith.constant dense<0.000000e+00> : vector<16x32xf32>
    %284 = tpu.matmul %282, %283, %cst_87 {dimension_numbers = #tpu.dot_dimension_numbers<[1], [0], [0], [1], [0, 0, 1, 1], [], []>} : vector<16x32xbf16>, vector<32x32xbf16>, vector<16x32xf32> -> vector<16x32xf32>
    %c9_88 = arith.constant 9 : index
    %c0_89 = arith.constant 0 : index
    %285 = vector.load %arg9[%c9_88, %c0_89] : memref<24x128xf32, #tpu.memory_space<vmem>>, vector<1x32xf32>
    %286 = vector.broadcast %285 : vector<1x32xf32> to vector<16x32xf32>
    %287 = arith.addf %284, %286 : vector<16x32xf32>
    %288 = arith.addf %192, %287 : vector<16x32xf32>
    %c2_90 = arith.constant 2 : index
    %c0_91 = arith.constant 0 : index
    %289 = vector.load %arg9[%c2_90, %c0_91] : memref<24x128xf32, #tpu.memory_space<vmem>>, vector<1x32xf32>
    %c3_92 = arith.constant 3 : index
    %c0_93 = arith.constant 0 : index
    %290 = vector.load %arg9[%c3_92, %c0_93] : memref<24x128xf32, #tpu.memory_space<vmem>>, vector<1x32xf32>
    %cst_94 = arith.constant dense<0.000000e+00> : vector<16xf32>
    %291 = vector.multi_reduction <add>, %288, %cst_94 [1] : vector<16x32xf32> to vector<16xf32>
    %292 = vector.shape_cast %291 : vector<16xf32> to vector<16x1xf32>
    %cst_95 = arith.constant 3.200000e+01 : f32
    %293 = vector.broadcast %cst_95 : f32 to vector<16x1xf32>
    %294 = arith.divf %292, %293 : vector<16x1xf32>
    %295 = vector.broadcast %294 : vector<16x1xf32> to vector<16x32xf32>
    %296 = arith.subf %288, %295 : vector<16x32xf32>
    %297 = arith.mulf %296, %296 : vector<16x32xf32>
    %cst_96 = arith.constant dense<0.000000e+00> : vector<16xf32>
    %298 = vector.multi_reduction <add>, %297, %cst_96 [1] : vector<16x32xf32> to vector<16xf32>
    %299 = vector.shape_cast %298 : vector<16xf32> to vector<16x1xf32>
    %cst_97 = arith.constant 3.200000e+01 : f32
    %300 = vector.broadcast %cst_97 : f32 to vector<16x1xf32>
    %301 = arith.divf %299, %300 : vector<16x1xf32>
    %302 = vector.broadcast %294 : vector<16x1xf32> to vector<16x32xf32>
    %303 = arith.subf %288, %302 : vector<16x32xf32>
    %cst_98 = arith.constant 9.99999974E-6 : f32
    %304 = vector.broadcast %cst_98 : f32 to vector<16x1xf32>
    %305 = arith.addf %301, %304 : vector<16x1xf32>
    %306 = math.rsqrt %305 : vector<16x1xf32>
    %307 = vector.broadcast %306 : vector<16x1xf32> to vector<16x32xf32>
    %308 = arith.mulf %303, %307 : vector<16x32xf32>
    %309 = vector.broadcast %289 : vector<1x32xf32> to vector<16x32xf32>
    %310 = arith.mulf %308, %309 : vector<16x32xf32>
    %311 = vector.broadcast %290 : vector<1x32xf32> to vector<16x32xf32>
    %312 = arith.addf %310, %311 : vector<16x32xf32>
    %313 = arith.truncf %312 : vector<16x32xf32> to vector<16x32xbf16>
    %c0_99 = arith.constant 0 : index
    %c256_100 = arith.constant 256 : index
    %314 = vector.load %arg7[%c0_99, %c256_100] : memref<32x448xbf16, #tpu.memory_space<vmem>>, vector<32x64xbf16>
    %cst_101 = arith.constant dense<0.000000e+00> : vector<16x64xf32>
    %315 = tpu.matmul %313, %314, %cst_101 {dimension_numbers = #tpu.dot_dimension_numbers<[1], [0], [0], [1], [0, 0, 1, 1], [], []>} : vector<16x32xbf16>, vector<32x64xbf16>, vector<16x64xf32> -> vector<16x64xf32>
    %c10_102 = arith.constant 10 : index
    %c0_103 = arith.constant 0 : index
    %316 = vector.load %arg9[%c10_102, %c0_103] : memref<24x128xf32, #tpu.memory_space<vmem>>, vector<1x64xf32>
    %317 = vector.broadcast %316 : vector<1x64xf32> to vector<16x64xf32>
    %318 = arith.addf %315, %317 : vector<16x64xf32>
    %cst_104 = arith.constant -1.702000e+00 : f32
    %319 = vector.broadcast %cst_104 : f32 to vector<16x64xf32>
    %320 = arith.mulf %319, %318 : vector<16x64xf32>
    %321 = math.exp %320 : vector<16x64xf32>
    %cst_105 = arith.constant 1.000000e+00 : f32
    %322 = vector.broadcast %cst_105 : f32 to vector<16x64xf32>
    %323 = arith.addf %322, %321 : vector<16x64xf32>
    %324 = tpu.reciprocal %323 {approx = true} : vector<16x64xf32> -> vector<16x64xf32>
    %325 = arith.mulf %318, %324 : vector<16x64xf32>
    %326 = arith.truncf %325 : vector<16x64xf32> to vector<16x64xbf16>
    %c0_106 = arith.constant 0 : index
    %c0_107 = arith.constant 0 : index
    %327 = vector.load %arg8[%c0_106, %c0_107] : memref<64x32xbf16, #tpu.memory_space<vmem>>, vector<64x32xbf16>
    %cst_108 = arith.constant dense<0.000000e+00> : vector<16x32xf32>
    %328 = tpu.matmul %326, %327, %cst_108 {dimension_numbers = #tpu.dot_dimension_numbers<[1], [0], [0], [1], [0, 0, 1, 1], [], []>} : vector<16x64xbf16>, vector<64x32xbf16>, vector<16x32xf32> -> vector<16x32xf32>
    %c11_109 = arith.constant 11 : index
    %c0_110 = arith.constant 0 : index
    %329 = vector.load %arg9[%c11_109, %c0_110] : memref<24x128xf32, #tpu.memory_space<vmem>>, vector<1x32xf32>
    %330 = vector.broadcast %329 : vector<1x32xf32> to vector<16x32xf32>
    %331 = arith.addf %328, %330 : vector<16x32xf32>
    %332 = arith.addf %288, %331 : vector<16x32xf32>
    %cst_111 = arith.constant dense<0.000000e+00> : vector<2xf32>
    %333 = vector.multi_reduction <add>, %186, %cst_111 [1] : vector<2x8xf32> to vector<2xf32>
    %334 = vector.shape_cast %333 : vector<2xf32> to vector<2x1xf32>
    %335 = arith.fptosi %334 : vector<2x1xf32> to vector<2x1xi32>
    %c1_i32 = arith.constant 1 : i32
    %336 = vector.broadcast %c1_i32 : i32 to vector<2x1xi32>
    %337 = arith.subi %335, %336 : vector<2x1xi32>
    %338 = tpu.iota {dimensions = array<i32: 1>} : vector<2x8xi32>
    %339 = vector.broadcast %337 : vector<2x1xi32> to vector<2x8xi32>
    %340 = arith.cmpi eq, %338, %339 : vector<2x8xi32>
    %341 = arith.extui %340 : vector<2x8xi1> to vector<2x8xi32>
    %342 = arith.sitofp %341 : vector<2x8xi32> to vector<2x8xf32>
    %343 = vector.shape_cast %332 : vector<16x32xf32> to vector<2x8x32xf32>
    %344 = vector.shape_cast %342 : vector<2x8xf32> to vector<2x8x1xf32>
    %345 = vector.broadcast %344 : vector<2x8x1xf32> to vector<2x8x32xf32>
    %346 = arith.mulf %343, %345 : vector<2x8x32xf32>
    %cst_112 = arith.constant dense<0.000000e+00> : vector<2x32xf32>
    %347 = vector.multi_reduction <add>, %346, %cst_112 [1] : vector<2x8x32xf32> to vector<2x32xf32>
    %c4_113 = arith.constant 4 : index
    %c0_114 = arith.constant 0 : index
    %348 = vector.load %arg9[%c4_113, %c0_114] : memref<24x128xf32, #tpu.memory_space<vmem>>, vector<1x32xf32>
    %c5_115 = arith.constant 5 : index
    %c0_116 = arith.constant 0 : index
    %349 = vector.load %arg9[%c5_115, %c0_116] : memref<24x128xf32, #tpu.memory_space<vmem>>, vector<1x32xf32>
    %cst_117 = arith.constant dense<0.000000e+00> : vector<2xf32>
    %350 = vector.multi_reduction <add>, %347, %cst_117 [1] : vector<2x32xf32> to vector<2xf32>
    %351 = vector.shape_cast %350 : vector<2xf32> to vector<2x1xf32>
    %cst_118 = arith.constant 3.200000e+01 : f32
    %352 = vector.broadcast %cst_118 : f32 to vector<2x1xf32>
    %353 = arith.divf %351, %352 : vector<2x1xf32>
    %354 = vector.broadcast %353 : vector<2x1xf32> to vector<2x32xf32>
    %355 = arith.subf %347, %354 : vector<2x32xf32>
    %356 = arith.mulf %355, %355 : vector<2x32xf32>
    %cst_119 = arith.constant dense<0.000000e+00> : vector<2xf32>
    %357 = vector.multi_reduction <add>, %356, %cst_119 [1] : vector<2x32xf32> to vector<2xf32>
    %358 = vector.shape_cast %357 : vector<2xf32> to vector<2x1xf32>
    %cst_120 = arith.constant 3.200000e+01 : f32
    %359 = vector.broadcast %cst_120 : f32 to vector<2x1xf32>
    %360 = arith.divf %358, %359 : vector<2x1xf32>
    %361 = vector.broadcast %353 : vector<2x1xf32> to vector<2x32xf32>
    %362 = arith.subf %347, %361 : vector<2x32xf32>
    %cst_121 = arith.constant 9.99999974E-6 : f32
    %363 = vector.broadcast %cst_121 : f32 to vector<2x1xf32>
    %364 = arith.addf %360, %363 : vector<2x1xf32>
    %365 = math.rsqrt %364 : vector<2x1xf32>
    %366 = vector.broadcast %365 : vector<2x1xf32> to vector<2x32xf32>
    %367 = arith.mulf %362, %366 : vector<2x32xf32>
    %368 = vector.broadcast %348 : vector<1x32xf32> to vector<2x32xf32>
    %369 = arith.mulf %367, %368 : vector<2x32xf32>
    %370 = vector.broadcast %349 : vector<1x32xf32> to vector<2x32xf32>
    %371 = arith.addf %369, %370 : vector<2x32xf32>
    %372 = arith.truncf %371 : vector<2x32xf32> to vector<2x32xbf16>
    %c0_122 = arith.constant 0 : index
    %c384_123 = arith.constant 384 : index
    %373 = vector.load %arg7[%c0_122, %c384_123] : memref<32x448xbf16, #tpu.memory_space<vmem>>, vector<32x16xbf16>
    %cst_124 = arith.constant dense<0.000000e+00> : vector<2x16xf32>
    %374 = tpu.matmul %372, %373, %cst_124 {dimension_numbers = #tpu.dot_dimension_numbers<[1], [0], [0], [1], [0, 0, 1, 1], [], []>} : vector<2x32xbf16>, vector<32x16xbf16>, vector<2x16xf32> -> vector<2x16xf32>
    %375 = arith.mulf %185, %374 : vector<2x16xf32>
    %cst_125 = arith.constant dense<0.000000e+00> : vector<2xf32>
    %376 = vector.multi_reduction <add>, %375, %cst_125 [1] : vector<2x16xf32> to vector<2xf32>
    %377 = vector.shape_cast %376 : vector<2xf32> to vector<2x1xf32>
    %c0_126 = arith.constant 0 : index
    %c0_127 = arith.constant 0 : index
    %378 = memref.load %arg10[%c0_126, %c0_127] : memref<1x2xf32, #tpu.memory_space<smem>>
    %379 = vector.broadcast %378 : f32 to vector<2x1xf32>
    %380 = arith.mulf %377, %379 : vector<2x1xf32>
    %c0_128 = arith.constant 0 : index
    %c1_129 = arith.constant 1 : index
    %381 = memref.load %arg10[%c0_128, %c1_129] : memref<1x2xf32, #tpu.memory_space<smem>>
    %382 = vector.broadcast %381 : f32 to vector<2x1xf32>
    %383 = arith.addf %380, %382 : vector<2x1xf32>
    %cst_130 = arith.constant 0.000000e+00 : f32
    %384 = vector.broadcast %cst_130 : f32 to vector<2x1xf32>
    %385 = arith.subf %384, %383 : vector<2x1xf32>
    %386 = math.exp %385 : vector<2x1xf32>
    %cst_131 = arith.constant 1.000000e+00 : f32
    %387 = vector.broadcast %cst_131 : f32 to vector<2x1xf32>
    %388 = arith.addf %387, %386 : vector<2x1xf32>
    %389 = tpu.reciprocal %388 {approx = true} : vector<2x1xf32> -> vector<2x1xf32>
    %c0_132 = arith.constant 0 : index
    %c0_133 = arith.constant 0 : index
    %390 = vector.load %arg11[%c0_132, %c0_133] : memref<2x1xf32, #tpu.memory_space<vmem>>, vector<2x1xf32>
    tpu.vector_store %arg11[%c0_132, %c0_133], %389 {strides = array<i32>} : memref<2x1xf32, #tpu.memory_space<vmem>>, vector<2x1xf32>,
    return
  }
}

</mosaic_0001>

<bundles_post_ra>
// kernel: clip_combined_forward.1
= control target key start
LH: loop header
LB: loop body
LE: loop exit
PB: predicated region body
PF: predicated region fallthrough
CT: control target
= control target key end

     0   :  { %16 = vsyncpa [#allocation3], 0  ;;  %s7827_s0 = inlined_call_operand.vmem [shape: f32[2,5,192], index: 0, kind: input, shape index: {}]   ;;  %s7828_s1 = inlined_call_operand.vmem [shape: bf16[192,32], index: 1, kind: input, shape index: {}]   ;;  %s7829_s2 = inlined_call_operand.vmem [shape: bf16[32,448], index: 2, kind: input, shape index: {}]   ;;  %s7830_s3 = inlined_call_operand.vmem [shape: bf16[64,32], index: 3, kind: input, shape index: {}]   ;;  %s7831_s4 = inlined_call_operand.vmem [shape: f32[24,128], index: 4, kind: input, shape index: {}]   ;;  %s7832_s5 = inlined_call_operand.vmem [shape: f32[2,8,32], index: 5, kind: input, shape index: {}]   ;;  %s7833_s6 = inlined_call_operand.vmem [shape: f32[2,8], index: 6, kind: input, shape index: {}]   ;;  %s7834_s7 = inlined_call_operand.vmem [shape: bf16[32,448], index: 7, kind: input, shape index: {}]   ;;  %s7835_s8 = inlined_call_operand.vmem [shape: bf16[64,32], index: 8, kind: input, shape index: {}]   ;;  %s7836_s9 = inlined_call_operand.vmem [shape: f32[24,128], index: 9, kind: input, shape index: {}]   ;;  %s7837_s10 = inlined_call_operand.vmem [shape: f32[1,2], index: 10, kind: input, shape index: {}]   ;;  %s7838_s11 = inlined_call_operand.vmem [shape: f32[2,1], index: 11, kind: output, shape index: {}]  }
   0x1   :  { %s43_s19 = sshll.u32 %s7837_s10, 4  ;;  %s44_s19 = int_to_ptr.vmem [resolvable:$true] %s43_s19 }
   0x2   :  { %s6413_s20 = scalar_lea.vmem %s44_s19, 16  ;;  %p6418_p1 = scmp.lt.s32.totalorder %s44_s19, %s44_s19 }
   0x3   :  { %p6414_p0 = scmp.ne.s32.totalorder %s44_s19, %s6413_s20  ;;  %p6419_p2 = scmp.lt.s32.totalorder %s6413_s20, %s6413_s20 }
   0x5   :  { %p6420_p3 = por %p6419_p2, %p6418_p1 }
   0x7   :  { %p6421_p4 = pnand %p6420_p3, %p6414_p0 }
   0x9   :  { %6424 = shalt.err (!%p6421_p4)
}
   0xa   :  { %s6427_s21 = smov [#allocation2]  }
   0xb   :  { %46 = dma.vmem_to_smem %s44_s19, 16, %s6427_s21, [#allocation3]  }
   0xc   :  { %6425 = dma.done.wait [#allocation3], 16  }
   0xd   :  { %6426 = vsyncadd [#allocation3], 4294967280 }
   0xe   :  { %50 = sfence }
   0xf   :  { %v6262_v0 = vld [vmem:[%s7828_s1] sm:$0xff]   ;;  %v6428_v1 = vmov 0   ;;  %v6263_v2 = vld [vmem:[%s7828_s1 + $0x8] sm:$0xff]   ;;  %v6264_v3 = vld [vmem:[%s7828_s1 + $0x10] sm:$0xff]   ;;  %v7839_v4 = vlaneseq  ;;  %v6429_v10 = vmov 1966171168  }
  0x10   :  { %335 = vmatprep.subr.bf16.mxu0 %v6428_v1  ;;  %v6265_v5 = vld [vmem:[%s7828_s1 + $0x18] sm:$0xff]   ;;  %v6266_v7 = vld [vmem:[%s7828_s1 + $0x20] sm:$0xff]   ;;  %v63_v11 = vunpack.c.l.s4 %v6429_v10  ;;  %v6267_v14 = vld [vmem:[%s7828_s1 + $0x28] sm:$0xff]   ;;  %vm331_vm0 = vcmask 523264   ;;  %vm593_vm1 = vcmask 261120   ;;  %vm597_vm2 = vcmask 254976  }
  0x11   :  { %336 = vmatpush1.bf16.msra.mxu0 %v6262_v0  ;;  %v6521_v6 = vshrl.u32 %v7839_v4, 7  ;;  %v6274_v8 = vld [vmem:[%s7827_s0] ss:$8 sps:$4 sm:$0xff]   ;;  %v6276_v9 = vld [vmem:[%s7827_s0 + $0x4] ss:$8 sps:$4 sm:$0x11]  }
  0x12   :  { %337 = vmatprep.subr.bf16.mxu0 %v6428_v1  ;;  %v6277_v12 = vld [vmem:[%s7827_s0 + $0x10] ss:$8 sps:$4 sm:$0xff]   ;;  %v6279_v13 = vld [vmem:[%s7827_s0 + $0x14] ss:$8 sps:$4 sm:$0x11]   ;;  %v64_v15 = vunpack.c.0.s8 %v63_v11  ;;  %v6270_v38 = vld [vmem:[%s7828_s1 + $0x40] sm:$0xff]  }
  0x13   :  { %7847 = vst [vmem:[#allocation5_spill] sm:$0xff] %v6521_v6  ;;  %v6268_v17 = vld [vmem:[%s7828_s1 + $0x30] sm:$0xff]   ;;  %v6269_v27 = vld [vmem:[%s7828_s1 + $0x38] sm:$0xff]   ;;  %v6271_v51 = vld [vmem:[%s7828_s1 + $0x48] sm:$0xff]   ;;  %vm6431_vm3 = vmmov 0   ;;  %s6432_s26 = smov 120  }
  0x14   :  { %v6543_v16 = vsub.s32 %v64_v15, %v6521_v6  ;;  %v6272_v57 = vld [vmem:[%s7828_s1 + $0x50] sm:$0xff]   ;;  %v6273_v60 = vld [vmem:[%s7828_s1 + $0x58] sm:$0xff]   ;;  %s6433_s27 = smov 112   ;;  %s6434_s28 = smov 104   ;;  %vm2028_vm4 = vcmask 64512   ;;  %vm2426_vm5 = vcmask 36864  }
  0x15   :  { %338 = vmatpush1.bf16.msra.mxu0 %v6263_v2  ;;  %v459_v62 = vld [vmem:[%s7831_s4 + $0x10] sm:$0x1f]  ;;  %s6435_s29 = smov 96   ;;  %s6436_s30 = smov 64   ;;  %vm2529_vm6 = vcmask 1041408   ;;  %vm2530_vm7 = vcmask 1042432  }
  0x16   :  { %339 = vmatprep.subr.bf16.mxu0 %v6428_v1  ;;  %v68_v18 = vrot.slane %v6274_v8, %v6543_v16  ;;  %v75_v19 = vrot.slane %v6276_v9, %v6543_v16  ;;  %v108_v20 = vrot.slane %v6277_v12, %v6543_v16  ;;  %v115_v21 = vrot.slane %v6279_v13, %v6543_v16  ;;  %s6438_s12 = smov 8   ;;  %s6439_s13 = smov 16  }
  0x17   :  { %v468_v63 = vrot.slane %v459_v62, %v6543_v16  ;;  %v461_v0 = vcombine.high %v459_v62, %v459_v62  ;;  %v6626_v62 = vsub.s32 2, %v6521_v6  ;;  %vm2525_vm8 = vcmask 39936   ;;  %s6440_s14 = smov 24  }
  0x18   :  { %v76_v22 = vcombine.high %v68_v18, %v68_v18  ;;  %v83_v23 = vrot.slane %v68_v18, %v6543_v16  ;;  %v90_v24 = vrot.slane %v75_v19, %v6543_v16  ;;  %v116_v25 = vcombine.high %v108_v20, %v108_v20 }
  0x19   :  { %340 = vmatpush1.bf16.msra.mxu0 %v6264_v3  ;;  %v123_v26 = vrot.slane %v108_v20, %v6543_v16  ;;  %v130_v29 = vrot.slane %v115_v21, %v6543_v16  ;;  %v476_v3 = vcombine.high %v468_v63, %v468_v63  ;;  %v475_v8 = vrot.slane %v461_v0, %v6543_v16 }
  0x1a   :  { %341 = vmatprep.subr.bf16.mxu0 %v6428_v1  ;;  %v97_v28 = vrot.slane %v76_v22, %v6543_v16  ;;  %v137_v30 = vrot.slane %v116_v25, %v6543_v16  ;;  %vm2938_vm9 = vcmask 130048   ;;  %vm2941_vm10 = vcmask 195584  }
  0x1b   :  { %v138_v31 = vcombine.high %v123_v26, %v123_v26  ;;  %v142_v32 = vcombine.low %v90_v24, %v123_v26  ;;  %v490_v21 = vrot.slane %v475_v8, %v6543_v16  ;;  %vm4120_vm11 = vcmask 1041409  }
  0x1c   :  { %v139_v33 = vcombine.high %v137_v30, %v137_v30  ;;  %v140_v34 = vcombine.low %v83_v23, %v97_v28  ;;  %v5730_v35 = vcombine.high %v83_v23, %v97_v28  ;;  %vm4873_vm12 = vcmask 1043456  }
  0x1d   :  { %342 = vmatpush1.bf16.msra.mxu0 %v6265_v5  ;;  %v143_v36 = vcombine.low %v137_v30, %v138_v31  ;;  %v164_v37 = vrot.slane %v142_v32, %v6543_v16  ;;  %vm5553_vm14 = vcmask 58368  }
  0x1e   :  { %343 = vmatprep.subr.bf16.mxu0 %v6428_v1  ;;  %v150_v39 = vrot.slane %v140_v34, %v6543_v16  ;;  %v157_v40 = vrot.slane %v5730_v35, %v6543_v16  ;;  %v206_v41 = vcombine.low %v139_v33, %v130_v29 }
  0x1f   :  { %v171_v42 = vrot.slane %v143_v36, %v6543_v16 }
  0x20   :  { %v173_v43 = vcombine.high %v150_v39, %v157_v40  ;;  %v213_v44 = vrot.slane %v206_v41, %v6543_v16  ;;  %v172_v49 = vcombine.low %v150_v39, %v157_v40 }
  0x21   :  { %344 = vmatpush1.bf16.msra.mxu0 %v6266_v7  ;;  %v175_v45 = vcombine.high %v164_v37, %v171_v42  ;;  %v174_v50 = vcombine.low %v164_v37, %v171_v42 }
  0x22   :  { %345 = vmatprep.subr.bf16.mxu0 %v6428_v1  ;;  %v189_v46 = vrot.slane %v173_v43, %v6543_v16  ;;  %v214_v47 = vcombine.high %v213_v44, %v213_v44  ;;  %v182_v55 = vrot.slane %v172_v49, %v6543_v16  ;;  %v221_v59 = vrot.slane %v213_v44, %v6543_v16 }
  0x23   :  { %v203_v48 = vrot.slane %v175_v45, %v6543_v16  ;;  %v196_v56 = vrot.slane %v174_v50, %v6543_v16 }
  0x24   :  { %v228_v52 = vrot.slane %v214_v47, %v6543_v16 }
  0x25   :  { %346 = vmatpush1.bf16.msra.mxu0 %v6267_v14  ;;  %v205_v53 = vcombine.low %v189_v46, %v203_v48  ;;  %v204_v58 = vcombine.low %v182_v55, %v196_v56 }
  0x26   :  { %347 = vmatprep.subr.bf16.mxu0 %v6428_v1 }
  0x27   :  { %v234_v54 = vpack.c.bf16 %v228_v52, %v205_v53  ;;  %v233_v61 = vpack.c.bf16 %v221_v59, %v204_v58 }
  0x29   :  { %348 = vmatpush1.bf16.msra.mxu0 %v6268_v17  ;;  %5743 = vmatprep.mubr.msk.bf16.mxu0 %vm331_vm0, %v234_v54  ;;  %v497_v17 = vrot.slane %v476_v3, %v6543_v16  ;;  %v6635_v3 = vsub.s32 5, %v6521_v6 }
  0x2a   :  { %349 = vmatprep.subr.bf16.mxu0 %v6428_v1 }
  0x2b   :  { %v499_v31 = vcombine.high %v497_v17, %v497_v17 }
  0x2d   :  { %350 = vmatpush1.bf16.msra.mxu0 %v6269_v27 }
  0x2e   :  { %351 = vmatprep.subr.bf16.mxu0 %v6428_v1 }
  0x31   :  { %352 = vmatpush1.bf16.msra.mxu0 %v6270_v38 }
  0x32   :  { %353 = vmatprep.subr.bf16.mxu0 %v6428_v1 }
  0x35   :  { %354 = vmatpush1.bf16.msra.mxu0 %v6271_v51 }
  0x36   :  { %355 = vmatprep.subr.bf16.mxu0 %v6428_v1 }
  0x39   :  { %356 = vmatpush1.bf16.msra.mxu0 %v6272_v57 }
  0x3a   :  { %357 = vmatprep.subr.bf16.mxu0 %v6428_v1  ;;  %v483_v1 = vrot.slane %v468_v63, %v6543_v16  ;;  %v6629_v63 = vsub.s32 3, %v6521_v6 }
  0x3c   :  { %v498_v23 = vcombine.high %v483_v1, %v483_v1 }
  0x3d   :  { %358 = vmatpush1.bf16.msra.mxu0 %v6273_v60  ;;  %v6620_v60 = vsub.s32 0, %v6521_v6 }
  0x40   :  { %368 = vmatmul.mubr.bf16.vlgmr.msra.gmra.mrb[0].mxu0 %v233_v61  ;;  %v6623_v61 = vsub.s32 1, %v6521_v6 }
 0x113   :  { %v369_v2 = vpop.f32.mrb[0].mxu0 }
 0x114   :  { %v378_v5 = vcombine.high %v369_v2, %v369_v2  ;;  %v385_v7 = vrot.slane %v369_v2, %v6543_v16  ;;  %v371_v9 = vpop.f32.mrb[1].mxu0  ;;  %v6632_v2 = vsub.s32 4, %v6521_v6 }
 0x115   :  { %v372_v10 = vpop.f32.mrb[2].mxu0 }
 0x116   :  { %v392_v11 = vrot.slane %v378_v5, %v6543_v16  ;;  %v393_v12 = vcombine.high %v385_v7, %v385_v7  ;;  %v401_v13 = vrot.slane %v385_v7, %v6543_v16  ;;  %v433_v14 = vrot.slane %v372_v10, %v6543_v16  ;;  %v374_v15 = vpop.f32.mrb[3].mxu0 }
 0x117   :  { %v6638_v5 = vsub.s32 6, %v6521_v6  ;;  %v6641_v7 = vsub.s32 7, %v6521_v6 }
 0x118   :  { %v394_v18 = vcombine.high %v392_v11, %v392_v11  ;;  %v408_v19 = vrot.slane %v392_v11, %v6543_v16  ;;  %v415_v20 = vrot.slane %v393_v12, %v6543_v16  ;;  %v423_v22 = vcombine.high %v401_v13, %v401_v13 }
 0x119   :  { %v434_v24 = vcombine.high %v433_v14, %v433_v14  ;;  %v505_v29 = vadd.f32 %v483_v1, %v401_v13  ;;  %v441_v35 = vrot.slane %v433_v14, %v6543_v16  ;;  %7848 = vst [vmem:[#allocation6_spill] sm:$0xff] %v6638_v5  ;;  %7849 = vst [vmem:[#allocation7_spill] sm:$0xff] %v6641_v7 }
 0x11a   :  { %v422_v25 = vrot.slane %v394_v18, %v6543_v16  ;;  %v424_v26 = vcombine.high %v408_v19, %v408_v19  ;;  %v425_v27 = vcombine.high %v415_v20, %v415_v20  ;;  %v506_v28 = vadd.f32 %v497_v17, %v415_v20 }
 0x11b   :  { %v448_v30 = vrot.slane %v434_v24, %v6543_v16  ;;  %v509_v33 = vadd.f32 %v490_v21, %v408_v19  ;;  %v507_v36 = vadd.f32 %v498_v23, %v423_v22  ;;  %v513_v44 = vadd.f32 %v499_v31, %v441_v35 }
 0x11c   :  { %v426_v32 = vcombine.high %v422_v25, %v422_v25  ;;  %v510_v34 = vadd.f32 %v483_v1, %v422_v25  ;;  %v527_v37 = vcombine.low %v505_v29, %v506_v28  ;;  %v508_v38 = vadd.f32 %v499_v31, %v425_v27 }
 0x11d   :  { %v511_v39 = vadd.f32 %v497_v17, %v424_v26  ;;  %v514_v40 = vadd.f32 %v490_v21, %v448_v30 }
 0x11e   :  { %v512_v41 = vadd.f32 %v498_v23, %v426_v32  ;;  %v529_v42 = vcombine.low %v509_v33, %v510_v34  ;;  %v528_v43 = vcombine.low %v507_v36, %v508_v38  ;;  %v537_v46 = vrot.slane %v527_v37, %v6543_v16 }
 0x11f   :  { %v576_v50 = vcombine.low %v513_v44, %v514_v40 }
 0x120   :  { %v530_v45 = vcombine.low %v511_v39, %v512_v41  ;;  %v544_v47 = vrot.slane %v528_v43, %v6543_v16  ;;  %v551_v48 = vrot.slane %v529_v42, %v6543_v16 }
 0x121   :  { %v583_v55 = vrot.slane %v576_v50, %v6543_v16 }
 0x122   :  { %v558_v49 = vrot.slane %v530_v45, %v6543_v16  ;;  %v559_v51 = vcombine.low %v537_v46, %v544_v47 }
 0x123   :  { %v590_v58 = vrot.slane %v583_v55, %v6543_v16 }
 0x124   :  { %v560_v52 = vcombine.low %v551_v48, %v558_v49  ;;  %v567_v53 = vrot.slane %v559_v51, %v6543_v16 }
 0x125   :  { %v598_v59 = vsel %vm597_vm2, %v590_v58, 0.0 }
 0x126   :  { %v574_v54 = vrot.slane %v560_v52, %v6543_v16 }
 0x128   :  { %v575_v56 = vcombine.low %v567_v53, %v574_v54 }
 0x12a   :  { %v594_v57 = vsel %vm593_vm1, %v575_v56, 0.0 }
 0x12b   :  { %595 = vadd.xlane.f32.xlu0 %v594_v57 }
 0x12f   :  { %599 = vadd.xlane.f32.xlu0 %v598_v59  ;;  %v5744_v59 = vld [vmem:[%s7831_s4 + $0x6] ss:$0 sm:$0xff] }
 0x1b8   :  { %v596_v0 = vpop.xlane.xlu0 %595 }
 0x1b9   :  { %v602_v8 = vmul.f32 0.03125, %v596_v0  ;;  %v5745_v0 = vld [vmem:[%s7831_s4 + $0x7] ss:$0 sm:$0xff] }
 0x1bb   :  { %v609_v9 = vrot.slane %v602_v8, %v6620_v60  ;;  %v613_v1 = vrot.slane %v602_v8, %v6623_v61  ;;  %v617_v10 = vrot.slane %v602_v8, %v6626_v62  ;;  %v621_v11 = vrot.slane %v602_v8, %v6629_v63 }
 0x1bc   :  { %v600_v12 = vpop.xlane.xlu0 %599  ;;  %v625_v13 = vrot.slane %v602_v8, %v6632_v2  ;;  %v629_v14 = vrot.slane %v602_v8, %v6635_v3  ;;  %v633_v15 = vrot.slane %v602_v8, %v6638_v5  ;;  %v637_v17 = vrot.slane %v602_v8, %v6641_v7 }
 0x1bd   :  { %v603_v18 = vmul.f32 0.03125, %v600_v12  ;;  %v6651_v19 = vsub.f32 %v505_v29, %v609_v9  ;;  %v6653_v20 = vsub.f32 %v506_v28, %v613_v1  ;;  %v6655_v21 = vsub.f32 %v507_v36, %v617_v10 }
 0x1be   :  { %v6657_v22 = vsub.f32 %v508_v38, %v621_v11  ;;  %v6659_v23 = vsub.f32 %v509_v33, %v625_v13  ;;  %v6661_v24 = vsub.f32 %v510_v34, %v629_v14  ;;  %v6663_v25 = vsub.f32 %v511_v39, %v633_v15 }
 0x1bf   :  { %v641_v26 = vrot.slane %v603_v18, %v6620_v60  ;;  %v645_v27 = vrot.slane %v603_v18, %v6623_v61  ;;  %v6667_v30 = vsub.f32 %v512_v41, %v637_v17  ;;  %v666_v28 = vmul.f32 %v6651_v19, %v6651_v19 }
 0x1c0   :  { %v667_v29 = vmul.f32 %v6653_v20, %v6653_v20  ;;  %v668_v31 = vmul.f32 %v6655_v21, %v6655_v21  ;;  %v669_v32 = vmul.f32 %v6657_v22, %v6657_v22  ;;  %v670_v33 = vmul.f32 %v6659_v23, %v6659_v23 }
 0x1c1   :  { %v6679_v34 = vsub.f32 %v513_v44, %v641_v26  ;;  %v6681_v35 = vsub.f32 %v514_v40, %v645_v27  ;;  %v671_v36 = vmul.f32 %v6661_v24, %v6661_v24  ;;  %v672_v37 = vmul.f32 %v6663_v25, %v6663_v25 }
 0x1c2   :  { %v673_v38 = vmul.f32 %v6667_v30, %v6667_v30  ;;  %v686_v39 = vcombine.low %v666_v28, %v667_v29  ;;  %v687_v41 = vcombine.low %v668_v31, %v669_v32  ;;  %v831_v8 = vcombine.high %v5744_v59, %v5744_v59 }
 0x1c3   :  { %v674_v42 = vmul.f32 %v6679_v34, %v6679_v34  ;;  %v675_v43 = vmul.f32 %v6681_v35, %v6681_v35  ;;  %v688_v44 = vcombine.low %v670_v33, %v671_v36  ;;  %v903_v9 = vcombine.high %v5745_v0, %v5745_v0 }
 0x1c4   :  { %v689_v40 = vcombine.low %v672_v37, %v673_v38  ;;  %v696_v45 = vrot.slane %v686_v39, %v6543_v16  ;;  %v703_v46 = vrot.slane %v687_v41, %v6543_v16  ;;  %v838_v11 = vrot.slane %v5744_v59, %v6543_v16 }
 0x1c5   :  { %v710_v47 = vrot.slane %v688_v44, %v6543_v16  ;;  %v735_v50 = vcombine.low %v674_v42, %v675_v43  ;;  %v845_v12 = vrot.slane %v831_v8, %v6543_v16  ;;  %v910_v14 = vrot.slane %v5745_v0, %v6543_v16 }
 0x1c6   :  { %v717_v48 = vrot.slane %v689_v40, %v6543_v16  ;;  %v718_v49 = vcombine.low %v696_v45, %v703_v46  ;;  %v917_v15 = vrot.slane %v903_v9, %v6543_v16  ;;  %v846_v26 = vcombine.high %v838_v11, %v838_v11 }
 0x1c7   :  { %v742_v54 = vrot.slane %v735_v50, %v6543_v16  ;;  %v847_v27 = vcombine.high %v845_v12, %v845_v12  ;;  %v918_v29 = vcombine.high %v910_v14, %v910_v14  ;;  %v854_v32 = vrot.slane %v838_v11, %v6543_v16 }
 0x1c8   :  { %v719_v51 = vcombine.low %v710_v47, %v717_v48  ;;  %v726_v52 = vrot.slane %v718_v49, %v6543_v16  ;;  %v919_v31 = vcombine.high %v917_v15, %v917_v15  ;;  %v861_v33 = vrot.slane %v845_v12, %v6543_v16 }
 0x1c9   :  { %v749_v57 = vrot.slane %v742_v54, %v6543_v16  ;;  %v868_v36 = vrot.slane %v846_v26, %v6543_v16  ;;  %v875_v37 = vrot.slane %v847_v27, %v6543_v16  ;;  %v926_v38 = vrot.slane %v910_v14, %v6543_v16 }
 0x1ca   :  { %v733_v53 = vrot.slane %v719_v51, %v6543_v16  ;;  %v933_v39 = vrot.slane %v917_v15, %v6543_v16  ;;  %v940_v41 = vrot.slane %v918_v29, %v6543_v16  ;;  %v947_v42 = vrot.slane %v919_v31, %v6543_v16 }
 0x1cb   :  { %v755_v58 = vsel %vm597_vm2, %v749_v57, 0.0  ;;  %v876_v43 = vcombine.high %v854_v32, %v854_v32  ;;  %v877_v44 = vcombine.high %v861_v33, %v861_v33  ;;  %v878_v40 = vcombine.high %v868_v36, %v868_v36 }
 0x1cc   :  { %v734_v55 = vcombine.low %v726_v52, %v733_v53  ;;  %v879_v45 = vcombine.high %v875_v37, %v875_v37  ;;  %v948_v47 = vcombine.high %v926_v38, %v926_v38  ;;  %v949_v48 = vcombine.high %v933_v39, %v933_v39 }
 0x1cd   :  { %v950_v49 = vcombine.high %v940_v41, %v940_v41  ;;  %v951_v50 = vcombine.high %v947_v42, %v947_v42 }
 0x1ce   :  { %v752_v56 = vsel %vm593_vm1, %v734_v55, 0.0 }
 0x1cf   :  { %753 = vadd.xlane.f32.xlu1 %v752_v56 }
 0x1d3   :  { %756 = vadd.xlane.f32.xlu1 %v755_v58 }
 0x25c   :  { %v754_v1 = vpop.xlane.xlu1 %753 }
 0x25d   :  { %v758_v10 = vmul.f32 0.03125, %v754_v1 }
 0x25f   :  { %v760_v13 = vadd.f32 1e-05, %v758_v10 }
 0x260   :  { %v757_v17 = vpop.xlane.xlu1 %756 }
 0x261   :  { %6305 = vrsqrt.f32 %v760_v13  ;;  %v759_v18 = vmul.f32 0.03125, %v757_v17 }
 0x263   :  { %v761_v28 = vadd.f32 1e-05, %v759_v18 }
 0x265   :  { %6307 = vrsqrt.f32 %v761_v28 }
 0x26b   :  { %v6306_v46 = vpop.eup %6305 }
 0x26c   :  { %v769_v51 = vrot.slane %v6306_v46, %v6620_v60  ;;  %v773_v52 = vrot.slane %v6306_v46, %v6623_v61  ;;  %v777_v53 = vrot.slane %v6306_v46, %v6626_v62  ;;  %v781_v54 = vrot.slane %v6306_v46, %v6629_v63 }
 0x26d   :  { %v785_v55 = vrot.slane %v6306_v46, %v6632_v2  ;;  %v789_v56 = vrot.slane %v6306_v46, %v6635_v3  ;;  %v793_v57 = vrot.slane %v6306_v46, %v6638_v5  ;;  %v797_v58 = vrot.slane %v6306_v46, %v6641_v7 }
 0x26e   :  { %v816_v59 = vmul.f32 %v769_v51, %v6651_v19  ;;  %v817_v0 = vmul.f32 %v773_v52, %v6653_v20  ;;  %v818_v8 = vmul.f32 %v777_v53, %v6655_v21  ;;  %v819_v9 = vmul.f32 %v781_v54, %v6657_v22 }
 0x26f   :  { %v6308_v1 = vpop.eup %6307  ;;  %v820_v10 = vmul.f32 %v785_v55, %v6659_v23  ;;  %v821_v11 = vmul.f32 %v789_v56, %v6661_v24  ;;  %v822_v12 = vmul.f32 %v793_v57, %v6663_v25  ;;  %v823_v13 = vmul.f32 %v797_v58, %v6667_v30 }
 0x270   :  { %v801_v14 = vrot.slane %v6308_v1, %v6620_v60  ;;  %v805_v15 = vrot.slane %v6308_v1, %v6623_v61  ;;  %v888_v19 = vmul.f32 %v854_v32, %v816_v59  ;;  %v889_v17 = vmul.f32 %v868_v36, %v817_v0 }
 0x271   :  { %v890_v20 = vmul.f32 %v876_v43, %v818_v8  ;;  %v891_v18 = vmul.f32 %v878_v40, %v819_v9  ;;  %v892_v21 = vmul.f32 %v861_v33, %v820_v10  ;;  %v893_v26 = vmul.f32 %v875_v37, %v821_v11 }
 0x272   :  { %v894_v22 = vmul.f32 %v877_v44, %v822_v12  ;;  %v895_v27 = vmul.f32 %v879_v45, %v823_v13  ;;  %v6739_v28 = vadd.f32 %v926_v38, %v888_v19  ;;  %v6741_v23 = vadd.f32 %v940_v41, %v889_v17 }
 0x273   :  { %v6743_v24 = vadd.f32 %v948_v47, %v890_v20  ;;  %v6745_v25 = vadd.f32 %v950_v49, %v891_v18  ;;  %v6747_v30 = vadd.f32 %v933_v39, %v892_v21  ;;  %v6749_v29 = vadd.f32 %v947_v42, %v893_v26 }
 0x274   :  { %v6751_v31 = vadd.f32 %v949_v48, %v894_v22  ;;  %v6753_v43 = vadd.f32 %v951_v50, %v895_v27  ;;  %v982_v33 = vcombine.low %v6739_v28, %v6741_v23  ;;  %v824_v37 = vmul.f32 %v801_v14, %v6679_v34 }
 0x275   :  { %v983_v44 = vcombine.low %v6743_v24, %v6745_v25  ;;  %v984_v40 = vcombine.low %v6747_v30, %v6749_v29  ;;  %v825_v39 = vmul.f32 %v805_v15, %v6681_v35 }
 0x276   :  { %v985_v42 = vcombine.low %v6751_v31, %v6753_v43  ;;  %v992_v45 = vrot.slane %v982_v33, %v6543_v16  ;;  %v896_v46 = vmul.f32 %v854_v32, %v824_v37 }
 0x277   :  { %v999_v47 = vrot.slane %v983_v44, %v6543_v16  ;;  %v1006_v48 = vrot.slane %v984_v40, %v6543_v16  ;;  %v897_v49 = vmul.f32 %v868_v36, %v825_v39 }
 0x278   :  { %v1013_v34 = vrot.slane %v985_v42, %v6543_v16  ;;  %v6769_v50 = vadd.f32 %v926_v38, %v896_v46 }
 0x279   :  { %v1014_v51 = vcombine.low %v992_v45, %v999_v47  ;;  %v6771_v52 = vadd.f32 %v940_v41, %v897_v49 }
 0x27a   :  { %v1015_v53 = vcombine.low %v1006_v48, %v1013_v34 }
 0x27b   :  { %v1022_v35 = vrot.slane %v1014_v51, %v6543_v16  ;;  %v1031_v54 = vcombine.low %v6769_v50, %v6771_v52 }
 0x27c   :  { %v1029_v32 = vrot.slane %v1015_v53, %v6543_v16 }
 0x27d   :  { %v1038_v55 = vrot.slane %v1031_v54, %v6543_v16 }
 0x27e   :  { %v1030_v56 = vcombine.low %v1022_v35, %v1029_v32 }
 0x27f   :  { %v1045_v36 = vrot.slane %v1038_v55, %v6543_v16 }
 0x280   :  { %v1048_v57 = vsel %vm593_vm1, %v1030_v56, 0.0 }
 0x281   :  { %1049 = vadd.xlane.f32.xlu0 %v1048_v57  ;;  %v1051_v38 = vsel %vm597_vm2, %v1045_v36, 0.0 }
 0x282   :  { %1052 = vadd.xlane.f32.xlu1 %v1051_v38 }
 0x30e   :  { %v1050_v41 = vpop.xlane.xlu0 %1049 }
 0x30f   :  { %v1053_v58 = vpop.xlane.xlu1 %1052  ;;  %v1054_v59 = vmul.f32 0.03125, %v1050_v41 }
 0x310   :  { %v1055_v0 = vmul.f32 0.03125, %v1053_v58 }
 0x311   :  { %v1061_v8 = vrot.slane %v1054_v59, %v6620_v60  ;;  %v1065_v9 = vrot.slane %v1054_v59, %v6623_v61  ;;  %v1069_v1 = vrot.slane %v1054_v59, %v6626_v62  ;;  %v1073_v10 = vrot.slane %v1054_v59, %v6629_v63 }
 0x312   :  { %v1093_v11 = vrot.slane %v1055_v0, %v6620_v60  ;;  %v1097_v12 = vrot.slane %v1055_v0, %v6623_v61  ;;  %v1077_v13 = vrot.slane %v1054_v59, %v6632_v2  ;;  %v1081_v14 = vrot.slane %v1054_v59, %v6635_v3 }
 0x313   :  { %v1085_v15 = vrot.slane %v1054_v59, %v6638_v5  ;;  %v1089_v19 = vrot.slane %v1054_v59, %v6641_v7  ;;  %v6792_v17 = vsub.f32 %v6739_v28, %v1061_v8  ;;  %v6795_v20 = vsub.f32 %v6741_v23, %v1065_v9 }
 0x314   :  { %v6798_v18 = vsub.f32 %v6769_v50, %v1093_v11  ;;  %v6801_v21 = vsub.f32 %v6771_v52, %v1097_v12  ;;  %v6804_v26 = vsub.f32 %v6743_v24, %v1069_v1  ;;  %v6807_v22 = vsub.f32 %v6745_v25, %v1073_v10  ;;  %v6281_v12 = vld [vmem:[%s7829_s2] ss:$16 sps:$4 sm:$0xff]  }
 0x315   :  { %v6810_v27 = vsub.f32 %v6747_v30, %v1077_v13  ;;  %v6813_v33 = vsub.f32 %v6749_v29, %v1081_v14  ;;  %v6816_v37 = vsub.f32 %v6751_v31, %v1085_v15  ;;  %v6819_v44 = vsub.f32 %v6753_v43, %v1089_v19  ;;  %v6282_v14 = vld [vmem:[%s7829_s2 + $0x20] ss:$16 sps:$4 sm:$0xff]  }
 0x316   :  { %v1126_v40 = vmul.f32 %v6798_v18, %v6798_v18  ;;  %v1127_v39 = vmul.f32 %v6801_v21, %v6801_v21  ;;  %v1118_v42 = vmul.f32 %v6792_v17, %v6792_v17  ;;  %v1119_v45 = vmul.f32 %v6795_v20, %v6795_v20 }
 0x317   :  { %v1120_v46 = vmul.f32 %v6804_v26, %v6804_v26  ;;  %v1121_v47 = vmul.f32 %v6807_v22, %v6807_v22  ;;  %v1122_v48 = vmul.f32 %v6810_v27, %v6810_v27  ;;  %v1123_v49 = vmul.f32 %v6813_v33, %v6813_v33 }
 0x318   :  { %v1187_v34 = vcombine.low %v1126_v40, %v1127_v39  ;;  %v1124_v51 = vmul.f32 %v6816_v37, %v6816_v37  ;;  %v1125_v53 = vmul.f32 %v6819_v44, %v6819_v44  ;;  %v1138_v35 = vcombine.low %v1118_v42, %v1119_v45  ;;  %v5746_v40 = vld [vmem:[%s7831_s4] ss:$0 sm:$0xff]  ;;  %v5747_v39 = vld [vmem:[%s7831_s4 + $0x1] ss:$0 sm:$0xff] }
 0x319   :  { %v1139_v54 = vcombine.low %v1120_v46, %v1121_v47  ;;  %v1140_v32 = vcombine.low %v1122_v48, %v1123_v49  ;;  %v7840_v13 = vmov 0.0   ;;  %v1283_v45 = vcombine.high %v5746_v40, %v5746_v40 }
 0x31a   :  { %v1194_v55 = vrot.slane %v1187_v34, %v6543_v16  ;;  %v1141_v56 = vcombine.low %v1124_v51, %v1125_v53  ;;  %v1148_v36 = vrot.slane %v1138_v35, %v6543_v16  ;;  %5936 = vmatprep.subr.bf16.mxu1 %v7840_v13  ;;  %5940 = vmatprep.mubr.msk.bf16.mxu1 %vm6431_vm3, %v7840_v13 }
 0x31b   :  { %v1155_v57 = vrot.slane %v1139_v54, %v6543_v16  ;;  %v1162_v38 = vrot.slane %v1140_v32, %v6543_v16  ;;  %5937 = vmatpush3.bf16.msra.mxu1 %v6281_v12  ;;  %5974 = vmatprep.subr.bf16.mxu0 %v7840_v13  ;;  %v1355_v46 = vcombine.high %v5747_v39, %v5747_v39 }
 0x31c   :  { %v1201_v41 = vrot.slane %v1194_v55, %v6543_v16  ;;  %v1169_v58 = vrot.slane %v1141_v56, %v6543_v16  ;;  %5938 = vmatprep.subr.bf16.mxu1 %v7840_v13  ;;  %5976 = vmatprep.mubr.msk.bf16.mxu0 %vm6431_vm3, %v7840_v13  ;;  %v1297_v49 = vrot.slane %v1283_v45, %v6543_v16 }
 0x31d   :  { %v1170_v59 = vcombine.low %v1148_v36, %v1155_v57  ;;  %v1290_v51 = vrot.slane %v5746_v40, %v6543_v16  ;;  %v1369_v53 = vrot.slane %v1355_v46, %v6543_v16  ;;  %v1362_v35 = vrot.slane %v5747_v39, %v6543_v16 }
 0x31e   :  { %v1207_v0 = vsel %vm597_vm2, %v1201_v41, 0.0  ;;  %v1171_v8 = vcombine.low %v1162_v38, %v1169_v58  ;;  %v1299_v54 = vcombine.high %v1297_v49, %v1297_v49  ;;  %v1313_v57 = vrot.slane %v1297_v49, %v6543_v16 }
 0x31f   :  { %1208 = vadd.xlane.f32.xlu1 %v1207_v0  ;;  %v1178_v9 = vrot.slane %v1170_v59, %v6543_v16  ;;  %5939 = vmatpush3.bf16.msra.mxu1 %v6282_v14  ;;  %v1298_v32 = vcombine.high %v1290_v51, %v1290_v51  ;;  %v1371_v55 = vcombine.high %v1369_v53, %v1369_v53 }
 0x320   :  { %v1185_v1 = vrot.slane %v1171_v8, %v6543_v16  ;;  %5944 = vmatprep.subr.bf16.mxu1 %v7840_v13  ;;  %v1370_v56 = vcombine.high %v1362_v35, %v1362_v35  ;;  %v1327_v58 = vrot.slane %v1299_v54, %v6543_v16  ;;  %v1306_v59 = vrot.slane %v1290_v51, %v6543_v16 }
 0x321   :  { %v1320_v0 = vrot.slane %v1298_v32, %v6543_v16  ;;  %v1385_v8 = vrot.slane %v1369_v53, %v6543_v16 }
 0x322   :  { %v1186_v10 = vcombine.low %v1178_v9, %v1185_v1  ;;  %v1399_v9 = vrot.slane %v1371_v55, %v6543_v16  ;;  %v1392_v12 = vrot.slane %v1370_v56, %v6543_v16  ;;  %v1328_v14 = vcombine.high %v1306_v59, %v1306_v59 }
 0x323   :  { %v1331_v40 = vcombine.high %v1327_v58, %v1327_v58 }
 0x324   :  { %v1204_v11 = vsel %vm593_vm1, %v1186_v10, 0.0  ;;  %v1403_v49 = vcombine.high %v1399_v9, %v1399_v9 }
 0x325   :  { %1205 = vadd.xlane.f32.xlu0 %v1204_v11  ;;  %v1378_v11 = vrot.slane %v1362_v35, %v6543_v16 }
 0x327   :  { %v1400_v39 = vcombine.high %v1378_v11, %v1378_v11 }
 0x3ac   :  { %v1209_v15 = vpop.xlane.xlu1 %1208 }
 0x3ad   :  { %v1211_v19 = vmul.f32 0.03125, %v1209_v15  ;;  %v1329_v15 = vcombine.high %v1313_v57, %v1313_v57 }
 0x3af   :  { %v1213_v42 = vadd.f32 1e-05, %v1211_v19  ;;  %v1330_v19 = vcombine.high %v1320_v0, %v1320_v0 }
 0x3b1   :  { %6309 = vrsqrt.f32 %v1213_v42  ;;  %v1402_v42 = vcombine.high %v1392_v12, %v1392_v12 }
 0x3b2   :  { %v1206_v47 = vpop.xlane.xlu0 %1205 }
 0x3b3   :  { %v1210_v48 = vmul.f32 0.03125, %v1206_v47 }
 0x3b5   :  { %v1212_v34 = vadd.f32 1e-05, %v1210_v48  ;;  %v1401_v48 = vcombine.high %v1385_v8, %v1385_v8 }
 0x3b7   :  { %6311 = vrsqrt.f32 %v1212_v34 }
 0x3bb   :  { %v6310_v36 = vpop.eup %6309 }
 0x3bc   :  { %v1253_v38 = vrot.slane %v6310_v36, %v6620_v60  ;;  %v1257_v41 = vrot.slane %v6310_v36, %v6623_v61 }
 0x3be   :  { %v1276_v1 = vmul.f32 %v1253_v38, %v6798_v18  ;;  %v1277_v10 = vmul.f32 %v1257_v41, %v6801_v21 }
 0x3c0   :  { %v1348_v46 = vmul.f32 %v1306_v59, %v1276_v1  ;;  %v1349_v47 = vmul.f32 %v1320_v0, %v1277_v10 }
 0x3c1   :  { %v6312_v45 = vpop.eup %6311 }
 0x3c2   :  { %v1221_v34 = vrot.slane %v6312_v45, %v6620_v60  ;;  %v1225_v18 = vrot.slane %v6312_v45, %v6623_v61  ;;  %v1229_v21 = vrot.slane %v6312_v45, %v6626_v62  ;;  %v1233_v51 = vrot.slane %v6312_v45, %v6629_v63 }
 0x3c3   :  { %v1237_v53 = vrot.slane %v6312_v45, %v6632_v2  ;;  %v1241_v35 = vrot.slane %v6312_v45, %v6635_v3  ;;  %v1245_v54 = vrot.slane %v6312_v45, %v6638_v5  ;;  %v1249_v32 = vrot.slane %v6312_v45, %v6641_v7 }
 0x3c4   :  { %v1268_v55 = vmul.f32 %v1221_v34, %v6792_v17  ;;  %v1269_v56 = vmul.f32 %v1225_v18, %v6795_v20  ;;  %v1270_v36 = vmul.f32 %v1229_v21, %v6804_v26  ;;  %v1271_v38 = vmul.f32 %v1233_v51, %v6807_v22 }
 0x3c5   :  { %v1272_v41 = vmul.f32 %v1237_v53, %v6810_v27  ;;  %v1273_v1 = vmul.f32 %v1241_v35, %v6813_v33  ;;  %v1274_v10 = vmul.f32 %v1245_v54, %v6816_v37  ;;  %v1275_v4 = vmul.f32 %v1249_v32, %v6819_v44 }
 0x3c6   :  { %v1340_v13 = vmul.f32 %v1306_v59, %v1268_v55  ;;  %v1341_v6 = vmul.f32 %v1320_v0, %v1269_v56  ;;  %v1342_v5 = vmul.f32 %v1328_v14, %v1270_v36  ;;  %v1343_v45 = vmul.f32 %v1330_v19, %v1271_v38 }
 0x3c7   :  { %v1344_v7 = vmul.f32 %v1313_v57, %v1272_v41  ;;  %v1345_v17 = vmul.f32 %v1327_v58, %v1273_v1  ;;  %v1346_v34 = vmul.f32 %v1329_v15, %v1274_v10  ;;  %v1347_v20 = vmul.f32 %v1331_v40, %v1275_v4  ;;  %v5748_v40 = vld [vmem:[%s7831_s4 + $0x8] ss:$0 sm:$0xff] }
 0x3c8   :  { %v1412_v18 = vadd.f32 %v1378_v11, %v1340_v13  ;;  %v1413_v26 = vadd.f32 %v1392_v12, %v1341_v6  ;;  %v1414_v21 = vadd.f32 %v1400_v39, %v1342_v5  ;;  %v1415_v22 = vadd.f32 %v1402_v42, %v1343_v45 }
 0x3c9   :  { %v1416_v51 = vadd.f32 %v1385_v8, %v1344_v7  ;;  %v1417_v27 = vadd.f32 %v1399_v9, %v1345_v17  ;;  %v1418_v53 = vadd.f32 %v1401_v48, %v1346_v34  ;;  %v1419_v33 = vadd.f32 %v1403_v49, %v1347_v20 }
 0x3ca   :  { %v1420_v35 = vadd.f32 %v1378_v11, %v1348_v46  ;;  %v1421_v37 = vadd.f32 %v1392_v12, %v1349_v47  ;;  %v1432_v54 = vcombine.low %v1412_v18, %v1413_v26  ;;  %v1433_v44 = vcombine.low %v1414_v21, %v1415_v22 }
 0x3cb   :  { %v1434_v59 = vcombine.low %v1416_v51, %v1417_v27  ;;  %v1435_v0 = vcombine.low %v1418_v53, %v1419_v33  ;;  %v7850_v19 = vmov 0.0  }
 0x3cc   :  { %v1442_v14 = vrot.slane %v1432_v54, %v6543_v16  ;;  %v1449_v57 = vrot.slane %v1433_v44, %v6543_v16  ;;  %v1481_v58 = vcombine.low %v1420_v35, %v1421_v37 }
 0x3cd   :  { %v1456_v4 = vrot.slane %v1434_v59, %v6543_v16  ;;  %v1463_v6 = vrot.slane %v1435_v0, %v6543_v16 }
 0x3ce   :  { %v1464_v5 = vcombine.low %v1442_v14, %v1449_v57  ;;  %v1488_v13 = vrot.slane %v1481_v58, %v6543_v16 }
 0x3cf   :  { %v1465_v7 = vcombine.low %v1456_v4, %v1463_v6 }
 0x3d0   :  { %v1472_v8 = vrot.slane %v1464_v5, %v6543_v16  ;;  %v1495_v12 = vrot.slane %v1488_v13, %v6543_v16 }
 0x3d1   :  { %v1479_v9 = vrot.slane %v1465_v7, %v6543_v16 }
 0x3d3   :  { %v1480_v11 = vcombine.low %v1472_v8, %v1479_v9 }
 0x3d5   :  { %v1498_v15 = vpack.c.bf16 %v1495_v12, %v1480_v11 }
 0x3d7   :  { %5941 = vmatmul.mubr.msk.bf16.vlgmr.msra.gmra.mrb[0].mxu1 %vm593_vm1, %v1498_v15 }
 0x3d8   :  { %5946 = vmatprep.mubr.msk.bf16.mxu1 %vm6431_vm3, %v7850_v19 }
 0x4aa   :  { %v1557_v39 = vpop.f32.mrb[0].mxu1 }
 0x4ab   :  { %v1558_v42 = vadd.f32 %v5748_v40, %v1557_v39  ;;  %v5942_v46 = vpop.f32.mrb[1].mxu1 }
 0x4ac   :  { %v1560_v47 = vpop.f32.mrb[2].mxu1 }
 0x4ad   :  { %v1566_v48 = vcombine.high %v1558_v42, %v1558_v42  ;;  %v1573_v49 = vrot.slane %v1558_v42, %v6543_v16  ;;  %v1561_v32 = vadd.f32 %v5748_v40, %v1560_v47  ;;  %v5943_v55 = vpop.f32.mrb[3].mxu1 }
 0x4af   :  { %v1580_v56 = vrot.slane %v1566_v48, %v6543_v16  ;;  %v1581_v36 = vcombine.high %v1573_v49, %v1573_v49  ;;  %v1589_v38 = vrot.slane %v1573_v49, %v6543_v16  ;;  %v1621_v41 = vrot.slane %v1561_v32, %v6543_v16 }
 0x4b1   :  { %v1582_v1 = vcombine.high %v1580_v56, %v1580_v56  ;;  %v1596_v10 = vrot.slane %v1580_v56, %v6543_v16  ;;  %v1603_v45 = vrot.slane %v1581_v36, %v6543_v16  ;;  %v1622_v17 = vcombine.high %v1621_v41, %v1621_v41  ;;  %1637 = vrot.lane.b32.xlu0 %v1589_v38, %s6432_s26 }
 0x4b2   :  { %v1629_v18 = vrot.slane %v1621_v41, %v6543_v16  ;;  %v1611_v21 = vcombine.high %v1589_v38, %v1589_v38 }
 0x4b3   :  { %v1610_v34 = vrot.slane %v1582_v1, %v6543_v16  ;;  %1639 = vrot.lane.b32.xlu1 %v1603_v45, %s6432_s26  ;;  %v1612_v20 = vcombine.high %v1596_v10, %v1596_v10  ;;  %v1636_v26 = vrot.slane %v1622_v17, %v6543_v16  ;;  %v1613_v0 = vcombine.high %v1603_v45, %v1603_v45 }
 0x4b4   :  { %v1697_v14 = vcombine.low %v1589_v38, %v1603_v45  ;;  %v5752_v57 = vcombine.high %v1589_v38, %v1603_v45  ;;  %v1719_v5 = vrot.slane %v1596_v10, %v6543_v16 }
 0x4b5   :  { %1657 = vrot.lane.b32.xlu0 %v1589_v38, %s6433_s27  ;;  %v1614_v22 = vcombine.high %v1610_v34, %v1610_v34  ;;  %v1736_v51 = vcombine.low %v1610_v34, %v1612_v20  ;;  %v1758_v35 = vrot.slane %v1636_v26, %v6543_v16 }
 0x4b6   :  { %v1705_v58 = vrot.slane %v1697_v14, %v6543_v16  ;;  %v1712_v4 = vrot.slane %v5752_v57, %v6543_v16  ;;  %v1734_v13 = vrot.slane %v1719_v5, %v6543_v16 }
 0x4b7   :  { %1641 = vrot.lane.b32.xlu1 %v1611_v21, %s6432_s26  ;;  %v1737_v27 = vcombine.low %v1614_v22, %v1629_v18  ;;  %v1744_v53 = vrot.slane %v1736_v51, %v6543_v16  ;;  %v1773_v44 = vrot.slane %v1758_v35, %v6543_v16 }
 0x4b8   :  { %v1720_v6 = vcombine.low %v1705_v58, %v1712_v4 }
 0x4b9   :  { %1677 = vrot.lane.b32.xlu0 %v1589_v38, %s6434_s28  ;;  %v1751_v33 = vrot.slane %v1737_v27, %v6543_v16 }
 0x4ba   :  { %v1727_v7 = vrot.slane %v1720_v6, %v6543_v16 }
 0x4bb   :  { %1659 = vrot.lane.b32.xlu1 %v1603_v45, %s6433_s27  ;;  %v1759_v37 = vcombine.low %v1744_v53, %v1751_v33 }
 0x4bc   :  { %v1735_v8 = vcombine.low %v1727_v7, %v1734_v13 }
 0x4bd   :  { %1645 = vrot.lane.b32.xlu0 %v1596_v10, %s6432_s26  ;;  %v1766_v54 = vrot.slane %v1759_v37, %v6543_v16 }
 0x4be   :  { %v6964_v9 = vpack.c.bf16 %v1735_v8, %v1735_v8 }
 0x4bf   :  { %1673 = vrot.lane.b32.xlu1 %v1629_v18, %s6433_s27  ;;  %v1774_v59 = vcombine.low %v1766_v54, %v1773_v44 }
 0x4c1   :  { %1653 = vrot.lane.b32.xlu0 %v1629_v18, %s6432_s26  ;;  %v6970_v11 = vpack.c.bf16 %v1774_v59, %v1774_v59 }
 0x4c3   :  { %1643 = vrot.lane.b32.xlu1 %v1613_v0, %s6432_s26 }
 0x4c5   :  { %1661 = vrot.lane.b32.xlu0 %v1611_v21, %s6433_s27 }
 0x4c7   :  { %1647 = vrot.lane.b32.xlu1 %v1610_v34, %s6432_s26 }
 0x4c9   :  { %1665 = vrot.lane.b32.xlu0 %v1596_v10, %s6433_s27 }
 0x4cb   :  { %1655 = vrot.lane.b32.xlu1 %v1636_v26, %s6432_s26 }
 0x4cd   :  { %1649 = vrot.lane.b32.xlu0 %v1612_v20, %s6432_s26 }
 0x4cf   :  { %1663 = vrot.lane.b32.xlu1 %v1613_v0, %s6433_s27 }
 0x4d1   :  { %1667 = vrot.lane.b32.xlu0 %v1610_v34, %s6433_s27 }
 0x4d3   :  { %1669 = vrot.lane.b32.xlu1 %v1612_v20, %s6433_s27 }
 0x4d5   :  { %1681 = vrot.lane.b32.xlu0 %v1611_v21, %s6434_s28 }
 0x4d7   :  { %1675 = vrot.lane.b32.xlu1 %v1636_v26, %s6433_s27 }
 0x4d9   :  { %1671 = vrot.lane.b32.xlu0 %v1614_v22, %s6433_s27 }
 0x4db   :  { %1651 = vrot.lane.b32.xlu1 %v1614_v22, %s6432_s26 }
 0x4dd   :  { %1687 = vrot.lane.b32.xlu0 %v1610_v34, %s6434_s28 }
 0x4df   :  { %1679 = vrot.lane.b32.xlu1 %v1603_v45, %s6434_s28 }
 0x4e1   :  { %1691 = vrot.lane.b32.xlu0 %v1614_v22, %s6434_s28 }
 0x4e3   :  { %1683 = vrot.lane.b32.xlu1 %v1613_v0, %s6434_s28 }
 0x4e5   :  { %1685 = vrot.lane.b32.xlu0 %v1596_v10, %s6434_s28 }
 0x4e7   :  { %1689 = vrot.lane.b32.xlu1 %v1612_v20, %s6434_s28 }
 0x4e9   :  { %2026 = vrot.lane.b32.xlu0 %v6964_v9, %s6435_s29 }
 0x4eb   :  { %1693 = vrot.lane.b32.xlu1 %v1629_v18, %s6434_s28 }
 0x4ef   :  { %1695 = vrot.lane.b32.xlu1 %v1636_v26, %s6434_s28 }
 0x4f3   :  { %2076 = vrot.lane.b32.xlu1 %v6970_v11, %s6435_s29 }
 0x523   :  { %v1638_v12 = vpop.permute.xlu0 %1637 }
 0x525   :  { %v1640_v15 = vpop.permute.xlu1 %1639 }
 0x526   :  { %v1775_v32 = vcombine.low %v1638_v12, %v1640_v15 }
 0x527   :  { %v1658_v40 = vpop.permute.xlu0 %1657 }
 0x528   :  { %v1783_v38 = vrot.slane %v1775_v32, %v6543_v16 }
 0x529   :  { %v1642_v39 = vpop.permute.xlu1 %1641 }
 0x52b   :  { %v6974_v42 = vpop.permute.xlu0 %1677 }
 0x52d   :  { %v1660_v46 = vpop.permute.xlu1 %1659 }
 0x52e   :  { %v1853_v22 = vcombine.low %v1658_v40, %v1660_v46 }
 0x52f   :  { %v1646_v47 = vpop.permute.xlu0 %1645 }
 0x530   :  { %v1797_v41 = vrot.slane %v1646_v47, %v6543_v16  ;;  %v1861_v35 = vrot.slane %v1853_v22, %v6543_v16 }
 0x531   :  { %v1674_v48 = vpop.permute.xlu1 %1673 }
 0x532   :  { %v1812_v34 = vrot.slane %v1797_v41, %v6543_v16 }
 0x533   :  { %v1654_v49 = vpop.permute.xlu0 %1653 }
 0x535   :  { %v1644_v55 = vpop.permute.xlu1 %1643 }
 0x536   :  { %v1776_v56 = vcombine.low %v1642_v39, %v1644_v55 }
 0x537   :  { %v1662_v36 = vpop.permute.xlu0 %1661 }
 0x538   :  { %v1790_v1 = vrot.slane %v1776_v56, %v6543_v16 }
 0x539   :  { %v1648_v10 = vpop.permute.xlu1 %1647 }
 0x53a   :  { %v1798_v45 = vcombine.low %v1783_v38, %v1790_v1 }
 0x53b   :  { %v1666_v17 = vpop.permute.xlu0 %1665 }
 0x53c   :  { %v1805_v20 = vrot.slane %v1798_v45, %v6543_v16  ;;  %v1875_v37 = vrot.slane %v1666_v17, %v6543_v16 }
 0x53d   :  { %v1656_v18 = vpop.permute.xlu1 %1655 }
 0x53e   :  { %v1813_v26 = vcombine.low %v1805_v20, %v1812_v34  ;;  %v1890_v14 = vrot.slane %v1875_v37, %v6543_v16  ;;  %v1836_v47 = vrot.slane %v1656_v18, %v6543_v16 }
 0x53f   :  { %v1650_v21 = vpop.permute.xlu0 %1649 }
 0x540   :  { %v6981_v51 = vpack.c.bf16 %v1813_v26, %v1813_v26  ;;  %v1814_v7 = vcombine.low %v1648_v10, %v1650_v21 }
 0x541   :  { %v1664_v27 = vpop.permute.xlu1 %1663 }
 0x542   :  { %v1854_v53 = vcombine.low %v1662_v36, %v1664_v27  ;;  %2125 = vrot.lane.b32.xlu0 %v6981_v51, %s6435_s29  ;;  %v1822_v32 = vrot.slane %v1814_v7, %v6543_v16 }
 0x543   :  { %v1668_v33 = vpop.permute.xlu0 %1667 }
 0x544   :  { %v1868_v54 = vrot.slane %v1854_v53, %v6543_v16 }
 0x545   :  { %v1670_v44 = vpop.permute.xlu1 %1669 }
 0x546   :  { %v1876_v59 = vcombine.low %v1861_v35, %v1868_v54  ;;  %v1892_v4 = vcombine.low %v1668_v33, %v1670_v44 }
 0x547   :  { %v1682_v0 = vpop.permute.xlu0 %1681 }
 0x548   :  { %v1883_v57 = vrot.slane %v1876_v59, %v6543_v16  ;;  %v1900_v15 = vrot.slane %v1892_v4, %v6543_v16 }
 0x549   :  { %v1676_v58 = vpop.permute.xlu1 %1675 }
 0x54a   :  { %v1891_v6 = vcombine.low %v1883_v57, %v1890_v14 }
 0x54b   :  { %v1672_v5 = vpop.permute.xlu0 %1671 }
 0x54c   :  { %v1893_v13 = vcombine.low %v1672_v5, %v1674_v48  ;;  %v6990_v8 = vpack.c.bf16 %v1891_v6, %v1891_v6  ;;  %v1914_v48 = vrot.slane %v1676_v58, %v6543_v16 }
 0x54d   :  { %v1652_v12 = vpop.permute.xlu1 %1651 }
 0x54e   :  { %v1907_v40 = vrot.slane %v1893_v13, %v6543_v16  ;;  %v1815_v39 = vcombine.low %v1652_v12, %v1654_v49  ;;  %2223 = vrot.lane.b32.xlu0 %v6990_v8, %s6435_s29  ;;  %v1851_v49 = vrot.slane %v1836_v47, %v6543_v16  ;;  %v1929_v17 = vrot.slane %v1914_v48, %v6543_v16 }
 0x54f   :  { %v1688_v46 = vpop.permute.xlu0 %1687 }
 0x550   :  { %v1915_v55 = vcombine.low %v1900_v15, %v1907_v40  ;;  %v1829_v56 = vrot.slane %v1815_v39, %v6543_v16 }
 0x551   :  { %v1680_v36 = vpop.permute.xlu1 %1679 }
 0x552   :  { %v1837_v38 = vcombine.low %v1822_v32, %v1829_v56  ;;  %v1922_v1 = vrot.slane %v1915_v55, %v6543_v16  ;;  %v1931_v10 = vcombine.low %v6974_v42, %v1680_v36 }
 0x553   :  { %v1692_v41 = vpop.permute.xlu0 %1691 }
 0x554   :  { %v1844_v45 = vrot.slane %v1837_v38, %v6543_v16  ;;  %v1930_v21 = vcombine.low %v1922_v1, %v1929_v17  ;;  %v1939_v22 = vrot.slane %v1931_v10, %v6543_v16 }
 0x555   :  { %v1684_v34 = vpop.permute.xlu1 %1683 }
 0x556   :  { %v1932_v20 = vcombine.low %v1682_v0, %v1684_v34  ;;  %v1852_v18 = vcombine.low %v1844_v45, %v1851_v49  ;;  %v7012_v54 = vpack.c.bf16 %v1930_v21, %v1930_v21 }
 0x557   :  { %v1686_v26 = vpop.permute.xlu0 %1685 }
 0x558   :  { %v1946_v27 = vrot.slane %v1932_v20, %v6543_v16  ;;  %v1953_v53 = vrot.slane %v1686_v26, %v6543_v16  ;;  %v7008_v33 = vpack.c.bf16 %v1852_v18, %v1852_v18 }
 0x559   :  { %v1690_v35 = vpop.permute.xlu1 %1689 }
 0x55a   :  { %v1954_v42 = vcombine.low %v1939_v22, %v1946_v27  ;;  %2174 = vrot.lane.b32.xlu1 %v7008_v33, %s6435_s29  ;;  %v1968_v44 = vrot.slane %v1953_v53, %v6543_v16  ;;  %v1970_v59 = vcombine.low %v1688_v46, %v1690_v35 }
 0x55b   :  { %v2027_v37 = vpop.permute.xlu0 %2026 }
 0x55c   :  { %v2033_v0 = vsel %vm2028_vm4, %v2027_v37, 0  ;;  %v1961_v14 = vrot.slane %v1954_v42, %v6543_v16  ;;  %v1978_v6 = vrot.slane %v1970_v59, %v6543_v16 }
 0x55d   :  { %5945 = vmatpush3.bf16.xpose.msra.mxu1 %v2033_v0  ;;  %v1694_v57 = vpop.permute.xlu1 %1693 }
 0x55e   :  { %v1971_v58 = vcombine.low %v1692_v41, %v1694_v57  ;;  %2272 = vrot.lane.b32.xlu1 %v7012_v54, %s6435_s29  ;;  %v1969_v4 = vcombine.low %v1961_v14, %v1968_v44  ;;  %5950 = vmatprep.subr.bf16.mxu1 %v7850_v19 }
 0x560   :  { %v1985_v5 = vrot.slane %v1971_v58, %v6543_v16  ;;  %v7022_v7 = vpack.c.bf16 %v1969_v4, %v1969_v4 }
 0x561   :  { %v1696_v13 = vpop.permute.xlu1 %1695 }
 0x562   :  { %v1993_v12 = vcombine.low %v1978_v6, %v1985_v5  ;;  %v1992_v15 = vrot.slane %v1696_v13, %v6543_v16  ;;  %2321 = vrot.lane.b32.xlu0 %v7022_v7, %s6435_s29 }
 0x564   :  { %v2007_v40 = vrot.slane %v1992_v15, %v6543_v16  ;;  %5947 = vmatmul.mubr.msk.bf16.vlgmr.msra.gmra.mrb[4].mxu1 %vm2028_vm4, %v6964_v9  ;;  %v2000_v39 = vrot.slane %v1993_v12, %v6543_v16 }
 0x565   :  { %v2077_v46 = vpop.permute.xlu1 %2076  ;;  %5952 = vmatprep.mubr.msk.bf16.mxu1 %vm6431_vm3, %v7850_v19 }
 0x566   :  { %v2082_v47 = vsel %vm2028_vm4, %v2077_v46, 0  ;;  %v2008_v32 = vcombine.low %v2000_v39, %v2007_v40 }
 0x567   :  { %5951 = vmatpush3.bf16.xpose.msra.mxu1 %v2082_v47 }
 0x568   :  { %v7034_v55 = vpack.c.bf16 %v2008_v32, %v2008_v32  ;;  %5956 = vmatprep.subr.bf16.mxu1 %v7850_v19 }
 0x56a   :  { %2370 = vrot.lane.b32.xlu1 %v7034_v55, %s6435_s29 }
 0x56e   :  { %5953 = vmatmul.mubr.msk.bf16.vlgmr.msra.gmra.mrb[8].mxu1 %vm2028_vm4, %v6970_v11 }
 0x56f   :  { %5958 = vmatprep.mubr.msk.bf16.mxu1 %vm6431_vm3, %v7850_v19 }
 0x5b4   :  { %v2126_v56 = vpop.permute.xlu0 %2125 }
 0x5b5   :  { %v2131_v48 = vsel %vm2028_vm4, %v2126_v56, 0 }
 0x5b6   :  { %5957 = vmatpush3.bf16.xpose.msra.mxu1 %v2131_v48 }
 0x5b7   :  { %5962 = vmatprep.subr.bf16.mxu1 %v7850_v19 }
 0x5bd   :  { %5959 = vmatmul.mubr.msk.bf16.vlgmr.msra.gmra.mrb[12].mxu1 %vm2028_vm4, %v6981_v51 }
 0x5be   :  { %5964 = vmatprep.mubr.msk.bf16.mxu1 %vm6431_vm3, %v7850_v19 }
 0x5c0   :  { %v2224_v49 = vpop.permute.xlu0 %2223 }
 0x5c1   :  { %v2229_v10 = vsel %vm2028_vm4, %v2224_v49, 0 }
 0x5cc   :  { %v2175_v36 = vpop.permute.xlu1 %2174 }
 0x5cd   :  { %v2180_v38 = vsel %vm2028_vm4, %v2175_v36, 0 }
 0x5ce   :  { %5963 = vmatpush3.bf16.xpose.msra.mxu1 %v2180_v38 }
 0x5cf   :  { %5968 = vmatprep.subr.bf16.mxu1 %v7850_v19 }
 0x5d0   :  { %v2273_v41 = vpop.permute.xlu1 %2272 }
 0x5d1   :  { %v2278_v1 = vsel %vm2028_vm4, %v2273_v41, 0 }
 0x5d2   :  { %5975 = vmatpush3.bf16.xpose.msra.mxu0 %v2278_v1 }
 0x5d3   :  { %5986 = vmatprep.subr.bf16.mxu0 %v7850_v19 }
 0x5d4   :  { %v2322_v45 = vpop.permute.xlu0 %2321 }
 0x5d5   :  { %5965 = vmatmul.mubr.msk.bf16.vlgmr.msra.gmra.mrb[16].mxu1 %vm2028_vm4, %v7008_v33  ;;  %v2327_v34 = vsel %vm2028_vm4, %v2322_v45, 0 }
 0x5d6   :  { %5969 = vmatpush3.bf16.xpose.msra.mxu1 %v2229_v10  ;;  %5970 = vmatprep.mubr.msk.bf16.mxu1 %vm6431_vm3, %v7850_v19 }
 0x5d7   :  { %5980 = vmatprep.subr.bf16.mxu1 %v7850_v19 }
 0x5d9   :  { %5977 = vmatmul.mubr.msk.bf16.vlgmr.msra.gmra.mrb[4].mxu0 %vm2028_vm4, %v7012_v54 }
 0x5da   :  { %5988 = vmatprep.mubr.msk.bf16.mxu0 %vm6431_vm3, %v7850_v19 }
 0x5dc   :  { %v2371_v17 = vpop.permute.xlu1 %2370 }
 0x5dd   :  { %v2376_v20 = vsel %vm2028_vm4, %v2371_v17, 0  ;;  %5971 = vmatmul.mubr.msk.bf16.vlgmr.msra.gmra.mrb[20].mxu1 %vm2028_vm4, %v6990_v8 }
 0x5de   :  { %5981 = vmatpush3.bf16.xpose.msra.mxu1 %v2327_v34  ;;  %5987 = vmatpush3.bf16.xpose.msra.mxu0 %v2376_v20 }
 0x5df   :  { %5982 = vmatprep.mubr.msk.bf16.mxu1 %vm6431_vm3, %v7850_v19  ;;  %5992 = vmatprep.subr.bf16.mxu1 %v7850_v19 }
 0x5e0   :  { %5998 = vmatprep.subr.bf16.mxu0 %v7850_v19 }
 0x5e5   :  { %5983 = vmatmul.mubr.msk.bf16.vlgmr.msra.gmra.mrb[24].mxu1 %vm2028_vm4, %v7022_v7  ;;  %5989 = vmatmul.mubr.msk.bf16.vlgmr.msra.gmra.mrb[8].mxu0 %vm2028_vm4, %v7034_v55 }
 0x5e6   :  { %5994 = vmatprep.mubr.msk.bf16.mxu1 %vm6431_vm3, %v7850_v19  ;;  %6000 = vmatprep.mubr.msk.bf16.mxu0 %vm6431_vm3, %v7850_v19 }
 0x637   :  { %v2069_v18 = vpop.f32.mrb[4].mxu1 }
 0x638   :  { %v2418_v26 = vmul.f32 0.35355338, %v2069_v18  ;;  %v5948_v21 = vpop.f32.mrb[5].mxu1 }
 0x639   :  { %v2072_v22 = vpop.f32.mrb[6].mxu1 }
 0x63a   :  { %v5949_v27 = vpop.f32.mrb[7].mxu1  ;;  %v2427_v53 = vsel %vm2426_vm5, %v2418_v26, -inf }
 0x63b   :  { %2428 = vmax.xlane.f32.xlu0 %v2427_v53 }
 0x641   :  { %v2118_v35 = vpop.f32.mrb[8].mxu1 }
 0x642   :  { %v2419_v42 = vmul.f32 0.35355338, %v2118_v35  ;;  %v5954_v37 = vpop.f32.mrb[9].mxu1 }
 0x643   :  { %v2121_v44 = vpop.f32.mrb[10].mxu1 }
 0x644   :  { %v5955_v59 = vpop.f32.mrb[11].mxu1  ;;  %v2430_v0 = vsel %vm2426_vm5, %v2419_v42, -inf }
 0x645   :  { %2431 = vmax.xlane.f32.xlu1 %v2430_v0 }
 0x690   :  { %v2167_v14 = vpop.f32.mrb[12].mxu1 }
 0x691   :  { %v7081_v57 = vmul.f32 0.35355338, %v2167_v14  ;;  %v5960_v58 = vpop.f32.mrb[13].mxu1 }
 0x692   :  { %v2170_v4 = vpop.f32.mrb[14].mxu1 }
 0x693   :  { %v5961_v6 = vpop.f32.mrb[15].mxu1  ;;  %v2433_v5 = vsel %vm2426_vm5, %v7081_v57, -inf }
 0x694   :  { %2434 = vmax.xlane.f32.xlu0 %v2433_v5 }
 0x6a8   :  { %v2216_v13 = vpop.f32.mrb[16].mxu1 }
 0x6a9   :  { %v7085_v12 = vmul.f32 0.35355338, %v2216_v13  ;;  %v5966_v15 = vpop.f32.mrb[17].mxu1 }
 0x6aa   :  { %v2219_v40 = vpop.f32.mrb[18].mxu1 }
 0x6ab   :  { %v5967_v39 = vpop.f32.mrb[19].mxu1  ;;  %v2436_v46 = vsel %vm2426_vm5, %v7085_v12, -inf }
 0x6ac   :  { %2437 = vmax.xlane.f32.xlu0 %v2436_v46  ;;  %v2314_v47 = vpop.f32.mrb[4].mxu0 }
 0x6ad   :  { %v2423_v32 = vmul.f32 0.35355338, %v2314_v47  ;;  %v5978_v56 = vpop.f32.mrb[5].mxu0 }
 0x6ae   :  { %v2317_v48 = vpop.f32.mrb[6].mxu0 }
 0x6af   :  { %v5979_v36 = vpop.f32.mrb[7].mxu0  ;;  %v2442_v38 = vsel %vm2426_vm5, %v2423_v32, -inf }
 0x6b0   :  { %v2265_v41 = vpop.f32.mrb[20].mxu1  ;;  %2443 = vmax.xlane.f32.xlu1 %v2442_v38 }
 0x6b1   :  { %v7090_v1 = vmul.f32 0.35355338, %v2265_v41  ;;  %v5972_v49 = vpop.f32.mrb[21].mxu1 }
 0x6b2   :  { %v2268_v10 = vpop.f32.mrb[22].mxu1 }
 0x6b3   :  { %v5973_v45 = vpop.f32.mrb[23].mxu1  ;;  %v2439_v17 = vsel %vm2426_vm5, %v7090_v1, -inf }
 0x6b4   :  { %2440 = vmax.xlane.f32.xlu0 %v2439_v17 }
 0x6b8   :  { %v2363_v34 = vpop.f32.mrb[24].mxu1  ;;  %v2412_v20 = vpop.f32.mrb[8].mxu0 }
 0x6b9   :  { %v7094_v18 = vmul.f32 0.35355338, %v2363_v34  ;;  %v2425_v21 = vmul.f32 0.35355338, %v2412_v20  ;;  %v5984_v22 = vpop.f32.mrb[25].mxu1  ;;  %v5990_v27 = vpop.f32.mrb[9].mxu0 }
 0x6ba   :  { %v2366_v53 = vpop.f32.mrb[26].mxu1  ;;  %v2415_v35 = vpop.f32.mrb[10].mxu0 }
 0x6bb   :  { %v5985_v37 = vpop.f32.mrb[27].mxu1  ;;  %v5991_v44 = vpop.f32.mrb[11].mxu0  ;;  %v2445_v59 = vsel %vm2426_vm5, %v7094_v18, -inf  ;;  %v2448_v0 = vsel %vm2426_vm5, %v2425_v21, -inf }
 0x6bc   :  { %2446 = vmax.xlane.f32.xlu0 %v2445_v59  ;;  %2449 = vmax.xlane.f32.xlu1 %v2448_v0 }
 0x6c8   :  { %v2429_v14 = vpop.xlane.xlu0 %2428 }
 0x6c9   :  { %v2451_v58 = vsub.f32 %v2418_v26, %v2429_v14 }
 0x6cb   :  { %v2459_v4 = vmul.f32 1.442695, %v2451_v58 }
 0x6cd   :  { %2576 = vrot.lane.b32.xlu1 %v6970_v11, %s6436_s30  ;;  %6313 = vpow2.f32 %v2459_v4 }
 0x6d1   :  { %2624 = vrot.lane.b32.xlu1 %v6981_v51, %s6436_s30 }
 0x6d2   :  { %2523 = vrot.lane.b32.xlu0 %v6964_v9, %s6436_s30  ;;  %v2432_v6 = vpop.xlane.xlu1 %2431 }
 0x6d3   :  { %v2452_v5 = vsub.f32 %v2419_v42, %v2432_v6 }
 0x6d5   :  { %2672 = vrot.lane.b32.xlu1 %v7008_v33, %s6436_s30  ;;  %v2461_v13 = vmul.f32 1.442695, %v2452_v5 }
 0x6d7   :  { %6315 = vpow2.f32 %v2461_v13  ;;  %v7107_v15 = vpop.eup %6313 }
 0x6d8   :  { %v2475_v11 = vsel %vm2426_vm5, %v7107_v15, 0.0 }
 0x6e1   :  { %v7111_v51 = vpop.eup %6315 }
 0x6e2   :  { %v2478_v9 = vsel %vm2426_vm5, %v7111_v51, 0.0 }
 0x6f1   :  { %2476 = vadd.xlane.f32.xlu0 %v2475_v11 }
 0x6f9   :  { %2479 = vadd.xlane.f32.xlu1 %v2478_v9 }
 0x70a   :  { %2768 = vrot.lane.b32.xlu1 %v7012_v54, %s6436_s30 }
 0x721   :  { %v2435_v33 = vpop.xlane.xlu0 %2434 }
 0x722   :  { %v2453_v26 = vsub.f32 %v7081_v57, %v2435_v33  ;;  %v6437_v57 = vmov 65535  }
 0x723   :  { %v2531_v41 = vsel %vm2529_vm6, 4294967295, %v6437_v57 }
 0x724   :  { %v2463_v42 = vmul.f32 1.442695, %v2453_v26  ;;  %v7125_v17 = vsel %vm2530_vm7, %v2531_v41, 0 }
 0x726   :  { %6317 = vpow2.f32 %v2463_v42 }
 0x730   :  { %v7118_v40 = vpop.eup %6317 }
 0x731   :  { %v2481_v39 = vsel %vm2426_vm5, %v7118_v40, 0.0 }
 0x732   :  { %2482 = vadd.xlane.f32.xlu0 %v2481_v39 }
 0x739   :  { %v2438_v46 = vpop.xlane.xlu0 %2437 }
 0x73a   :  { %v2454_v47 = vsub.f32 %v7085_v12, %v2438_v46 }
 0x73c   :  { %v2465_v36 = vmul.f32 1.442695, %v2454_v47 }
 0x73d   :  { %v2444_v56 = vpop.xlane.xlu1 %2443 }
 0x73e   :  { %v2456_v48 = vsub.f32 %v2423_v32, %v2444_v56 }
 0x740   :  { %v2469_v38 = vmul.f32 1.442695, %v2456_v48 }
 0x741   :  { %v2441_v54 = vpop.xlane.xlu0 %2440 }
 0x742   :  { %6319 = vpow2.f32 %v2469_v38 }
 0x743   :  { %6321 = vpow2.f32 %v2465_v36 }
 0x748   :  { %2720 = vrot.lane.b32.xlu0 %v6990_v8, %s6436_s30 }
 0x749   :  { %v2447_v49 = vpop.xlane.xlu0 %2446  ;;  %v2450_v10 = vpop.xlane.xlu1 %2449 }
 0x74a   :  { %v2458_v45 = vsub.f32 %v2425_v21, %v2450_v10  ;;  %v2455_v21 = vsub.f32 %v7090_v1, %v2441_v54  ;;  %v2457_v44 = vsub.f32 %v7094_v18, %v2447_v49 }
 0x74c   :  { %v7127_v12 = vpop.eup %6319  ;;  %v2473_v32 = vmul.f32 1.442695, %v2458_v45  ;;  %v2467_v37 = vmul.f32 1.442695, %v2455_v21  ;;  %v2471_v0 = vmul.f32 1.442695, %v2457_v44 }
 0x74d   :  { %v2524_v34 = vpop.permute.xlu0 %2523  ;;  %v2577_v20 = vpop.permute.xlu1 %2576  ;;  %v2490_v22 = vsel %vm2426_vm5, %v7127_v12, 0.0 }
 0x74e   :  { %v7131_v27 = vpop.eup %6321  ;;  %v2534_v8 = vand.u32 %v7125_v17, %v2524_v34  ;;  %v2582_v53 = vand.u32 %v2577_v20, %v7125_v17  ;;  %2491 = vadd.xlane.f32.xlu1 %v2490_v22  ;;  %6323 = vpow2.f32 %v2473_v32 }
 0x74f   :  { %v2484_v35 = vsel %vm2426_vm5, %v7131_v27, 0.0  ;;  %6325 = vpow2.f32 %v2467_v37 }
 0x750   :  { %5993 = vmatpush3.bf16.msra.mxu1 %v2534_v8  ;;  %5999 = vmatpush3.bf16.msra.mxu0 %v2582_v53  ;;  %6327 = vpow2.f32 %v2471_v0 }
 0x751   :  { %6004 = vmatprep.subr.bf16.mxu1 %v7850_v19  ;;  %6010 = vmatprep.subr.bf16.mxu0 %v7850_v19  ;;  %v2625_v6 = vpop.permute.xlu1 %2624 }
 0x752   :  { %2485 = vadd.xlane.f32.xlu1 %v2484_v35  ;;  %v2630_v42 = vand.u32 %v2625_v6, %v7125_v17 }
 0x755   :  { %v2673_v13 = vpop.permute.xlu1 %2672 }
 0x756   :  { %v2678_v46 = vand.u32 %v2673_v13, %v7125_v17 }
 0x758   :  { %v7141_v59 = vpop.eup %6323 }
 0x759   :  { %v2496_v14 = vsel %vm2426_vm5, %v7141_v59, 0.0  ;;  %v7145_v1 = vpop.eup %6325 }
 0x75a   :  { %2497 = vadd.xlane.f32.xlu1 %v2496_v14  ;;  %v2487_v58 = vsel %vm2426_vm5, %v7145_v1, 0.0  ;;  %v7149_v4 = vpop.eup %6327 }
 0x75b   :  { %v2493_v18 = vsel %vm2426_vm5, %v7149_v4, 0.0 }
 0x767   :  { %2488 = vadd.xlane.f32.xlu0 %v2487_v58 }
 0x76b   :  { %2494 = vadd.xlane.f32.xlu0 %v2493_v18  ;;  %2864 = vrot.lane.b32.xlu1 %v7034_v55, %s6436_s30 }
 0x77e   :  { %v2477_v5 = vpop.xlane.xlu0 %2476 }
 0x77f   :  { %6329 = vrcp.f32 %v2477_v5 }
 0x781   :  { %2816 = vrot.lane.b32.xlu0 %v7022_v7, %s6436_s30 }
 0x786   :  { %v2480_v11 = vpop.xlane.xlu1 %2479 }
 0x787   :  { %6331 = vrcp.f32 %v2480_v11 }
 0x789   :  { %v6330_v9 = vpop.eup %6329 }
 0x78a   :  { %v2507_v33 = vmul.f32 %v6330_v9, %v7107_v15  ;;  %v2769_v38 = vpop.permute.xlu1 %2768 }
 0x78b   :  { %v2774_v32 = vand.u32 %v2769_v38, %v7125_v17 }
 0x78c   :  { %v2515_v26 = vpack.c.bf16 %v2507_v33, %v2507_v33 }
 0x78e   :  { %5995 = vmatmul.mubr.msk.bf16.vlgmr.msra.gmra.mrb[28].mxu1 %vm2525_vm8, %v2515_v26 }
 0x78f   :  { %6005 = vmatpush3.bf16.msra.mxu1 %v2630_v42  ;;  %6006 = vmatprep.mubr.msk.bf16.mxu1 %vm6431_vm3, %v7850_v19 }
 0x790   :  { %6016 = vmatprep.subr.bf16.mxu1 %v7850_v19 }
 0x791   :  { %v6332_v55 = vpop.eup %6331 }
 0x792   :  { %v2508_v7 = vmul.f32 %v6332_v55, %v7111_v51 }
 0x794   :  { %v2516_v39 = vpack.c.bf16 %v2508_v7, %v2508_v7 }
 0x796   :  { %6001 = vmatmul.mubr.msk.bf16.vlgmr.msra.gmra.mrb[12].mxu0 %vm2525_vm8, %v2516_v39 }
 0x797   :  { %6011 = vmatpush3.bf16.msra.mxu0 %v2678_v46  ;;  %6012 = vmatprep.mubr.msk.bf16.mxu0 %vm6431_vm3, %v7850_v19 }
 0x798   :  { %6022 = vmatprep.subr.bf16.mxu0 %v7850_v19 }
 0x7bf   :  { %v2483_v15 = vpop.xlane.xlu0 %2482 }
 0x7c0   :  { %6333 = vrcp.f32 %v2483_v15 }
 0x7c3   :  { %v2721_v48 = vpop.permute.xlu0 %2720 }
 0x7c4   :  { %v2726_v51 = vand.u32 %v2721_v48, %v7125_v17 }
 0x7ca   :  { %v6334_v47 = vpop.eup %6333 }
 0x7cb   :  { %v2509_v56 = vmul.f32 %v6334_v47, %v7118_v40 }
 0x7cd   :  { %v2517_v36 = vpack.c.bf16 %v2509_v56, %v2509_v56 }
 0x7cf   :  { %6007 = vmatmul.mubr.msk.bf16.vlgmr.msra.gmra.mrb[32].mxu1 %vm2525_vm8, %v2517_v36 }
 0x7d0   :  { %6017 = vmatpush3.bf16.msra.mxu1 %v2726_v51  ;;  %6018 = vmatprep.mubr.msk.bf16.mxu1 %vm6431_vm3, %v7850_v19 }
 0x7d1   :  { %6028 = vmatprep.subr.bf16.mxu1 %v7850_v19 }
 0x7db   :  { %v2492_v54 = vpop.xlane.xlu1 %2491 }
 0x7df   :  { %v2486_v57 = vpop.xlane.xlu1 %2485 }
 0x7e0   :  { %6335 = vrcp.f32 %v2486_v57 }
 0x7e1   :  { %6337 = vrcp.f32 %v2492_v54 }
 0x7e7   :  { %v2498_v41 = vpop.xlane.xlu1 %2497 }
 0x7e8   :  { %6339 = vrcp.f32 %v2498_v41 }
 0x7ea   :  { %v6336_v49 = vpop.eup %6335 }
 0x7eb   :  { %v2510_v40 = vmul.f32 %v6336_v49, %v7131_v27  ;;  %v6338_v45 = vpop.eup %6337  ;;  %v2865_v20 = vpop.permute.xlu1 %2864 }
 0x7ec   :  { %v2512_v34 = vmul.f32 %v6338_v45, %v7127_v12  ;;  %v2870_v53 = vand.u32 %v2865_v20, %v7125_v17  ;;  %v6283_v20 = vld [vmem:[%s7829_s2 + $0x4] ss:$16 sps:$4 sm:$0xff]  }
 0x7ed   :  { %v2518_v10 = vpack.c.bf16 %v2510_v40, %v2510_v40 }
 0x7ee   :  { %v2520_v8 = vpack.c.bf16 %v2512_v34, %v2512_v34 }
 0x7ef   :  { %6013 = vmatmul.mubr.msk.bf16.vlgmr.msra.gmra.mrb[16].mxu0 %vm2525_vm8, %v2518_v10 }
 0x7f0   :  { %6023 = vmatpush3.bf16.msra.mxu0 %v2774_v32  ;;  %6024 = vmatprep.mubr.msk.bf16.mxu0 %vm6431_vm3, %v7850_v19 }
 0x7f1   :  { %6034 = vmatprep.subr.bf16.mxu0 %v7850_v19 }
 0x7f2   :  { %v6340_v27 = vpop.eup %6339 }
 0x7f3   :  { %v2514_v35 = vmul.f32 %v6340_v27, %v7141_v59  ;;  %v6284_v27 = vld [vmem:[%s7829_s2 + $0x24] ss:$16 sps:$4 sm:$0xff]  }
 0x7f4   :  { %v2489_v22 = vpop.xlane.xlu0 %2488 }
 0x7f5   :  { %6341 = vrcp.f32 %v2489_v22  ;;  %v2522_v12 = vpack.c.bf16 %v2514_v35, %v2514_v35 }
 0x7f7   :  { %6025 = vmatmul.mubr.msk.bf16.vlgmr.msra.gmra.mrb[20].mxu0 %vm2525_vm8, %v2520_v8 }
 0x7f8   :  { %6035 = vmatpush3.bf16.msra.mxu0 %v2870_v53  ;;  %v2495_v21 = vpop.xlane.xlu0 %2494  ;;  %6036 = vmatprep.mubr.msk.bf16.mxu0 %vm6431_vm3, %v7850_v19 }
 0x7f9   :  { %6343 = vrcp.f32 %v2495_v21  ;;  %6048 = vmatprep.subr.bf16.mxu0 %v7850_v19 }
 0x7fc   :  { %v2817_v0 = vpop.permute.xlu0 %2816 }
 0x7fd   :  { %v2822_v18 = vand.u32 %v2817_v0, %v7125_v17 }
 0x7ff   :  { %v6342_v37 = vpop.eup %6341  ;;  %6037 = vmatmul.mubr.msk.bf16.vlgmr.msra.gmra.mrb[24].mxu0 %vm2525_vm8, %v2522_v12 }
 0x800   :  { %v2511_v44 = vmul.f32 %v6342_v37, %v7145_v1  ;;  %6052 = vmatprep.mubr.msk.bf16.mxu0 %vm6431_vm3, %v7850_v19 }
 0x802   :  { %v2519_v14 = vpack.c.bf16 %v2511_v44, %v2511_v44 }
 0x803   :  { %v6344_v58 = vpop.eup %6343 }
 0x804   :  { %6019 = vmatmul.mubr.msk.bf16.vlgmr.msra.gmra.mrb[36].mxu1 %vm2525_vm8, %v2519_v14  ;;  %v2513_v59 = vmul.f32 %v6344_v58, %v7149_v4 }
 0x805   :  { %6029 = vmatpush3.bf16.msra.mxu1 %v2822_v18  ;;  %6030 = vmatprep.mubr.msk.bf16.mxu1 %vm6431_vm3, %v7850_v19 }
 0x806   :  { %6040 = vmatprep.subr.bf16.mxu1 %v7850_v19  ;;  %v2521_v6 = vpack.c.bf16 %v2513_v59, %v2513_v59 }
 0x80c   :  { %6031 = vmatmul.mubr.msk.bf16.vlgmr.msra.gmra.mrb[40].mxu1 %vm2525_vm8, %v2521_v6 }
 0x80d   :  { %6044 = vmatprep.mubr.msk.bf16.mxu1 %vm6431_vm3, %v7850_v19  ;;  %6041 = vmatpush3.bf16.msra.mxu1 %v6283_v20 }
 0x80e   :  { %6042 = vmatprep.subr.bf16.mxu1 %v7850_v19 }
 0x811   :  { %6043 = vmatpush3.bf16.msra.mxu1 %v6284_v27  ;;  %v5770_v27 = vld [vmem:[%s7831_s4 + $0x9] ss:$0 sm:$0xff] }
 0x812   :  { %6056 = vmatprep.subr.bf16.mxu1 %v7850_v19 }
 0x861   :  { %v2570_v1 = vpop.f32.mrb[28].mxu1 }
 0x862   :  { %v5996_v5 = vpop.f32.mrb[29].mxu1 }
 0x863   :  { %v2573_v13 = vpop.f32.mrb[30].mxu1 }
 0x864   :  { %v5997_v17 = vpop.f32.mrb[31].mxu1 }
 0x869   :  { %v2618_v11 = vpop.f32.mrb[12].mxu0 }
 0x86a   :  { %v6002_v9 = vpop.f32.mrb[13].mxu0 }
 0x86b   :  { %v2621_v33 = vpop.f32.mrb[14].mxu0 }
 0x86c   :  { %v6003_v26 = vpop.f32.mrb[15].mxu0 }
 0x8a2   :  { %v2666_v42 = vpop.f32.mrb[32].mxu1 }
 0x8a3   :  { %2914 = vrot.lane.b32.xlu0 %v2666_v42, %s6438_s12  ;;  %v6008_v4 = vpop.f32.mrb[33].mxu1 }
 0x8a4   :  { %v2669_v55 = vpop.f32.mrb[34].mxu1 }
 0x8a5   :  { %v6009_v7 = vpop.f32.mrb[35].mxu1 }
 0x8c2   :  { %v2714_v39 = vpop.f32.mrb[16].mxu0 }
 0x8c3   :  { %2916 = vrot.lane.b32.xlu1 %v2714_v39, %s6438_s12  ;;  %v6014_v46 = vpop.f32.mrb[17].mxu0 }
 0x8c4   :  { %v2717_v15 = vpop.f32.mrb[18].mxu0 }
 0x8c5   :  { %v6015_v47 = vpop.f32.mrb[19].mxu0 }
 0x8ca   :  { %v2810_v56 = vpop.f32.mrb[20].mxu0 }
 0x8cb   :  { %2924 = vrot.lane.b32.xlu1 %v2810_v56, %s6439_s13  ;;  %v6026_v48 = vpop.f32.mrb[21].mxu0 }
 0x8cc   :  { %v2813_v36 = vpop.f32.mrb[22].mxu0 }
 0x8cd   :  { %v6027_v51 = vpop.f32.mrb[23].mxu0 }
 0x8d2   :  { %v2906_v38 = vpop.f32.mrb[24].mxu0 }
 0x8d3   :  { %2932 = vrot.lane.b32.xlu1 %v2906_v38, %s6440_s14  ;;  %v6038_v54 = vpop.f32.mrb[25].mxu0 }
 0x8d4   :  { %v2909_v57 = vpop.f32.mrb[26].mxu0 }
 0x8d5   :  { %v6039_v41 = vpop.f32.mrb[27].mxu0 }
 0x8d7   :  { %v2762_v49 = vpop.f32.mrb[36].mxu1 }
 0x8d8   :  { %2922 = vrot.lane.b32.xlu0 %v2762_v49, %s6439_s13  ;;  %v6020_v40 = vpop.f32.mrb[37].mxu1 }
 0x8d9   :  { %v2765_v10 = vpop.f32.mrb[38].mxu1 }
 0x8da   :  { %v6021_v45 = vpop.f32.mrb[39].mxu1 }
 0x8df   :  { %v2858_v32 = vpop.f32.mrb[40].mxu1 }
 0x8e0   :  { %2930 = vrot.lane.b32.xlu0 %v2858_v32, %s6440_s14  ;;  %v6032_v34 = vpop.f32.mrb[41].mxu1 }
 0x8e1   :  { %v2861_v22 = vpop.f32.mrb[42].mxu1 }
 0x8e2   :  { %v6033_v8 = vpop.f32.mrb[43].mxu1 }
 0x915   :  { %v2915_v0 = vpop.permute.xlu0 %2914 }
 0x916   :  { %v2936_v5 = vsel %vm2028_vm4, %v2570_v1, %v2915_v0 }
 0x935   :  { %v2917_v53 = vpop.permute.xlu1 %2916 }
 0x936   :  { %v2937_v35 = vsel %vm2028_vm4, %v2618_v11, %v2917_v53 }
 0x93d   :  { %v2925_v21 = vpop.permute.xlu1 %2924 }
 0x93e   :  { %v2940_v37 = vsel %vm2938_vm9, %v2937_v35, %v2925_v21 }
 0x945   :  { %v2933_v12 = vpop.permute.xlu1 %2932 }
 0x946   :  { %v2943_v44 = vsel %vm2941_vm10, %v2940_v37, %v2933_v12 }
 0x947   :  { %v2992_v14 = vrot.slane %v2943_v44, %v6543_v16  ;;  %v2985_v59 = vcombine.high %v2943_v44, %v2943_v44 }
 0x949   :  { %v3000_v58 = vcombine.high %v2992_v14, %v2992_v14  ;;  %v3007_v6 = vrot.slane %v2992_v14, %v6543_v16  ;;  %v2999_v9 = vrot.slane %v2985_v59, %v6543_v16 }
 0x94a   :  { %v2923_v18 = vpop.permute.xlu0 %2922 }
 0x94b   :  { %v3021_v13 = vrot.slane %v3000_v58, %v6543_v16  ;;  %v2939_v17 = vsel %vm2938_vm9, %v2936_v5, %v2923_v18  ;;  %v3022_v26 = vcombine.high %v3007_v6, %v3007_v6  ;;  %v3014_v46 = vrot.slane %v2999_v9, %v6543_v16 }
 0x94d   :  { %v3023_v55 = vcombine.high %v3021_v13, %v3021_v13  ;;  %v3027_v1 = vcombine.low %v3021_v13, %v3022_v26 }
 0x94f   :  { %v3073_v48 = vcombine.low %v3023_v55, %v3014_v46  ;;  %v3055_v54 = vrot.slane %v3027_v1, %v6543_v16 }
 0x951   :  { %v3080_v40 = vrot.slane %v3073_v48, %v6543_v16 }
 0x952   :  { %v2931_v11 = vpop.permute.xlu0 %2930 }
 0x953   :  { %v2942_v33 = vsel %vm2941_vm10, %v2939_v17, %v2931_v11  ;;  %v3087_v20 = vrot.slane %v3080_v40, %v6543_v16 }
 0x954   :  { %v2946_v42 = vcombine.high %v2942_v33, %v2942_v33  ;;  %v2953_v4 = vrot.slane %v2942_v33, %v6543_v16 }
 0x956   :  { %v2960_v7 = vrot.slane %v2946_v42, %v6543_v16  ;;  %v2961_v39 = vcombine.high %v2953_v4, %v2953_v4  ;;  %v2968_v15 = vrot.slane %v2953_v4, %v6543_v16 }
 0x958   :  { %v2975_v47 = vrot.slane %v2960_v7, %v6543_v16  ;;  %v2982_v56 = vrot.slane %v2961_v39, %v6543_v16 }
 0x95a   :  { %v3024_v36 = vcombine.low %v2968_v15, %v2982_v56  ;;  %v5769_v51 = vcombine.high %v2968_v15, %v2982_v56  ;;  %v3026_v38 = vcombine.low %v2975_v47, %v3007_v6 }
 0x95c   :  { %v3034_v57 = vrot.slane %v3024_v36, %v6543_v16  ;;  %v3041_v41 = vrot.slane %v5769_v51, %v6543_v16  ;;  %v3048_v49 = vrot.slane %v3026_v38, %v6543_v16 }
 0x95e   :  { %v3056_v10 = vcombine.low %v3034_v57, %v3041_v41  ;;  %v3057_v45 = vcombine.low %v3048_v49, %v3055_v54 }
 0x960   :  { %v3064_v32 = vrot.slane %v3056_v10, %v6543_v16  ;;  %v3071_v34 = vrot.slane %v3057_v45, %v6543_v16 }
 0x962   :  { %v3072_v22 = vcombine.low %v3064_v32, %v3071_v34 }
 0x964   :  { %v3090_v8 = vpack.c.bf16 %v3087_v20, %v3072_v22 }
 0x966   :  { %6045 = vmatmul.mubr.msk.bf16.vlgmr.msra.gmra.mrb[44].mxu1 %vm593_vm1, %v3090_v8 }
 0x967   :  { %6064 = vmatprep.mubr.msk.bf16.mxu1 %vm6431_vm3, %v7850_v19 }
 0xa39   :  { %v3149_v53 = vpop.f32.mrb[44].mxu1 }
 0xa3a   :  { %v3150_v21 = vadd.f32 %v5770_v27, %v3149_v53  ;;  %v6046_v35 = vpop.f32.mrb[45].mxu1 }
 0xa3b   :  { %v3152_v12 = vpop.f32.mrb[46].mxu1 }
 0xa3c   :  { %v3158_v37 = vcombine.high %v3150_v21, %v3150_v21  ;;  %v3165_v44 = vrot.slane %v3150_v21, %v6543_v16  ;;  %v3153_v0 = vadd.f32 %v5770_v27, %v3152_v12  ;;  %v6047_v14 = vpop.f32.mrb[47].mxu1 }
 0xa3e   :  { %v3172_v58 = vrot.slane %v3158_v37, %v6543_v16  ;;  %v3173_v18 = vcombine.high %v3165_v44, %v3165_v44  ;;  %v3181_v59 = vrot.slane %v3165_v44, %v6543_v16  ;;  %v3213_v6 = vrot.slane %v3153_v0, %v6543_v16 }
 0xa40   :  { %v3174_v5 = vcombine.high %v3172_v58, %v3172_v58  ;;  %v3188_v13 = vrot.slane %v3172_v58, %v6543_v16  ;;  %v3195_v17 = vrot.slane %v3173_v18, %v6543_v16  ;;  %v3203_v11 = vcombine.high %v3181_v59, %v3181_v59 }
 0xa41   :  { %v3214_v9 = vcombine.high %v3213_v6, %v3213_v6  ;;  %v3221_v33 = vrot.slane %v3213_v6, %v6543_v16  ;;  %v7255_v7 = vadd.f32 %v3181_v59, %v6739_v28  ;;  %v7851_v6 = vld [vmem:[#allocation6_spill] sm:$0xff] }
 0xa42   :  { %v3202_v26 = vrot.slane %v3174_v5, %v6543_v16  ;;  %v3204_v42 = vcombine.high %v3188_v13, %v3188_v13  ;;  %v3205_v4 = vcombine.high %v3195_v17, %v3195_v17  ;;  %v3240_v55 = vadd.f32 %v3195_v17, %v6741_v23 }
 0xa43   :  { %v3241_v39 = vadd.f32 %v3203_v11, %v6743_v24  ;;  %v3228_v46 = vrot.slane %v3214_v9, %v6543_v16  ;;  %v3243_v47 = vadd.f32 %v3188_v13, %v6747_v30  ;;  %v3247_v48 = vadd.f32 %v3221_v33, %v6769_v50  ;;  %v7852_v13 = vld [vmem:[#allocation7_spill] sm:$0xff] }
 0xa44   :  { %v3206_v1 = vcombine.high %v3202_v26, %v3202_v26  ;;  %v3242_v15 = vadd.f32 %v3205_v4, %v6745_v25  ;;  %v7262_v56 = vadd.f32 %v3202_v26, %v6749_v29  ;;  %v3261_v23 = vcombine.low %v7255_v7, %v3240_v55 }
 0xa45   :  { %v3248_v36 = vadd.f32 %v3228_v46, %v6771_v52  ;;  %v3245_v28 = vadd.f32 %v3204_v42, %v6751_v31 }
 0xa46   :  { %v3246_v24 = vadd.f32 %v3206_v1, %v6753_v43  ;;  %v3262_v51 = vcombine.low %v3241_v39, %v3242_v15  ;;  %v3263_v38 = vcombine.low %v3243_v47, %v7262_v56  ;;  %v3271_v30 = vrot.slane %v3261_v23, %v6543_v16 }
 0xa47   :  { %v3310_v54 = vcombine.low %v3247_v48, %v3248_v36 }
 0xa48   :  { %v3264_v25 = vcombine.low %v3245_v28, %v3246_v24  ;;  %v3278_v29 = vrot.slane %v3262_v51, %v6543_v16  ;;  %v3285_v50 = vrot.slane %v3263_v38, %v6543_v16 }
 0xa49   :  { %v3317_v57 = vrot.slane %v3310_v54, %v6543_v16 }
 0xa4a   :  { %v3292_v52 = vrot.slane %v3264_v25, %v6543_v16  ;;  %v3293_v41 = vcombine.low %v3271_v30, %v3278_v29 }
 0xa4b   :  { %v3324_v31 = vrot.slane %v3317_v57, %v6543_v16 }
 0xa4c   :  { %v3294_v49 = vcombine.low %v3285_v50, %v3292_v52  ;;  %v3301_v40 = vrot.slane %v3293_v41, %v6543_v16 }
 0xa4d   :  { %v3330_v43 = vsel %vm597_vm2, %v3324_v31, 0.0 }
 0xa4e   :  { %3331 = vadd.xlane.f32.xlu1 %v3330_v43  ;;  %v3308_v10 = vrot.slane %v3294_v49, %v6543_v16 }
 0xa50   :  { %v3309_v45 = vcombine.low %v3301_v40, %v3308_v10 }
 0xa52   :  { %v3327_v32 = vsel %vm593_vm1, %v3309_v45, 0.0 }
 0xa53   :  { %3328 = vadd.xlane.f32.xlu0 %v3327_v32 }
 0xadb   :  { %v3332_v34 = vpop.xlane.xlu1 %3331 }
 0xadc   :  { %v3334_v20 = vmul.f32 0.03125, %v3332_v34  ;;  %v6285_v34 = vld [vmem:[%s7829_s2 + $0x8] ss:$16 sps:$4 sm:$0xff]  }
 0xadd   :  { %6049 = vmatpush3.bf16.msra.mxu0 %v6285_v34 }
 0xade   :  { %v3372_v22 = vrot.slane %v3334_v20, %v6620_v60  ;;  %v3376_v8 = vrot.slane %v3334_v20, %v6623_v61  ;;  %v6286_v20 = vld [vmem:[%s7829_s2 + $0x28] ss:$16 sps:$4 sm:$0xff]   ;;  %6050 = vmatprep.subr.bf16.mxu0 %v7850_v19 }
 0xae0   :  { %v7282_v27 = vsub.f32 %v3247_v48, %v3372_v22  ;;  %v7284_v53 = vsub.f32 %v3248_v36, %v3376_v8  ;;  %v3329_v21 = vpop.xlane.xlu0 %3328  ;;  %v5774_v22 = vld [vmem:[%s7831_s4 + $0x2] ss:$0 sm:$0xff]  ;;  %v5775_v8 = vld [vmem:[%s7831_s4 + $0x3] ss:$0 sm:$0xff] }
 0xae1   :  { %v3333_v35 = vmul.f32 0.03125, %v3329_v21  ;;  %6051 = vmatpush3.bf16.msra.mxu0 %v6286_v20  ;;  %v3562_v21 = vcombine.high %v5774_v22, %v5774_v22 }
 0xae2   :  { %v3405_v12 = vmul.f32 %v7282_v27, %v7282_v27  ;;  %v3406_v37 = vmul.f32 %v7284_v53, %v7284_v53  ;;  %6068 = vmatprep.subr.bf16.mxu0 %v7850_v19 }
 0xae3   :  { %v3340_v44 = vrot.slane %v3333_v35, %v6620_v60  ;;  %v3344_v0 = vrot.slane %v3333_v35, %v6623_v61  ;;  %v3348_v14 = vrot.slane %v3333_v35, %v6626_v62  ;;  %v3352_v58 = vrot.slane %v3333_v35, %v6629_v63 }
 0xae4   :  { %v3356_v18 = vrot.slane %v3333_v35, %v6632_v2  ;;  %v3360_v59 = vrot.slane %v3333_v35, %v6635_v3  ;;  %v3364_v5 = vrot.slane %v3333_v35, %v7851_v6  ;;  %v3368_v17 = vrot.slane %v3333_v35, %v7852_v13 }
 0xae5   :  { %v7299_v11 = vsub.f32 %v7255_v7, %v3340_v44  ;;  %v7301_v9 = vsub.f32 %v3240_v55, %v3344_v0  ;;  %v7303_v33 = vsub.f32 %v3241_v39, %v3348_v14  ;;  %v7305_v26 = vsub.f32 %v3242_v15, %v3352_v58 }
 0xae6   :  { %v7307_v42 = vsub.f32 %v3243_v47, %v3356_v18  ;;  %v7310_v4 = vsub.f32 %v7262_v56, %v3360_v59  ;;  %v7312_v46 = vsub.f32 %v3245_v28, %v3364_v5  ;;  %v7314_v1 = vsub.f32 %v3246_v24, %v3368_v17 }
 0xae7   :  { %v3397_v48 = vmul.f32 %v7299_v11, %v7299_v11  ;;  %v3398_v55 = vmul.f32 %v7301_v9, %v7301_v9  ;;  %v3399_v39 = vmul.f32 %v7303_v33, %v7303_v33  ;;  %v3400_v15 = vmul.f32 %v7305_v26, %v7305_v26 }
 0xae8   :  { %v3401_v47 = vmul.f32 %v7307_v42, %v7307_v42  ;;  %v3402_v36 = vmul.f32 %v7310_v4, %v7310_v4  ;;  %v3403_v23 = vmul.f32 %v7312_v46, %v7312_v46  ;;  %v3404_v28 = vmul.f32 %v7314_v1, %v7314_v1 }
 0xae9   :  { %v3417_v24 = vcombine.low %v3397_v48, %v3398_v55  ;;  %v3418_v51 = vcombine.low %v3399_v39, %v3400_v15  ;;  %v3466_v50 = vcombine.low %v3405_v12, %v3406_v37  ;;  %v3634_v35 = vcombine.high %v5775_v8, %v5775_v8 }
 0xaea   :  { %v3419_v38 = vcombine.low %v3401_v47, %v3402_v36  ;;  %v3420_v54 = vcombine.low %v3403_v23, %v3404_v28  ;;  %v3569_v44 = vrot.slane %v5774_v22, %v6543_v16  ;;  %v3576_v0 = vrot.slane %v3562_v21, %v6543_v16 }
 0xaeb   :  { %v3427_v25 = vrot.slane %v3417_v24, %v6543_v16  ;;  %v3434_v30 = vrot.slane %v3418_v51, %v6543_v16  ;;  %v3473_v43 = vrot.slane %v3466_v50, %v6543_v16  ;;  %v3641_v58 = vrot.slane %v5775_v8, %v6543_v16 }
 0xaec   :  { %v3441_v29 = vrot.slane %v3419_v38, %v6543_v16  ;;  %v3448_v57 = vrot.slane %v3420_v54, %v6543_v16  ;;  %v3648_v18 = vrot.slane %v3634_v35, %v6543_v16  ;;  %v3577_v17 = vcombine.high %v3569_v44, %v3569_v44 }
 0xaed   :  { %v3449_v52 = vcombine.low %v3427_v25, %v3434_v30  ;;  %v3480_v45 = vrot.slane %v3473_v43, %v6543_v16  ;;  %v3578_v48 = vcombine.high %v3576_v0, %v3576_v0  ;;  %v3649_v55 = vcombine.high %v3641_v58, %v3641_v58 }
 0xaee   :  { %v3450_v41 = vcombine.low %v3441_v29, %v3448_v57  ;;  %v3650_v15 = vcombine.high %v3648_v18, %v3648_v18  ;;  %v3585_v47 = vrot.slane %v3569_v44, %v6543_v16  ;;  %v3599_v36 = vrot.slane %v3577_v17, %v6543_v16 }
 0xaef   :  { %v3457_v31 = vrot.slane %v3449_v52, %v6543_v16  ;;  %v3486_v32 = vsel %vm597_vm2, %v3480_v45, 0.0  ;;  %v3592_v23 = vrot.slane %v3576_v0, %v6543_v16  ;;  %v3606_v28 = vrot.slane %v3578_v48, %v6543_v16 }
 0xaf0   :  { %v3464_v49 = vrot.slane %v3450_v41, %v6543_v16  ;;  %v3657_v24 = vrot.slane %v3641_v58, %v6543_v16  ;;  %v3671_v51 = vrot.slane %v3649_v55, %v6543_v16  ;;  %v3664_v38 = vrot.slane %v3648_v18, %v6543_v16 }
 0xaf1   :  { %v3678_v54 = vrot.slane %v3650_v15, %v6543_v16  ;;  %v3607_v25 = vcombine.high %v3585_v47, %v3585_v47  ;;  %v3609_v30 = vcombine.high %v3599_v36, %v3599_v36  ;;  %v3608_v29 = vcombine.high %v3592_v23, %v3592_v23 }
 0xaf2   :  { %v3465_v40 = vcombine.low %v3457_v31, %v3464_v49  ;;  %v3610_v57 = vcombine.high %v3606_v28, %v3606_v28  ;;  %v3679_v52 = vcombine.high %v3657_v24, %v3657_v24  ;;  %v3680_v41 = vcombine.high %v3664_v38, %v3664_v38 }
 0xaf3   :  { %v3681_v31 = vcombine.high %v3671_v51, %v3671_v51  ;;  %v3682_v49 = vcombine.high %v3678_v54, %v3678_v54 }
 0xaf4   :  { %v3483_v10 = vsel %vm593_vm1, %v3465_v40, 0.0 }
 0xaf5   :  { %3484 = vadd.xlane.f32.xlu0 %v3483_v10 }
 0xaf9   :  { %3487 = vadd.xlane.f32.xlu0 %v3486_v32 }
 0xb82   :  { %v3485_v12 = vpop.xlane.xlu0 %3484 }
 0xb83   :  { %v3489_v37 = vmul.f32 0.03125, %v3485_v12 }
 0xb85   :  { %v3491_v14 = vadd.f32 1e-05, %v3489_v37 }
 0xb86   :  { %v3488_v59 = vpop.xlane.xlu0 %3487 }
 0xb87   :  { %6345 = vrsqrt.f32 %v3491_v14  ;;  %v3490_v5 = vmul.f32 0.03125, %v3488_v59 }
 0xb89   :  { %v3492_v39 = vadd.f32 1e-05, %v3490_v5 }
 0xb8b   :  { %6347 = vrsqrt.f32 %v3492_v39 }
 0xb91   :  { %v6346_v50 = vpop.eup %6345 }
 0xb92   :  { %v3500_v43 = vrot.slane %v6346_v50, %v6620_v60  ;;  %v3504_v40 = vrot.slane %v6346_v50, %v6623_v61  ;;  %v3508_v10 = vrot.slane %v6346_v50, %v6626_v62  ;;  %v3512_v45 = vrot.slane %v6346_v50, %v6629_v63 }
 0xb93   :  { %v3516_v32 = vrot.slane %v6346_v50, %v6632_v2  ;;  %v3520_v34 = vrot.slane %v6346_v50, %v6635_v3  ;;  %v3524_v20 = vrot.slane %v6346_v50, %v7851_v6  ;;  %v3528_v22 = vrot.slane %v6346_v50, %v7852_v13 }
 0xb94   :  { %v3547_v8 = vmul.f32 %v3500_v43, %v7299_v11  ;;  %v3548_v21 = vmul.f32 %v3504_v40, %v7301_v9  ;;  %v3549_v35 = vmul.f32 %v3508_v10, %v7303_v33  ;;  %v3550_v12 = vmul.f32 %v3512_v45, %v7305_v26  ;;  %v6287_v43 = vld [vmem:[%s7830_s3] sm:$0xff]   ;;  %v6288_v40 = vld [vmem:[%s7830_s3 + $0x8] sm:$0xff]   ;;  %v6289_v10 = vld [vmem:[%s7830_s3 + $0x10] sm:$0xff]  }
 0xb95   :  { %v6348_v37 = vpop.eup %6347  ;;  %v3551_v62 = vmul.f32 %v3516_v32, %v7307_v42  ;;  %v3552_v63 = vmul.f32 %v3520_v34, %v7310_v4  ;;  %v3553_v2 = vmul.f32 %v3524_v20, %v7312_v46  ;;  %v3554_v3 = vmul.f32 %v3528_v22, %v7314_v1  ;;  %6057 = vmatpush3.bf16.msra.mxu1 %v6287_v43  ;;  %v6290_v45 = vld [vmem:[%s7830_s3 + $0x18] sm:$0xff]   ;;  %v4179_v32 = vld [vmem:[%s7832_s5] sm:$0xff]  ;;  %v4181_v34 = vld [vmem:[%s7836_s9 + $0x10] sm:$0xff] }
 0xb96   :  { %v3619_v6 = vmul.f32 %v3585_v47, %v3547_v8  ;;  %v3620_v44 = vmul.f32 %v3599_v36, %v3548_v21  ;;  %v3532_v13 = vrot.slane %v6348_v37, %v6620_v60  ;;  %v3536_v11 = vrot.slane %v6348_v37, %v6623_v61  ;;  %6058 = vmatprep.subr.bf16.mxu1 %v7850_v19  ;;  %v5776_v8 = vld [vmem:[%s7831_s4 + $0xa] ss:$0 sm:$0xff] }
 0xb97   :  { %v3621_v9 = vmul.f32 %v3607_v25, %v3549_v35  ;;  %v3622_v0 = vmul.f32 %v3609_v30, %v3550_v12  ;;  %v3623_v33 = vmul.f32 %v3592_v23, %v3551_v62  ;;  %v3624_v14 = vmul.f32 %v3606_v28, %v3552_v63 }
 0xb98   :  { %v3555_v26 = vmul.f32 %v3532_v13, %v7282_v27  ;;  %v3556_v42 = vmul.f32 %v3536_v11, %v7284_v53  ;;  %v3625_v58 = vmul.f32 %v3608_v29, %v3553_v2  ;;  %v3626_v4 = vmul.f32 %v3610_v57, %v3554_v3 }
 0xb99   :  { %v3691_v18 = vadd.f32 %v3657_v24, %v3619_v6  ;;  %v3692_v46 = vadd.f32 %v3671_v51, %v3620_v44  ;;  %v3693_v59 = vadd.f32 %v3679_v52, %v3621_v9  ;;  %v3694_v1 = vadd.f32 %v3681_v31, %v3622_v0  ;;  %6059 = vmatpush3.bf16.msra.mxu1 %v6288_v40 }
 0xb9a   :  { %v3627_v5 = vmul.f32 %v3585_v47, %v3555_v26  ;;  %v3628_v17 = vmul.f32 %v3599_v36, %v3556_v42  ;;  %v3695_v48 = vadd.f32 %v3664_v38, %v3623_v33  ;;  %v3696_v55 = vadd.f32 %v3678_v54, %v3624_v14  ;;  %6060 = vmatprep.subr.bf16.mxu1 %v7850_v19 }
 0xb9b   :  { %v3697_v39 = vadd.f32 %v3680_v41, %v3625_v58  ;;  %v3698_v15 = vadd.f32 %v3682_v49, %v3626_v4  ;;  %v3711_v25 = vcombine.low %v3691_v18, %v3692_v46  ;;  %v3712_v30 = vcombine.low %v3693_v59, %v3694_v1  ;;  %v5780_v4 = vld [vmem:[%s7831_s4 + $0xb] ss:$0 sm:$0xff] }
 0xb9c   :  { %v3699_v23 = vadd.f32 %v3657_v24, %v3627_v5  ;;  %v3700_v28 = vadd.f32 %v3671_v51, %v3628_v17  ;;  %v3713_v50 = vcombine.low %v3695_v48, %v3696_v55  ;;  %v7421_v20 = vadd.f32 %v4181_v34, %v4179_v32 }
 0xb9d   :  { %v3714_v27 = vcombine.low %v3697_v39, %v3698_v15  ;;  %v3721_v53 = vrot.slane %v3711_v25, %v6543_v16  ;;  %v3728_v29 = vrot.slane %v3712_v30, %v6543_v16  ;;  %6061 = vmatpush3.bf16.msra.mxu1 %v6289_v10 }
 0xb9e   :  { %v3735_v57 = vrot.slane %v3713_v50, %v6543_v16  ;;  %v3760_v52 = vcombine.low %v3699_v23, %v3700_v28  ;;  %6062 = vmatprep.subr.bf16.mxu1 %v7850_v19  ;;  %v4232_v22 = vsel %vm593_vm1, %v7421_v20, 0.0 }
 0xb9f   :  { %v3742_v47 = vrot.slane %v3714_v27, %v6543_v16  ;;  %v3743_v36 = vcombine.low %v3721_v53, %v3728_v29  ;;  %4233 = vadd.xlane.f32.xlu1 %v4232_v22  ;;  %v4180_v53 = vld [vmem:[%s7832_s5 + $0x8] sm:$0xff] }
 0xba0   :  { %v3767_v38 = vrot.slane %v3760_v52, %v6543_v16 }
 0xba1   :  { %v3744_v54 = vcombine.low %v3735_v57, %v3742_v47  ;;  %v3751_v41 = vrot.slane %v3743_v36, %v6543_v16  ;;  %6063 = vmatpush3.bf16.msra.mxu1 %v6290_v45  ;;  %v7448_v47 = vadd.f32 %v4181_v34, %v4180_v53 }
 0xba2   :  { %v3774_v51 = vrot.slane %v3767_v38, %v6543_v16  ;;  %6084 = vmatprep.subr.bf16.mxu1 %v7850_v19 }
 0xba3   :  { %v3758_v24 = vrot.slane %v3744_v54, %v6543_v16 }
 0xba5   :  { %v3759_v31 = vcombine.low %v3751_v41, %v3758_v24 }
 0xba7   :  { %v3777_v49 = vpack.c.bf16 %v3774_v51, %v3759_v31 }
 0xba9   :  { %6053 = vmatmul.mubr.msk.bf16.vlgmr.msra.gmra.mrb[28].mxu0 %vm593_vm1, %v3777_v49 }
 0xbaa   :  { %6072 = vmatprep.mubr.msk.bf16.mxu0 %vm6431_vm3, %v7850_v19 }
 0xc2c   :  { %v4234_v30 = vpop.xlane.xlu1 %4233 }
 0xc2d   :  { %v4238_v27 = vmul.f32 0.03125, %v4234_v30 }
 0xc2f   :  { %v7446_v52 = vsub.f32 %v7421_v20, %v4238_v27 }
 0xc7c   :  { %v3836_v21 = vpop.f32.mrb[28].mxu0 }
 0xc7d   :  { %v3837_v35 = vadd.f32 %v5776_v8, %v3836_v21  ;;  %v6054_v12 = vpop.f32.mrb[29].mxu0 }
 0xc7e   :  { %v3839_v37 = vpop.f32.mrb[30].mxu0 }
 0xc7f   :  { %v3843_v62 = vmul.f32 -1.702, %v3837_v35  ;;  %v3840_v63 = vadd.f32 %v5776_v8, %v3839_v37  ;;  %v6055_v2 = vpop.f32.mrb[31].mxu0  ;;  %v6291_v37 = vld [vmem:[%s7829_s2 + $0xc] ss:$16 sps:$4 sm:$0xff]  }
 0xc80   :  { %6069 = vmatpush3.bf16.msra.mxu0 %v6291_v37 }
 0xc81   :  { %v3845_v3 = vmul.f32 1.442695, %v3843_v62  ;;  %v3844_v6 = vmul.f32 -1.702, %v3840_v63  ;;  %v6292_v62 = vld [vmem:[%s7829_s2 + $0x2c] ss:$16 sps:$4 sm:$0xff]   ;;  %6070 = vmatprep.subr.bf16.mxu0 %v7850_v19 }
 0xc83   :  { %6349 = vpow2.f32 %v3845_v3  ;;  %v3847_v44 = vmul.f32 1.442695, %v3844_v6 }
 0xc84   :  { %6071 = vmatpush3.bf16.msra.mxu0 %v6292_v62 }
 0xc85   :  { %6351 = vpow2.f32 %v3847_v44  ;;  %6076 = vmatprep.subr.bf16.mxu0 %v7850_v19 }
 0xc8d   :  { %v6350_v13 = vpop.eup %6349 }
 0xc8e   :  { %v3849_v11 = vadd.f32 1.0, %v6350_v13  ;;  %v5786_v13 = vld [vmem:[%s7831_s4 + $0x4] ss:$0 sm:$0xff] }
 0xc8f   :  { %v6352_v9 = vpop.eup %6351 }
 0xc90   :  { %6353 = vrcp.f32 %v3849_v11  ;;  %v3850_v0 = vadd.f32 1.0, %v6352_v9  ;;  %v5787_v9 = vld [vmem:[%s7831_s4 + $0x5] ss:$0 sm:$0xff] }
 0xc92   :  { %6355 = vrcp.f32 %v3850_v0 }
 0xc9a   :  { %v6354_v33 = vpop.eup %6353 }
 0xc9b   :  { %v3853_v26 = vmul.f32 %v6354_v33, %v3837_v35  ;;  %v4058_v33 = vrot.slane %v5786_v13, %v6543_v16 }
 0xc9c   :  { %v6356_v14 = vpop.eup %6355 }
 0xc9d   :  { %v3854_v42 = vmul.f32 %v6356_v14, %v3840_v63 }
 0xc9f   :  { %v3855_v58 = vpack.c.bf16 %v3854_v42, %v3853_v26  ;;  %v4089_v26 = vrot.slane %v5787_v9, %v6543_v16 }
 0xca1   :  { %6065 = vmatmul.mubr.msk.bf16.vlgmr.msra.gmra.mrb[48].mxu1 %vm331_vm0, %v3855_v58  ;;  %v4059_v58 = vcombine.high %v4058_v33, %v4058_v33 }
 0xca2   :  { %6086 = vmatprep.mubr.msk.bf16.mxu1 %vm6431_vm3, %v7850_v19 }
 0xd74   :  { %v3930_v18 = vpop.f32.mrb[48].mxu1 }
 0xd75   :  { %v3931_v46 = vadd.f32 %v5780_v4, %v3930_v18  ;;  %v6066_v59 = vpop.f32.mrb[49].mxu1  ;;  %v4090_v4 = vcombine.high %v4089_v26, %v4089_v26 }
 0xd76   :  { %v3933_v1 = vpop.f32.mrb[50].mxu1  ;;  %v4073_v59 = vrot.slane %v4059_v58, %v6543_v16 }
 0xd77   :  { %v3937_v5 = vcombine.high %v3931_v46, %v3931_v46  ;;  %v3944_v17 = vrot.slane %v3931_v46, %v6543_v16  ;;  %v6067_v48 = vpop.f32.mrb[51].mxu1  ;;  %v4066_v46 = vrot.slane %v4058_v33, %v6543_v16 }
 0xd79   :  { %v3951_v55 = vrot.slane %v3937_v5, %v6543_v16  ;;  %v3959_v15 = vrot.slane %v3944_v17, %v6543_v16 }
 0xd7b   :  { %v3952_v39 = vcombine.high %v3951_v55, %v3951_v55  ;;  %v3969_v23 = vadd.f32 %v3959_v15, %v7255_v7  ;;  %v4235_v7 = vsel %vm593_vm1, %v7448_v47, 0.0  ;;  %v4097_v55 = vrot.slane %v4089_v26, %v6543_v16 }
 0xd7d   :  { %v3966_v25 = vrot.slane %v3952_v39, %v6543_v16  ;;  %v4104_v39 = vrot.slane %v4090_v4, %v6543_v16 }
 0xd7f   :  { %v3970_v28 = vadd.f32 %v3966_v25, %v7262_v56  ;;  %v4242_v56 = vmul.f32 %v7446_v52, %v7446_v52 }
 0xd81   :  { %v3975_v50 = vcombine.low %v3969_v23, %v3970_v28  ;;  %v4244_v38 = vsel %vm593_vm1, %v4242_v56, 0.0 }
 0xd83   :  { %v3982_v29 = vrot.slane %v3975_v50, %v6543_v16 }
 0xd85   :  { %v3989_v57 = vrot.slane %v3982_v29, %v6543_v16 }
 0xd87   :  { %v3991_v36 = vsel %vm597_vm2, %v3989_v57, 0.0 }
 0xd88   :  { %3992 = vadd.xlane.f32.xlu0 %v3991_v36 }
 0xd8c   :  { %4236 = vadd.xlane.f32.xlu0 %v4235_v7 }
 0xd90   :  { %4245 = vadd.xlane.f32.xlu0 %v4244_v38  ;;  %v5792_v38 = vld [vmem:[%s7836_s9] ss:$0 sm:$0xff] }
 0xe15   :  { %v3993_v54 = vpop.xlane.xlu0 %3992 }
 0xe16   :  { %v3994_v41 = vmul.f32 0.03125, %v3993_v54 }
 0xe18   :  { %v3999_v24 = vrot.slane %v3994_v41, %v6620_v60  ;;  %v4003_v51 = vrot.slane %v3994_v41, %v6623_v61  ;;  %v6293_v41 = vld [vmem:[%s7834_s7] ss:$16 sps:$4 sm:$0xff]  }
 0xe19   :  { %v4237_v31 = vpop.xlane.xlu0 %4236 }
 0xe1a   :  { %v4006_v49 = vsub.f32 %v3969_v23, %v3999_v24  ;;  %v4007_v43 = vsub.f32 %v3970_v28, %v4003_v51  ;;  %v4239_v40 = vmul.f32 0.03125, %v4237_v31 }
 0xe1c   :  { %v4008_v10 = vmul.f32 %v4006_v49, %v4006_v49  ;;  %v4009_v45 = vmul.f32 %v4007_v43, %v4007_v43  ;;  %v4241_v32 = vsub.f32 %v7448_v47, %v4239_v40 }
 0xe1d   :  { %v4246_v44 = vpop.xlane.xlu0 %4245 }
 0xe1e   :  { %v4012_v34 = vcombine.low %v4008_v10, %v4009_v45  ;;  %v4243_v21 = vmul.f32 %v4241_v32, %v4241_v32  ;;  %v4250_v0 = vmul.f32 0.03125, %v4246_v44 }
 0xe20   :  { %v4019_v22 = vrot.slane %v4012_v34, %v6543_v16  ;;  %v4247_v12 = vsel %vm593_vm1, %v4243_v21, 0.0  ;;  %v4252_v42 = vadd.f32 1e-05, %v4250_v0 }
 0xe22   :  { %v4026_v8 = vrot.slane %v4019_v22, %v6543_v16 }
 0xe24   :  { %v4028_v35 = vsel %vm597_vm2, %v4026_v8, 0.0  ;;  %v5794_v8 = vld [vmem:[%s7836_s9 + $0x8] ss:$0 sm:$0xff] }
 0xe25   :  { %4029 = vadd.xlane.f32.xlu1 %v4028_v35 }
 0xe29   :  { %4248 = vadd.xlane.f32.xlu1 %v4247_v12 }
 0xeb2   :  { %v4030_v63 = vpop.xlane.xlu1 %4029 }
 0xeb3   :  { %v4031_v2 = vmul.f32 0.03125, %v4030_v63 }
 0xeb5   :  { %v4032_v3 = vadd.f32 1e-05, %v4031_v2 }
 0xeb6   :  { %v4249_v6 = vpop.xlane.xlu1 %4248 }
 0xeb7   :  { %6357 = vrsqrt.f32 %v4032_v3  ;;  %v4251_v11 = vmul.f32 0.03125, %v4249_v6 }
 0xeb9   :  { %v4253_v14 = vadd.f32 1e-05, %v4251_v11 }
 0xebb   :  { %6359 = vrsqrt.f32 %v4253_v14 }
 0xebc   :  { %6361 = vrsqrt.f32 %v4252_v42 }
 0xec1   :  { %v6358_v18 = vpop.eup %6357 }
 0xec2   :  { %v4038_v1 = vrot.slane %v6358_v18, %v6620_v60  ;;  %v4042_v5 = vrot.slane %v6358_v18, %v6623_v61 }
 0xec4   :  { %v4045_v17 = vmul.f32 %v4038_v1, %v4006_v49  ;;  %v4046_v48 = vmul.f32 %v4042_v5, %v4007_v43  ;;  %v5793_v49 = vld [vmem:[%s7836_s9 + $0x1] ss:$0 sm:$0xff] }
 0xec5   :  { %v6360_v28 = vpop.eup %6359 }
 0xec6   :  { %v4076_v15 = vmul.f32 %v4066_v46, %v4045_v17  ;;  %v4077_v25 = vmul.f32 %v4073_v59, %v4046_v48  ;;  %v6362_v53 = vpop.eup %6361  ;;  %v4257_v57 = vmul.f32 %v6360_v28, %v4241_v32 }
 0xec7   :  { %v4256_v56 = vmul.f32 %v6362_v53, %v7446_v52  ;;  %v6294_v52 = vld [vmem:[%s7834_s7 + $0x20] ss:$16 sps:$4 sm:$0xff]  }
 0xec8   :  { %v4107_v30 = vadd.f32 %v4097_v55, %v4076_v15  ;;  %v4108_v23 = vadd.f32 %v4104_v39, %v4077_v25  ;;  %v4263_v24 = vmul.f32 %v5792_v38, %v4257_v57 }
 0xec9   :  { %v4262_v31 = vmul.f32 %v5792_v38, %v4256_v56  ;;  %v7597_v38 = vld [vmem:[%s7833_s6] sm:$0x3] }
 0xeca   :  { %v4109_v50 = vpack.c.bf16 %v4107_v30, %v4107_v30  ;;  %v4110_v27 = vpack.c.bf16 %v4108_v23, %v4108_v23  ;;  %v4269_v43 = vadd.f32 %v5793_v49, %v4263_v24  ;;  %v7853_v24 = vlaneseq }
 0xecb   :  { %v4268_v40 = vadd.f32 %v5793_v49, %v4262_v31 }
 0xecc   :  { %v4118_v29 = vunpack.c.l.b16 %v4110_v27  ;;  %v4117_v36 = vunpack.c.l.b16 %v4109_v50 }
 0xecd   :  { %v4270_v10 = vpack.c.bf16 %v4269_v43, %v4268_v40 }
 0xece   :  { %v4119_v7 = vrot.slane %v4118_v29, 7 }
 0xed0   :  { %v4121_v54 = vsel %vm4120_vm11, %v4119_v7, %v4117_v36 }
 0xed1   :  { %v4122_v51 = vpack.c.b16 %v4121_v54, %v4121_v54  ;;  %v4198_v54 = vrot.slane %v7597_v38, %v6543_v16 }
 0xed3   :  { %6073 = vmatmul.mubr.msk.bf16.vlgmr.msra.gmra.mrb[32].mxu0 %vm593_vm1, %v4122_v51  ;;  %v7602_v51 = vand.u32 127, %v7853_v24  ;;  %v4206_v49 = vrot.slane %v4198_v54, %v6543_v16 }
 0xed4   :  { %6077 = vmatpush3.bf16.msra.mxu0 %v6293_v41  ;;  %6080 = vmatprep.mubr.msk.bf16.mxu0 %vm6431_vm3, %v7850_v19  ;;  %v4199_v41 = vcombine.high %v4198_v54, %v4198_v54 }
 0xed5   :  { %6078 = vmatprep.subr.bf16.mxu0 %v7850_v19 }
 0xed6   :  { %v4213_v31 = vrot.slane %v4199_v41, %v6543_v16 }
 0xed8   :  { %6079 = vmatpush3.bf16.msra.mxu0 %v6294_v52  ;;  %v7854_v52 = vld [vmem:[#allocation5_spill] sm:$0xff]  ;;  %v4221_v43 = vrot.slane %v4213_v31, %v6620_v60 }
 0xed9   :  { %6090 = vmatprep.subr.bf16.mxu0 %v7850_v19  ;;  %vm4188_vm13 = vcmp.le.s32.totalorder %v7602_v51, %v7854_v52 }
 0xeda   :  { %v5791_v40 = vsel %vm4188_vm13, 1.0, %v7850_v19 }
 0xedb   :  { %6081 = vmatmul.mubr.msk.bf16.vlgmr.msra.gmra.mrb[36].mxu0 %vm593_vm1, %v4270_v10  ;;  %v4217_v10 = vrot.slane %v4206_v49, %v6620_v60 }
 0xedc   :  { %6092 = vmatprep.mubr.msk.bf16.mxu0 %vm6431_vm3, %v7850_v19 }
 0xfa6   :  { %v7507_v45 = vpop.f32.mrb[32].mxu0 }
 0xfa7   :  { %v6074_v32 = vpop.f32.mrb[33].mxu0 }
 0xfa8   :  { %v4175_v34 = vpop.f32.mrb[34].mxu0  ;;  %v4225_v32 = vmul.f32 %v5791_v40, %v4221_v43 }
 0xfa9   :  { %v6075_v22 = vpop.f32.mrb[35].mxu0  ;;  %v4224_v34 = vmul.f32 %v5791_v40, %v4217_v10 }
 0xfaa   :  { %v4227_v22 = vsub.f32 1.0, %v4225_v32 }
 0xfae   :  { %v4329_v21 = vpop.f32.mrb[36].mxu0 }
 0xfaf   :  { %v6082_v35 = vpop.f32.mrb[37].mxu0  ;;  %v4330_v37 = vadd.f32 %v5794_v8, %v4329_v21  ;;  %v4229_v21 = vmul.f32 -1e+09, %v4227_v22 }
 0xfb0   :  { %v4332_v12 = vpop.f32.mrb[38].mxu0 }
 0xfb1   :  { %v4333_v62 = vadd.f32 %v5794_v8, %v4332_v12  ;;  %v6083_v63 = vpop.f32.mrb[39].mxu0  ;;  %v4356_v6 = vpack.c.bf16 %v4330_v37, %v4330_v37  ;;  %v4226_v8 = vsub.f32 1.0, %v4224_v34 }
 0xfb3   :  { %v6237_v2 = vpack.i.bf16 %v4333_v62, %v4330_v37  ;;  %v7514_v3 = vpack.c.bf16 %v4333_v62, %v4333_v62  ;;  %v4228_v63 = vmul.f32 -1e+09, %v4226_v8 }
 0xfb5   :  { %6238 = vrot.lane.b32.xlu1 %v6237_v2, %s6433_s27  ;;  %6233 = vrot.lane.b32.xlu0 %v6237_v2, %s6432_s26 }
 0xfb9   :  { %6243 = vrot.lane.b32.xlu1 %v6237_v2, %s6434_s28  ;;  %4414 = vrot.lane.b32.xlu0 %v7514_v3, %s6435_s29 }
 0xfbd   :  { %4365 = vrot.lane.b32.xlu1 %v4356_v6, %s6435_s29 }
0x1027   :  { %v6239_v44 = vpop.permute.xlu1 %6238  ;;  %v6234_v13 = vpop.permute.xlu0 %6233 }
0x1028   :  { %v6236_v11 = vunpack.i.h.bf16 %v6234_v13  ;;  %v6235_v9 = vunpack.i.l.bf16 %v6234_v13  ;;  %v6241_v0 = vunpack.i.h.bf16 %v6239_v44  ;;  %v6240_v33 = vunpack.i.l.bf16 %v6239_v44 }
0x102a   :  { %v7520_v14 = vpack.c.bf16 %v6236_v11, %v6236_v11  ;;  %v7522_v26 = vpack.c.bf16 %v6235_v9, %v6235_v9  ;;  %v7529_v18 = vpack.c.bf16 %v6241_v0, %v6241_v0  ;;  %v7531_v46 = vpack.c.bf16 %v6240_v33, %v6240_v33 }
0x102b   :  { %v6244_v42 = vpop.permute.xlu1 %6243  ;;  %v4415_v58 = vpop.permute.xlu0 %4414 }
0x102c   :  { %v4420_v4 = vsel %vm2028_vm4, %v4415_v58, 0  ;;  %4463 = vrot.lane.b32.xlu1 %v7522_v26, %s6435_s29  ;;  %4512 = vrot.lane.b32.xlu0 %v7520_v14, %s6435_s29  ;;  %v6246_v59 = vunpack.i.h.bf16 %v6244_v42  ;;  %v6245_v1 = vunpack.i.l.bf16 %v6244_v42 }
0x102d   :  { %6091 = vmatpush3.bf16.xpose.msra.mxu0 %v4420_v4 }
0x102e   :  { %6102 = vmatprep.subr.bf16.mxu0 %v7850_v19  ;;  %v7539_v48 = vpack.c.bf16 %v6246_v59, %v6246_v59  ;;  %v7541_v55 = vpack.c.bf16 %v6245_v1, %v6245_v1 }
0x102f   :  { %v4366_v5 = vpop.permute.xlu1 %4365 }
0x1030   :  { %v4371_v17 = vsel %vm2028_vm4, %v4366_v5, 0  ;;  %4561 = vrot.lane.b32.xlu1 %v7531_v46, %s6435_s29  ;;  %4610 = vrot.lane.b32.xlu0 %v7529_v18, %s6435_s29 }
0x1031   :  { %6085 = vmatpush3.bf16.xpose.msra.mxu1 %v4371_v17 }
0x1032   :  { %6096 = vmatprep.subr.bf16.mxu1 %v7850_v19 }
0x1034   :  { %4659 = vrot.lane.b32.xlu1 %v7541_v55, %s6435_s29  ;;  %4708 = vrot.lane.b32.xlu0 %v7539_v48, %s6435_s29 }
0x1035   :  { %6093 = vmatmul.mubr.msk.bf16.vlgmr.msra.gmra.mrb[40].mxu0 %vm2028_vm4, %v7514_v3 }
0x1036   :  { %6104 = vmatprep.mubr.msk.bf16.mxu0 %vm6431_vm3, %v7850_v19 }
0x1038   :  { %6087 = vmatmul.mubr.msk.bf16.vlgmr.msra.gmra.mrb[52].mxu1 %vm2028_vm4, %v4356_v6  ;;  %4868 = vrot.lane.b32.xlu1 %v4356_v6, %s6436_s30 }
0x1039   :  { %6098 = vmatprep.mubr.msk.bf16.mxu1 %vm6431_vm3, %v7850_v19 }
0x109e   :  { %v4464_v39 = vpop.permute.xlu1 %4463  ;;  %v4513_v15 = vpop.permute.xlu0 %4512 }
0x109f   :  { %v4469_v25 = vsel %vm2028_vm4, %v4464_v39, 0  ;;  %v4518_v30 = vsel %vm2028_vm4, %v4513_v15, 0 }
0x10a0   :  { %6097 = vmatpush3.bf16.xpose.msra.mxu1 %v4469_v25  ;;  %6103 = vmatpush3.bf16.xpose.msra.mxu0 %v4518_v30 }
0x10a1   :  { %6108 = vmatprep.subr.bf16.mxu1 %v7850_v19  ;;  %6114 = vmatprep.subr.bf16.mxu0 %v7850_v19 }
0x10a2   :  { %v4562_v23 = vpop.permute.xlu1 %4561  ;;  %v4611_v28 = vpop.permute.xlu0 %4610 }
0x10a3   :  { %v4567_v50 = vsel %vm2028_vm4, %v4562_v23, 0  ;;  %v4616_v27 = vsel %vm2028_vm4, %v4611_v28, 0 }
0x10a6   :  { %v4660_v53 = vpop.permute.xlu1 %4659  ;;  %v4709_v29 = vpop.permute.xlu0 %4708 }
0x10a7   :  { %6099 = vmatmul.mubr.msk.bf16.vlgmr.msra.gmra.mrb[56].mxu1 %vm2028_vm4, %v7522_v26  ;;  %6105 = vmatmul.mubr.msk.bf16.vlgmr.msra.gmra.mrb[44].mxu0 %vm2028_vm4, %v7520_v14  ;;  %v4665_v57 = vsel %vm2028_vm4, %v4660_v53, 0  ;;  %v4714_v36 = vsel %vm2028_vm4, %v4709_v29, 0 }
0x10a8   :  { %6109 = vmatpush3.bf16.xpose.msra.mxu1 %v4567_v50  ;;  %6115 = vmatpush3.bf16.xpose.msra.mxu0 %v4616_v27 }
0x10a9   :  { %6110 = vmatprep.mubr.msk.bf16.mxu1 %vm6431_vm3, %v7850_v19  ;;  %6116 = vmatprep.mubr.msk.bf16.mxu0 %vm6431_vm3, %v7850_v19 }
0x10aa   :  { %6120 = vmatprep.subr.bf16.mxu1 %v7850_v19  ;;  %6126 = vmatprep.subr.bf16.mxu0 %v7850_v19  ;;  %v4869_v7 = vpop.permute.xlu1 %4868 }
0x10ab   :  { %v4875_v56 = vsel %vm4873_vm12, %v4869_v7, 0 }
0x10af   :  { %6111 = vmatmul.mubr.msk.bf16.vlgmr.msra.gmra.mrb[60].mxu1 %vm2028_vm4, %v7531_v46  ;;  %6117 = vmatmul.mubr.msk.bf16.vlgmr.msra.gmra.mrb[48].mxu0 %vm2028_vm4, %v7529_v18 }
0x10b0   :  { %6121 = vmatpush3.bf16.xpose.msra.mxu1 %v4665_v57  ;;  %6127 = vmatpush3.bf16.xpose.msra.mxu0 %v4714_v36 }
0x10b1   :  { %6122 = vmatprep.mubr.msk.bf16.mxu1 %vm6431_vm3, %v7850_v19  ;;  %6128 = vmatprep.mubr.msk.bf16.mxu0 %vm6431_vm3, %v7850_v19 }
0x10b2   :  { %6132 = vmatprep.subr.bf16.mxu1 %v7850_v19  ;;  %6138 = vmatprep.subr.bf16.mxu0 %v7850_v19 }
0x10b7   :  { %6123 = vmatmul.mubr.msk.bf16.vlgmr.msra.gmra.mrb[64].mxu1 %vm2028_vm4, %v7541_v55  ;;  %6129 = vmatmul.mubr.msk.bf16.vlgmr.msra.gmra.mrb[52].mxu0 %vm2028_vm4, %v7539_v48 }
0x10b8   :  { %6133 = vmatpush3.bf16.msra.mxu1 %v4875_v56  ;;  %6140 = vmatprep.mubr.msk.bf16.mxu0 %vm6431_vm3, %v7850_v19 }
0x10b9   :  { %6134 = vmatprep.mubr.msk.bf16.mxu1 %vm6431_vm3, %v7850_v19  ;;  %6144 = vmatprep.subr.bf16.mxu1 %v7850_v19 }
0x1108   :  { %v4456_v35 = vpop.f32.mrb[40].mxu0 }
0x1109   :  { %v4757_v12 = vmul.f32 0.35355338, %v4456_v35  ;;  %v6094_v37 = vpop.f32.mrb[41].mxu0 }
0x110a   :  { %v4459_v62 = vpop.f32.mrb[42].mxu0 }
0x110b   :  { %v6095_v2 = vpop.f32.mrb[43].mxu0  ;;  %v4407_v6 = vpop.f32.mrb[52].mxu1  ;;  %v7611_v44 = vadd.f32 %v4757_v12, %v4229_v21 }
0x110c   :  { %v4756_v16 = vmul.f32 0.35355338, %v4407_v6  ;;  %v6088_v13 = vpop.f32.mrb[53].mxu1 }
0x110d   :  { %v4410_v11 = vpop.f32.mrb[54].mxu1  ;;  %v4775_v9 = vsel %vm2028_vm4, %v7611_v44, -inf }
0x110e   :  { %v4764_v0 = vadd.f32 %v4756_v16, %v4228_v63  ;;  %4776 = vmax.xlane.f32.xlu0 %v4775_v9  ;;  %v6089_v33 = vpop.f32.mrb[55].mxu1 }
0x1110   :  { %v4772_v42 = vsel %vm2028_vm4, %v4764_v0, -inf }
0x1111   :  { %4773 = vmax.xlane.f32.xlu1 %v4772_v42 }
0x117a   :  { %v4505_v58 = vpop.f32.mrb[56].mxu1  ;;  %v4554_v4 = vpop.f32.mrb[44].mxu0 }
0x117b   :  { %v4758_v59 = vmul.f32 0.35355338, %v4505_v58  ;;  %v4759_v1 = vmul.f32 0.35355338, %v4554_v4  ;;  %v6100_v5 = vpop.f32.mrb[57].mxu1  ;;  %v6106_v17 = vpop.f32.mrb[45].mxu0 }
0x117c   :  { %v4508_v39 = vpop.f32.mrb[58].mxu1  ;;  %v4557_v15 = vpop.f32.mrb[46].mxu0 }
0x117d   :  { %v4766_v25 = vadd.f32 %v4758_v59, %v4228_v63  ;;  %v6101_v30 = vpop.f32.mrb[59].mxu1  ;;  %v6107_v23 = vpop.f32.mrb[47].mxu0  ;;  %v4767_v28 = vadd.f32 %v4759_v1, %v4229_v21 }
0x117f   :  { %v4778_v50 = vsel %vm2028_vm4, %v4766_v25, -inf  ;;  %v4781_v29 = vsel %vm2028_vm4, %v4767_v28, -inf }
0x1180   :  { %4779 = vmax.xlane.f32.xlu0 %v4778_v50 }
0x1182   :  { %v4603_v27 = vpop.f32.mrb[60].mxu1  ;;  %v4652_v53 = vpop.f32.mrb[48].mxu0 }
0x1183   :  { %v4760_v57 = vmul.f32 0.35355338, %v4603_v27  ;;  %v4761_v36 = vmul.f32 0.35355338, %v4652_v53  ;;  %v6112_v7 = vpop.f32.mrb[61].mxu1  ;;  %v6118_v56 = vpop.f32.mrb[49].mxu0 }
0x1184   :  { %v4606_v54 = vpop.f32.mrb[62].mxu1  ;;  %4782 = vmax.xlane.f32.xlu0 %v4781_v29  ;;  %v4655_v41 = vpop.f32.mrb[50].mxu0 }
0x1185   :  { %v4768_v24 = vadd.f32 %v4760_v57, %v4228_v63  ;;  %v7618_v31 = vadd.f32 %v4761_v36, %v4229_v21  ;;  %v6113_v52 = vpop.f32.mrb[63].mxu1  ;;  %v6119_v49 = vpop.f32.mrb[51].mxu0 }
0x1187   :  { %v4784_v43 = vsel %vm2028_vm4, %v4768_v24, -inf  ;;  %v4787_v40 = vsel %vm2028_vm4, %v7618_v31, -inf }
0x1188   :  { %4785 = vmax.xlane.f32.xlu1 %v4784_v43  ;;  %4788 = vmax.xlane.f32.xlu0 %v4787_v40 }
0x118a   :  { %v4701_v10 = vpop.f32.mrb[64].mxu1  ;;  %v4750_v32 = vpop.f32.mrb[52].mxu0 }
0x118b   :  { %v4762_v34 = vmul.f32 0.35355338, %v4701_v10  ;;  %v4763_v22 = vmul.f32 0.35355338, %v4750_v32  ;;  %v6124_v8 = vpop.f32.mrb[65].mxu1  ;;  %v6130_v35 = vpop.f32.mrb[53].mxu0 }
0x118c   :  { %v4704_v12 = vpop.f32.mrb[66].mxu1  ;;  %v4753_v37 = vpop.f32.mrb[54].mxu0 }
0x118d   :  { %v4770_v62 = vadd.f32 %v4762_v34, %v4228_v63  ;;  %v7623_v2 = vadd.f32 %v4763_v22, %v4229_v21  ;;  %v6125_v6 = vpop.f32.mrb[67].mxu1  ;;  %v6131_v16 = vpop.f32.mrb[55].mxu0 }
0x118f   :  { %v4790_v13 = vsel %vm2028_vm4, %v4770_v62, -inf  ;;  %v4793_v11 = vsel %vm2028_vm4, %v7623_v2, -inf }
0x1190   :  { %4791 = vmax.xlane.f32.xlu1 %v4790_v13  ;;  %4794 = vmax.xlane.f32.xlu0 %v4793_v11 }
0x119b   :  { %v4777_v21 = vpop.xlane.xlu0 %4776 }
0x119c   :  { %v4797_v63 = vsub.f32 %v7611_v44, %v4777_v21 }
0x119e   :  { %v4774_v9 = vpop.xlane.xlu1 %4773  ;;  %v4806_v33 = vmul.f32 1.442695, %v4797_v63 }
0x119f   :  { %v4796_v42 = vsub.f32 %v4764_v0, %v4774_v9 }
0x11a0   :  { %6363 = vpow2.f32 %v4806_v33 }
0x11a1   :  { %4965 = vrot.lane.b32.xlu1 %v7522_v26, %s6436_s30  ;;  %v4804_v58 = vmul.f32 1.442695, %v4796_v42 }
0x11a3   :  { %6365 = vpow2.f32 %v4804_v58 }
0x11a5   :  { %5013 = vrot.lane.b32.xlu1 %v7520_v14, %s6436_s30 }
0x11a6   :  { %4917 = vrot.lane.b32.xlu0 %v7514_v3, %s6436_s30 }
0x11aa   :  { %v6364_v4 = vpop.eup %6363 }
0x11ab   :  { %v4823_v59 = vsel %vm2028_vm4, %v6364_v4, 0.0 }
0x11ad   :  { %v7636_v1 = vpop.eup %6365 }
0x11ae   :  { %v4820_v14 = vsel %vm2028_vm4, %v7636_v1, 0.0 }
0x11c5   :  { %4824 = vadd.xlane.f32.xlu0 %v4823_v59 }
0x11c9   :  { %4821 = vadd.xlane.f32.xlu1 %v4820_v14 }
0x11da   :  { %5061 = vrot.lane.b32.xlu1 %v7531_v46, %s6436_s30 }
0x120d   :  { %v4780_v3 = vpop.xlane.xlu0 %4779 }
0x120e   :  { %v4798_v26 = vsub.f32 %v4766_v25, %v4780_v3 }
0x1210   :  { %v4808_v44 = vmul.f32 1.442695, %v4798_v26 }
0x1211   :  { %v4783_v0 = vpop.xlane.xlu0 %4782 }
0x1212   :  { %6367 = vpow2.f32 %v4808_v44  ;;  %v4799_v5 = vsub.f32 %v4767_v28, %v4783_v0 }
0x1214   :  { %v4810_v17 = vmul.f32 1.442695, %v4799_v5 }
0x1215   :  { %v4786_v39 = vpop.xlane.xlu1 %4785  ;;  %v4789_v23 = vpop.xlane.xlu0 %4788 }
0x1216   :  { %6369 = vpow2.f32 %v4810_v17  ;;  %v4800_v15 = vsub.f32 %v4768_v24, %v4786_v39  ;;  %v4801_v52 = vsub.f32 %v7618_v31, %v4789_v23 }
0x1218   :  { %v4812_v30 = vmul.f32 1.442695, %v4800_v15  ;;  %v4814_v49 = vmul.f32 1.442695, %v4801_v52 }
0x121a   :  { %6371 = vpow2.f32 %v4812_v30 }
0x121c   :  { %v7642_v50 = vpop.eup %6367 }
0x121d   :  { %v4792_v27 = vpop.xlane.xlu1 %4791  ;;  %v4795_v53 = vpop.xlane.xlu0 %4794  ;;  %v4826_v46 = vsel %vm2028_vm4, %v7642_v50, 0.0 }
0x121e   :  { %v4802_v29 = vsub.f32 %v4770_v62, %v4792_v27  ;;  %4827 = vadd.xlane.f32.xlu1 %v4826_v46  ;;  %v4803_v43 = vsub.f32 %v7623_v2, %v4795_v53 }
0x1220   :  { %v7646_v25 = vpop.eup %6369  ;;  %v4816_v57 = vmul.f32 1.442695, %v4802_v29  ;;  %v4818_v40 = vmul.f32 1.442695, %v4803_v43 }
0x1221   :  { %v4918_v28 = vpop.permute.xlu0 %4917  ;;  %v4829_v36 = vsel %vm2028_vm4, %v7646_v25, 0.0  ;;  %v4966_v10 = vpop.permute.xlu1 %4965 }
0x1222   :  { %6373 = vpow2.f32 %v4816_v57  ;;  %v4923_v7 = vsel %vm4873_vm12, %v4918_v28, 0  ;;  %4830 = vadd.xlane.f32.xlu0 %v4829_v36  ;;  %v4971_v13 = vsel %vm4873_vm12, %v4966_v10, 0 }
0x1223   :  { %6139 = vmatpush3.bf16.msra.mxu0 %v4923_v7  ;;  %6375 = vpow2.f32 %v4814_v49 }
0x1224   :  { %v7651_v56 = vpop.eup %6371  ;;  %6150 = vmatprep.subr.bf16.mxu0 %v7850_v19  ;;  %6377 = vpow2.f32 %v4818_v40 }
0x1225   :  { %v4832_v54 = vsel %vm2028_vm4, %v7651_v56, 0.0  ;;  %v5014_v32 = vpop.permute.xlu1 %5013 }
0x1226   :  { %4833 = vadd.xlane.f32.xlu1 %v4832_v54  ;;  %v5019_v2 = vsel %vm4873_vm12, %v5014_v32, 0 }
0x122c   :  { %v7656_v41 = vpop.eup %6373 }
0x122d   :  { %v4838_v24 = vsel %vm2028_vm4, %v7656_v41, 0.0  ;;  %v7666_v22 = vpop.eup %6375 }
0x122e   :  { %4839 = vadd.xlane.f32.xlu1 %v4838_v24  ;;  %v7670_v35 = vpop.eup %6377 }
0x1238   :  { %5109 = vrot.lane.b32.xlu0 %v7529_v18, %s6436_s30  ;;  %v4835_v18 = vsel %vm2028_vm4, %v7666_v22, 0.0 }
0x123f   :  { %5157 = vrot.lane.b32.xlu1 %v7541_v55, %s6436_s30  ;;  %v4841_v55 = vsel %vm2028_vm4, %v7670_v35, 0.0 }
0x1252   :  { %v4825_v34 = vpop.xlane.xlu0 %4824 }
0x1253   :  { %6379 = vrcp.f32 %v4825_v34 }
0x1256   :  { %v4822_v8 = vpop.xlane.xlu1 %4821 }
0x1257   :  { %6381 = vrcp.f32 %v4822_v8  ;;  %4836 = vadd.xlane.f32.xlu0 %v4835_v18 }
0x125a   :  { %v5062_v11 = vpop.permute.xlu1 %5061 }
0x125b   :  { %4842 = vadd.xlane.f32.xlu0 %v4841_v55  ;;  %v5067_v59 = vsel %vm4873_vm12, %v5062_v11, 0 }
0x125d   :  { %v6380_v31 = vpop.eup %6379 }
0x125e   :  { %v4853_v12 = vmul.f32 %v6380_v31, %v6364_v4 }
0x1260   :  { %v4861_v37 = vpack.c.bf16 %v4853_v12, %v4853_v12 }
0x1261   :  { %v6382_v62 = vpop.eup %6381 }
0x1262   :  { %v4852_v6 = vmul.f32 %v6382_v62, %v7636_v1  ;;  %6141 = vmatmul.mubr.msk.bf16.vlgmr.msra.gmra.mrb[56].mxu0 %vm2028_vm4, %v4861_v37 }
0x1263   :  { %6151 = vmatpush3.bf16.msra.mxu0 %v5019_v2  ;;  %6152 = vmatprep.mubr.msk.bf16.mxu0 %vm6431_vm3, %v7850_v19 }
0x1264   :  { %v4860_v16 = vpack.c.bf16 %v4852_v6, %v4852_v6  ;;  %6162 = vmatprep.subr.bf16.mxu0 %v7850_v19 }
0x1266   :  { %6135 = vmatmul.mubr.msk.bf16.vlgmr.msra.gmra.mrb[68].mxu1 %vm2028_vm4, %v4860_v16 }
0x1267   :  { %6145 = vmatpush3.bf16.msra.mxu1 %v4971_v13  ;;  %6146 = vmatprep.mubr.msk.bf16.mxu1 %vm6431_vm3, %v7850_v19 }
0x1268   :  { %6156 = vmatprep.subr.bf16.mxu1 %v7850_v19 }
0x1271   :  { %5205 = vrot.lane.b32.xlu0 %v7539_v48, %s6436_s30 }
0x12ab   :  { %v4828_v21 = vpop.xlane.xlu1 %4827 }
0x12ac   :  { %6383 = vrcp.f32 %v4828_v21  ;;  %v6295_v21 = vld [vmem:[%s7834_s7 + $0x4] ss:$16 sps:$4 sm:$0xff]  }
0x12af   :  { %v4831_v63 = vpop.xlane.xlu0 %4830 }
0x12b0   :  { %6385 = vrcp.f32 %v4831_v63 }
0x12b3   :  { %v4834_v9 = vpop.xlane.xlu1 %4833  ;;  %v5110_v48 = vpop.permute.xlu0 %5109 }
0x12b4   :  { %6387 = vrcp.f32 %v4834_v9  ;;  %v5115_v0 = vsel %vm4873_vm12, %v5110_v48, 0  ;;  %v6296_v9 = vld [vmem:[%s7834_s7 + $0x24] ss:$16 sps:$4 sm:$0xff]  }
0x12b6   :  { %v6384_v33 = vpop.eup %6383 }
0x12b7   :  { %v4854_v42 = vmul.f32 %v6384_v33, %v7642_v50 }
0x12b9   :  { %v4862_v58 = vpack.c.bf16 %v4854_v42, %v4854_v42 }
0x12ba   :  { %v6386_v4 = vpop.eup %6385 }
0x12bb   :  { %v4855_v1 = vmul.f32 %v6386_v4, %v7646_v25  ;;  %6147 = vmatmul.mubr.msk.bf16.vlgmr.msra.gmra.mrb[72].mxu1 %vm2028_vm4, %v4862_v58  ;;  %v4840_v14 = vpop.xlane.xlu1 %4839 }
0x12bc   :  { %6157 = vmatpush3.bf16.msra.mxu1 %v5067_v59  ;;  %6389 = vrcp.f32 %v4840_v14  ;;  %6158 = vmatprep.mubr.msk.bf16.mxu1 %vm6431_vm3, %v7850_v19 }
0x12bd   :  { %v4863_v3 = vpack.c.bf16 %v4855_v1, %v4855_v1  ;;  %6168 = vmatprep.subr.bf16.mxu1 %v7850_v19 }
0x12be   :  { %v6388_v26 = vpop.eup %6387 }
0x12bf   :  { %v4856_v44 = vmul.f32 %v6388_v26, %v7651_v56  ;;  %6153 = vmatmul.mubr.msk.bf16.vlgmr.msra.gmra.mrb[60].mxu0 %vm2028_vm4, %v4863_v3  ;;  %v5158_v5 = vpop.permute.xlu1 %5157 }
0x12c0   :  { %6163 = vmatpush3.bf16.msra.mxu0 %v5115_v0  ;;  %6164 = vmatprep.mubr.msk.bf16.mxu0 %vm6431_vm3, %v7850_v19  ;;  %v5163_v39 = vsel %vm4873_vm12, %v5158_v5, 0 }
0x12c1   :  { %v4864_v17 = vpack.c.bf16 %v4856_v44, %v4856_v44  ;;  %6174 = vmatprep.subr.bf16.mxu0 %v7850_v19 }
0x12c3   :  { %6159 = vmatmul.mubr.msk.bf16.vlgmr.msra.gmra.mrb[76].mxu1 %vm2028_vm4, %v4864_v17 }
0x12c4   :  { %6169 = vmatpush3.bf16.msra.mxu1 %v5163_v39  ;;  %6170 = vmatprep.mubr.msk.bf16.mxu1 %vm6431_vm3, %v7850_v19 }
0x12c5   :  { %6180 = vmatprep.subr.bf16.mxu1 %v7850_v19 }
0x12c6   :  { %v6390_v15 = vpop.eup %6389 }
0x12c7   :  { %v4858_v30 = vmul.f32 %v6390_v15, %v7656_v41 }
0x12c9   :  { %v4866_v23 = vpack.c.bf16 %v4858_v30, %v4858_v30 }
0x12cb   :  { %6171 = vmatmul.mubr.msk.bf16.vlgmr.msra.gmra.mrb[80].mxu1 %vm2028_vm4, %v4866_v23 }
0x12cc   :  { %6184 = vmatprep.mubr.msk.bf16.mxu1 %vm6431_vm3, %v7850_v19  ;;  %6181 = vmatpush3.bf16.msra.mxu1 %v6295_v21 }
0x12cd   :  { %6182 = vmatprep.subr.bf16.mxu1 %v7850_v19 }
0x12d0   :  { %6183 = vmatpush3.bf16.msra.mxu1 %v6296_v9  ;;  %v5818_v9 = vld [vmem:[%s7836_s9 + $0x2] ss:$0 sm:$0xff] }
0x12d1   :  { %6196 = vmatprep.subr.bf16.mxu1 %v7850_v19 }
0x12e4   :  { %v4837_v50 = vpop.xlane.xlu0 %4836 }
0x12e5   :  { %6391 = vrcp.f32 %v4837_v50 }
0x12e8   :  { %v4843_v27 = vpop.xlane.xlu0 %4842 }
0x12e9   :  { %6393 = vrcp.f32 %v4843_v27 }
0x12ec   :  { %v5206_v29 = vpop.permute.xlu0 %5205 }
0x12ed   :  { %v5211_v28 = vsel %vm4873_vm12, %v5206_v29, 0 }
0x12ef   :  { %v6392_v53 = vpop.eup %6391 }
0x12f0   :  { %v4857_v46 = vmul.f32 %v6392_v53, %v7666_v22 }
0x12f2   :  { %v4865_v25 = vpack.c.bf16 %v4857_v46, %v4857_v46 }
0x12f3   :  { %v6394_v57 = vpop.eup %6393 }
0x12f4   :  { %6165 = vmatmul.mubr.msk.bf16.vlgmr.msra.gmra.mrb[64].mxu0 %vm2028_vm4, %v4865_v25  ;;  %v4859_v36 = vmul.f32 %v6394_v57, %v7670_v35 }
0x12f5   :  { %6175 = vmatpush3.bf16.msra.mxu0 %v5211_v28  ;;  %6176 = vmatprep.mubr.msk.bf16.mxu0 %vm6431_vm3, %v7850_v19  ;;  %v5814_v28 = vld [vmem:[%s7836_s9 + $0x9] ss:$0 sm:$0xff] }
0x12f6   :  { %6188 = vmatprep.subr.bf16.mxu0 %v7850_v19  ;;  %v4867_v7 = vpack.c.bf16 %v4859_v36, %v4859_v36 }
0x12fc   :  { %6177 = vmatmul.mubr.msk.bf16.vlgmr.msra.gmra.mrb[68].mxu0 %vm2028_vm4, %v4867_v7 }
0x12fd   :  { %6192 = vmatprep.mubr.msk.bf16.mxu0 %vm6431_vm3, %v7850_v19 }
0x1335   :  { %v4959_v56 = vpop.f32.mrb[56].mxu0 }
0x1336   :  { %v6142_v54 = vpop.f32.mrb[57].mxu0 }
0x1337   :  { %v4962_v41 = vpop.f32.mrb[58].mxu0 }
0x1338   :  { %v6143_v24 = vpop.f32.mrb[59].mxu0 }
0x1339   :  { %v4911_v52 = vpop.f32.mrb[68].mxu1 }
0x133a   :  { %v6136_v49 = vpop.f32.mrb[69].mxu1 }
0x133b   :  { %v4914_v43 = vpop.f32.mrb[70].mxu1 }
0x133c   :  { %v6137_v40 = vpop.f32.mrb[71].mxu1 }
0x138e   :  { %v5007_v10 = vpop.f32.mrb[72].mxu1 }
0x138f   :  { %v6148_v32 = vpop.f32.mrb[73].mxu1 }
0x1390   :  { %v5010_v34 = vpop.f32.mrb[74].mxu1 }
0x1391   :  { %v6149_v22 = vpop.f32.mrb[75].mxu1 }
0x1392   :  { %v5055_v8 = vpop.f32.mrb[60].mxu0 }
0x1393   :  { %v6247_v18 = vpack.i.bf16 %v5055_v8, %v5007_v10  ;;  %v6154_v35 = vpop.f32.mrb[61].mxu0 }
0x1394   :  { %v5058_v55 = vpop.f32.mrb[62].mxu0 }
0x1395   :  { %6248 = vrot.lane.b32.xlu1 %v6247_v18, %s6438_s12  ;;  %v6155_v31 = vpop.f32.mrb[63].mxu0 }
0x1396   :  { %v5103_v12 = vpop.f32.mrb[76].mxu1  ;;  %v6297_v31 = vld [vmem:[%s7834_s7 + $0x8] ss:$16 sps:$4 sm:$0xff]  }
0x1397   :  { %v6160_v37 = vpop.f32.mrb[77].mxu1  ;;  %6189 = vmatpush3.bf16.msra.mxu0 %v6297_v31 }
0x1398   :  { %v5106_v62 = vpop.f32.mrb[78].mxu1  ;;  %6190 = vmatprep.subr.bf16.mxu0 %v7850_v19  ;;  %v5554_v37 = vsel %vm5553_vm14, %v7597_v38, 0.0  ;;  %v5819_v38 = vld [vmem:[%s7836_s9 + $0x3] ss:$0 sm:$0xff] }
0x1399   :  { %v6161_v2 = vpop.f32.mrb[79].mxu1 }
0x139e   :  { %v5199_v6 = vpop.f32.mrb[80].mxu1 }
0x139f   :  { %v6172_v16 = vpop.f32.mrb[81].mxu1 }
0x13a0   :  { %v5202_v13 = vpop.f32.mrb[82].mxu1 }
0x13a1   :  { %v6173_v11 = vpop.f32.mrb[83].mxu1 }
0x13c7   :  { %v5151_v63 = vpop.f32.mrb[64].mxu0 }
0x13c8   :  { %v6252_v33 = vpack.i.bf16 %v5151_v63, %v5103_v12  ;;  %v6166_v42 = vpop.f32.mrb[65].mxu0  ;;  %v6298_v12 = vld [vmem:[%s7834_s7 + $0x28] ss:$16 sps:$4 sm:$0xff]  }
0x13c9   :  { %v5154_v58 = vpop.f32.mrb[66].mxu0  ;;  %6191 = vmatpush3.bf16.msra.mxu0 %v6298_v12 }
0x13ca   :  { %6253 = vrot.lane.b32.xlu0 %v6252_v33, %s6439_s13  ;;  %v6167_v4 = vpop.f32.mrb[67].mxu0  ;;  %6208 = vmatprep.subr.bf16.mxu0 %v7850_v19 }
0x13cf   :  { %v5247_v59 = vpop.f32.mrb[68].mxu0 }
0x13d0   :  { %v6257_v1 = vpack.i.bf16 %v5247_v59, %v5199_v6  ;;  %v6178_v14 = vpop.f32.mrb[69].mxu0 }
0x13d1   :  { %v5250_v48 = vpop.f32.mrb[70].mxu0 }
0x13d2   :  { %6258 = vrot.lane.b32.xlu1 %v6257_v1, %s6440_s14  ;;  %v6179_v3 = vpop.f32.mrb[71].mxu0  ;;  %v6299_v48 = vld [vmem:[%s7835_s8] sm:$0xff]  }
0x13d3   :  { %v6300_v3 = vld [vmem:[%s7835_s8 + $0x8] sm:$0xff]  }
0x1407   :  { %v6249_v26 = vpop.permute.xlu1 %6248 }
0x1408   :  { %v6251_v0 = vunpack.i.h.bf16 %v6249_v26  ;;  %v6250_v5 = vunpack.i.l.bf16 %v6249_v26  ;;  %v6301_v26 = vld [vmem:[%s7835_s8 + $0x10] sm:$0xff]  }
0x140a   :  { %v5278_v30 = vsel %vm2028_vm4, %v4959_v56, %v6251_v0  ;;  %v5277_v23 = vsel %vm2028_vm4, %v4911_v52, %v6250_v5 }
0x143c   :  { %v6254_v44 = vpop.permute.xlu0 %6253 }
0x143d   :  { %v6256_v17 = vunpack.i.h.bf16 %v6254_v44  ;;  %v6255_v39 = vunpack.i.l.bf16 %v6254_v44  ;;  %v6302_v44 = vld [vmem:[%s7835_s8 + $0x18] sm:$0xff]  }
0x143f   :  { %v5280_v53 = vsel %vm2938_vm9, %v5278_v30, %v6256_v17  ;;  %v5279_v46 = vsel %vm2938_vm9, %v5277_v23, %v6255_v39 }
0x1444   :  { %v6259_v15 = vpop.permute.xlu1 %6258 }
0x1445   :  { %v6261_v50 = vunpack.i.h.bf16 %v6259_v15  ;;  %v6260_v27 = vunpack.i.l.bf16 %v6259_v15 }
0x1447   :  { %v5282_v29 = vsel %vm2941_vm10, %v5280_v53, %v6261_v50  ;;  %v5281_v25 = vsel %vm2941_vm10, %v5279_v46, %v6260_v27  ;;  %v5820_v50 = vld [vmem:[%s7836_s9 + $0xa] ss:$0 sm:$0xff] }
0x1448   :  { %v5283_v57 = vpack.c.bf16 %v5282_v29, %v5281_v25 }
0x144a   :  { %6185 = vmatmul.mubr.msk.bf16.vlgmr.msra.gmra.mrb[84].mxu1 %vm593_vm1, %v5283_v57 }
0x144b   :  { %6204 = vmatprep.mubr.msk.bf16.mxu1 %vm6431_vm3, %v7850_v19  ;;  %6197 = vmatpush3.bf16.msra.mxu1 %v6299_v48 }
0x144c   :  { %6198 = vmatprep.subr.bf16.mxu1 %v7850_v19 }
0x144f   :  { %6199 = vmatpush3.bf16.msra.mxu1 %v6300_v3 }
0x1450   :  { %6200 = vmatprep.subr.bf16.mxu1 %v7850_v19 }
0x1453   :  { %6201 = vmatpush3.bf16.msra.mxu1 %v6301_v26 }
0x1454   :  { %6202 = vmatprep.subr.bf16.mxu1 %v7850_v19 }
0x1457   :  { %6203 = vmatpush3.bf16.msra.mxu1 %v6302_v44 }
0x151d   :  { %v5342_v36 = vpop.f32.mrb[84].mxu1 }
0x151e   :  { %v5343_v7 = vadd.f32 %v5814_v28, %v5342_v36  ;;  %v6186_v56 = vpop.f32.mrb[85].mxu1 }
0x151f   :  { %v5345_v54 = vpop.f32.mrb[86].mxu1 }
0x1520   :  { %v7743_v41 = vadd.f32 %v5343_v7, %v7421_v20  ;;  %v5346_v24 = vadd.f32 %v5814_v28, %v5345_v54  ;;  %v6187_v52 = vpop.f32.mrb[87].mxu1 }
0x1522   :  { %v7746_v49 = vadd.f32 %v5346_v24, %v7448_v47  ;;  %v5353_v43 = vsel %vm593_vm1, %v7743_v41, 0.0 }
0x1523   :  { %5354 = vadd.xlane.f32.xlu0 %v5353_v43 }
0x1524   :  { %v5356_v40 = vsel %vm593_vm1, %v7746_v49, 0.0 }
0x1525   :  { %5357 = vadd.xlane.f32.xlu1 %v5356_v40 }
0x15b0   :  { %v5355_v10 = vpop.xlane.xlu0 %5354 }
0x15b1   :  { %v5359_v32 = vmul.f32 0.03125, %v5355_v10 }
0x15b2   :  { %v5358_v34 = vpop.xlane.xlu1 %5357 }
0x15b3   :  { %v5361_v22 = vsub.f32 %v7743_v41, %v5359_v32  ;;  %v5360_v20 = vmul.f32 0.03125, %v5358_v34  ;;  %v5824_v32 = vld [vmem:[%s7836_s9 + $0xb] ss:$0 sm:$0xff] }
0x15b5   :  { %v5362_v8 = vsub.f32 %v7746_v49, %v5360_v20  ;;  %v5363_v18 = vmul.f32 %v5361_v22, %v5361_v22 }
0x15b7   :  { %v5365_v47 = vsel %vm593_vm1, %v5363_v18, 0.0  ;;  %v5364_v35 = vmul.f32 %v5362_v8, %v5362_v8 }
0x15b8   :  { %5366 = vadd.xlane.f32.xlu0 %v5365_v47 }
0x15b9   :  { %v5368_v55 = vsel %vm593_vm1, %v5364_v35, 0.0 }
0x15bc   :  { %5369 = vadd.xlane.f32.xlu0 %v5368_v55 }
0x15c0   :  { %5555 = vadd.xlane.f32.xlu0 %v5554_v37 }
0x1645   :  { %v5367_v62 = vpop.xlane.xlu0 %5366 }
0x1646   :  { %v5371_v2 = vmul.f32 0.03125, %v5367_v62 }
0x1648   :  { %v5373_v6 = vadd.f32 1e-05, %v5371_v2 }
0x1649   :  { %v5370_v16 = vpop.xlane.xlu0 %5369 }
0x164a   :  { %6395 = vrsqrt.f32 %v5373_v6  ;;  %v5372_v13 = vmul.f32 0.03125, %v5370_v16 }
0x164c   :  { %v5374_v11 = vadd.f32 1e-05, %v5372_v13 }
0x164d   :  { %v5556_v0 = vpop.xlane.xlu0 %5555 }
0x164e   :  { %6397 = vrsqrt.f32 %v5374_v11  ;;  %v6216_v5 = vtrunc.f32 %v5556_v0 }
0x1650   :  { %v6217_v17 = vcvt.f32.s32 %v6216_v5 }
0x1652   :  { %v5830_v39 = vadd.s32 4294967295, %v6217_v17 }
0x1654   :  { %v6396_v21 = vpop.eup %6395  ;;  %vm5559_vm15 = vcmp.eq.s32.totalorder %v7602_v51, %v5830_v39 }
0x1655   :  { %v5377_v63 = vmul.f32 %v6396_v21, %v5361_v22  ;;  %v5831_v15 = vsel %vm5559_vm15, 1.0, %v7850_v19 }
0x1656   :  { %v5565_v30 = vrot.slane %v5831_v15, %v6620_v60  ;;  %v5572_v23 = vrot.slane %v5831_v15, %v6623_v61  ;;  %v6303_v15 = vld [vmem:[%s7834_s7 + $0xc] ss:$16 sps:$4 sm:$0xff]  }
0x1657   :  { %v5383_v42 = vmul.f32 %v5818_v9, %v5377_v63 }
0x1658   :  { %v6398_v33 = vpop.eup %6397  ;;  %5567 = vbcast.lane.b32.xlu1 %v5565_v30, 256  ;;  %5574 = vbcast.lane.b32.xlu0 %v5572_v23, 256  ;;  %v6304_v30 = vld [vmem:[%s7834_s7 + $0x2c] ss:$16 sps:$4 sm:$0xff]   ;;  %s5712_s7 = sld [smem:[#allocation2]] }
0x1659   :  { %v5378_v58 = vmul.f32 %v6398_v33, %v5362_v8  ;;  %v5389_v59 = vadd.f32 %v5819_v38, %v5383_v42 }
0x165b   :  { %v5384_v4 = vmul.f32 %v5818_v9, %v5378_v58 }
0x165d   :  { %v5390_v1 = vadd.f32 %v5819_v38, %v5384_v4 }
0x165f   :  { %v5391_v14 = vpack.c.bf16 %v5390_v1, %v5389_v59 }
0x1661   :  { %6193 = vmatmul.mubr.msk.bf16.vlgmr.msra.gmra.mrb[72].mxu0 %vm593_vm1, %v5391_v14 }
0x1662   :  { %6212 = vmatprep.mubr.msk.bf16.mxu0 %vm6431_vm3, %v7850_v19  ;;  %6209 = vmatpush3.bf16.msra.mxu0 %v6303_v15 }
0x1663   :  { %6210 = vmatprep.subr.bf16.mxu0 %v7850_v19 }
0x1666   :  { %6211 = vmatpush3.bf16.msra.mxu0 %v6304_v30 }
0x16ca   :  { %v5568_v18 = vpop.permute.xlu1 %5567  ;;  %v5575_v31 = vpop.permute.xlu0 %5574 }
0x1734   :  { %v5450_v27 = vpop.f32.mrb[72].mxu0 }
0x1735   :  { %v5451_v53 = vadd.f32 %v5820_v50, %v5450_v27  ;;  %v6194_v46 = vpop.f32.mrb[73].mxu0 }
0x1736   :  { %v5453_v29 = vpop.f32.mrb[74].mxu0  ;;  %v5832_v46 = vld [vmem:[%s7836_s9 + $0x4] ss:$0 sm:$0xff] }
0x1737   :  { %v5457_v25 = vmul.f32 -1.702, %v5451_v53  ;;  %v5454_v57 = vadd.f32 %v5820_v50, %v5453_v29  ;;  %v6195_v28 = vpop.f32.mrb[75].mxu0 }
0x1739   :  { %v5459_v51 = vmul.f32 1.442695, %v5457_v25  ;;  %v5458_v36 = vmul.f32 -1.702, %v5454_v57 }
0x173b   :  { %6399 = vpow2.f32 %v5459_v51  ;;  %v5461_v7 = vmul.f32 1.442695, %v5458_v36 }
0x173d   :  { %6401 = vpow2.f32 %v5461_v7 }
0x1745   :  { %v6400_v60 = vpop.eup %6399 }
0x1746   :  { %v5463_v61 = vadd.f32 1.0, %v6400_v60 }
0x1747   :  { %v6402_v56 = vpop.eup %6401 }
0x1748   :  { %6403 = vrcp.f32 %v5463_v61  ;;  %v5464_v54 = vadd.f32 1.0, %v6402_v56 }
0x174a   :  { %6405 = vrcp.f32 %v5464_v54 }
0x1752   :  { %v6404_v24 = vpop.eup %6403 }
0x1753   :  { %v5467_v43 = vmul.f32 %v6404_v24, %v5451_v53 }
0x1754   :  { %v6406_v52 = vpop.eup %6405 }
0x1755   :  { %v5468_v40 = vmul.f32 %v6406_v52, %v5454_v57  ;;  %v5833_v57 = vld [vmem:[%s7836_s9 + $0x5] ss:$0 sm:$0xff]  ;;  %s5837_s9 = sld [smem:[#allocation2 + $0x1]] }
0x1757   :  { %v5469_v10 = vpack.c.bf16 %v5468_v40, %v5467_v43 }
0x1759   :  { %6205 = vmatmul.mubr.msk.bf16.vlgmr.msra.gmra.mrb[88].mxu1 %vm331_vm0, %v5469_v10  ;;  %vm5708_vm0 = vcmask 123904  }
0x182c   :  { %v5544_v34 = vpop.f32.mrb[88].mxu1 }
0x182d   :  { %v5545_v22 = vadd.f32 %v5824_v32, %v5544_v34  ;;  %v6206_v20 = vpop.f32.mrb[89].mxu1 }
0x182e   :  { %v5547_v8 = vpop.f32.mrb[90].mxu1 }
0x182f   :  { %v5548_v47 = vadd.f32 %v5824_v32, %v5547_v8  ;;  %v6207_v35 = vpop.f32.mrb[91].mxu1  ;;  %v5551_v55 = vadd.f32 %v5545_v22, %v7743_v41  ;;  %v5713_v8 = vstv %s5712_s7 }
0x1831   :  { %v5576_v12 = vmul.f32 %v5568_v18, %v5551_v55  ;;  %v5552_v37 = vadd.f32 %v5548_v47, %v7746_v49  ;;  %v5716_v18 = vstv %s5837_s9 }
0x1833   :  { %v5578_v62 = vsel %vm593_vm1, %v5576_v12, 0.0  ;;  %v5577_v2 = vmul.f32 %v5575_v31, %v5552_v37 }
0x1834   :  { %v5579_v6 = vrot.slane %v5578_v62, 4 }
0x1835   :  { %v5585_v16 = vsel %vm593_vm1, %v5577_v2, 0.0 }
0x1836   :  { %v5580_v13 = vadd.f32 %v5579_v6, %v5578_v62  ;;  %v5586_v11 = vrot.slane %v5585_v16, 4 }
0x1838   :  { %v5581_v21 = vrot.slane %v5580_v13, 2  ;;  %v5587_v63 = vadd.f32 %v5586_v11, %v5585_v16 }
0x183a   :  { %v5582_v9 = vadd.f32 %v5581_v21, %v5580_v13  ;;  %v5588_v33 = vrot.slane %v5587_v63, 2 }
0x183c   :  { %v5583_v42 = vrot.slane %v5582_v9, 1  ;;  %v5589_v58 = vadd.f32 %v5588_v33, %v5587_v63 }
0x183e   :  { %v5590_v38 = vrot.slane %v5589_v58, 1  ;;  %v5584_v41 = vadd.f32 %v5583_v42, %v5582_v9 }
0x1840   :  { %v5591_v4 = vadd.f32 %v5590_v38, %v5589_v58 }
0x1842   :  { %v5596_v59 = vsel %vm4120_vm11, %v5591_v4, %v5584_v41 }
0x1843   :  { %v5598_v49 = vsel %vm597_vm2, %v5596_v59, 0.0 }
0x1844   :  { %5599 = vadd.xlane.f32.xlu1 %v5598_v49 }
0x18d1   :  { %v5600_v1 = vpop.xlane.xlu1 %5599 }
0x18d2   :  { %v5601_v14 = vmul.f32 0.03125, %v5600_v1 }
0x18d4   :  { %v5603_v48 = vrot.slane %v5601_v14, 1  ;;  %v5606_v3 = vsub.f32 %v5584_v41, %v5601_v14 }
0x18d6   :  { %v5607_v26 = vsub.f32 %v5591_v4, %v5603_v48  ;;  %v5608_v0 = vmul.f32 %v5606_v3, %v5606_v3 }
0x18d8   :  { %v5609_v44 = vmul.f32 %v5607_v26, %v5607_v26 }
0x18da   :  { %v5612_v5 = vrot.slane %v5609_v44, 7 }
0x18dc   :  { %v5613_v17 = vsel %vm4120_vm11, %v5612_v5, %v5608_v0 }
0x18dd   :  { %v5615_v39 = vsel %vm597_vm2, %v5613_v17, 0.0 }
0x18de   :  { %5616 = vadd.xlane.f32.xlu0 %v5615_v39 }
0x196b   :  { %v5617_v23 = vpop.xlane.xlu0 %5616 }
0x196c   :  { %v5618_v50 = vmul.f32 0.03125, %v5617_v23 }
0x196e   :  { %v5619_v27 = vadd.f32 1e-05, %v5618_v50 }
0x1970   :  { %6407 = vrsqrt.f32 %v5619_v27 }
0x197a   :  { %v6408_v53 = vpop.eup %6407 }
0x197b   :  { %v5622_v29 = vrot.slane %v6408_v53, 1  ;;  %v5625_v25 = vmul.f32 %v6408_v53, %v5606_v3 }
0x197d   :  { %v5626_v28 = vmul.f32 %v5622_v29, %v5607_v26  ;;  %v5631_v51 = vmul.f32 %v5832_v46, %v5625_v25 }
0x197f   :  { %v5632_v36 = vmul.f32 %v5832_v46, %v5626_v28  ;;  %v5637_v19 = vadd.f32 %v5833_v57, %v5631_v51 }
0x1981   :  { %v5638_v7 = vadd.f32 %v5833_v57, %v5632_v36  ;;  %v5639_v60 = vpack.c.bf16 %v5637_v19, %v5637_v19 }
0x1983   :  { %v5640_v61 = vpack.c.bf16 %v5638_v7, %v5638_v7  ;;  %v5647_v54 = vunpack.c.l.b16 %v5639_v60 }
0x1985   :  { %v5648_v56 = vunpack.c.l.b16 %v5640_v61 }
0x1987   :  { %v5649_v24 = vrot.slane %v5648_v56, 7 }
0x1989   :  { %v5650_v52 = vsel %vm4120_vm11, %v5649_v24, %v5647_v54 }
0x198a   :  { %v5651_v43 = vpack.c.b16 %v5650_v52, %v5650_v52 }
0x198c   :  { %6213 = vmatmul.mubr.msk.bf16.vlgmr.msra.gmra.mrb[76].mxu0 %vm593_vm1, %v5651_v43  ;;  %vm5723_vm1 = vcmask 1024  }
0x1a5f   :  { %v5701_v40 = vpop.f32.mrb[76].mxu0 }
0x1a60   :  { %v5707_v10 = vmul.f32 %v5701_v40, %v7507_v45  ;;  %v6214_v32 = vpop.f32.mrb[77].mxu0 }
0x1a61   :  { %v5704_v34 = vpop.f32.mrb[78].mxu0 }
0x1a62   :  { %v6215_v22 = vpop.f32.mrb[79].mxu0  ;;  %v5709_v20 = vsel %vm5708_vm0, %v5707_v10, 0.0 }
0x1a63   :  { %5710 = vadd.xlane.f32.xlu1 %v5709_v20 }
0x1af0   :  { %v5711_v47 = vpop.xlane.xlu1 %5710 }
0x1af1   :  { %v5714_v35 = vmul.f32 %v5713_v8, %v5711_v47 }
0x1af3   :  { %v5717_v55 = vadd.f32 %v5716_v18, %v5714_v35 }
0x1af5   :  { %v5718_v31 = vsub.f32 0.0, %v5717_v55 }
0x1af7   :  { %v5719_v12 = vmul.f32 1.442695, %v5718_v31 }
0x1af9   :  { %6409 = vpow2.f32 %v5719_v12 }
0x1b03   :  { %v6410_v37 = vpop.eup %6409 }
0x1b04   :  { %v5721_v62 = vadd.f32 1.0, %v6410_v37 }
0x1b06   :  { %6411 = vrcp.f32 %v5721_v62 }
0x1b10   :  { %v6412_v45 = vpop.eup %6411 }
0x1b11   :  { %5724 = vst.msk [vmem:[%s7838_s11] sm:$0x3] %vm5723_vm1, %v6412_v45 }
0x1b12   :  { %5729 = vsyncpa [#allocation3], 1 }

</bundles_post_ra>
